<compile_context>
chip_gen: v7x
topology: tpu7x:2x2x1
jax: 0.10.0
libtpu: 0.0.40
codegen_flags: <defaults>
</compile_context>

<pallas_src>
import functools

import jax
import jax.numpy as jnp
import numpy as np
from jax import lax
from jax.experimental import pallas as pl
from jax.experimental.pallas import tpu as pltpu

LEAKY_SLOPE = 0.01            # nn.LeakyReLU default
BN_EPS = 1e-5                 # nn.BatchNorm2d default
LANE = 128                    # TPU lane width: keep channels lane-dense
MATMUL_DTYPE = jnp.bfloat16   # MXU input dtype (accumulation stays f32)


def _leaky(x):
    return jnp.where(x > 0, x, LEAKY_SLOPE * x)


def _round_up(x, m):
    return (x + m - 1) // m * m


# ----------------------------- in-kernel helpers -----------------------------
def _conv3x3_accumulate(acc_ref, src_ref, w_ref, H, W, Cp):
    """'same' 3x3 conv of src_ref (H, W, Cp) bf16 with w_ref (3, 3, Cp, Cp) bf16.

    Nine uniform lane-dense (H*W, Cp) x (Cp, Cp) MXU matmuls accumulated into
    the f32 VMEM scratch acc_ref.  The centre tap initialises the accumulator
    (no zero-fill pass); the pad=1 boundary is handled by adding each shifted
    tap only over its valid output window, so no padded scratch is needed.
    """
    src2d = src_ref[...].reshape(H * W, Cp)
    acc_ref[...] = jnp.dot(src2d, w_ref[1, 1],
                           preferred_element_type=jnp.float32).reshape(H, W, Cp)
    for dh in (-1, 0, 1):
        for dw in (-1, 0, 1):
            if dh == 0 and dw == 0:
                continue
            full = jnp.dot(src2d, w_ref[dh + 1, dw + 1],
                           preferred_element_type=jnp.float32).reshape(H, W, Cp)
            oh0, oh1 = max(0, -dh), H - max(0, dh)    # valid output rows
            ow0, ow1 = max(0, -dw), W - max(0, dw)    # valid output cols
            acc_ref[oh0:oh1, ow0:ow1, :] += full[oh0 + dh:oh1 + dh,
                                                 ow0 + dw:ow1 + dw, :]


def _emit_stats(stats_ref, acc):
    """Per-tile channel sum / sum-of-squares from the f32 accumulator."""
    stats_ref[:, 0:1, :] = jnp.sum(acc, axis=(0, 1), keepdims=True)
    stats_ref[:, 1:2, :] = jnp.sum(acc * acc, axis=(0, 1), keepdims=True)


# ---------------------------------- kernels ----------------------------------
def _conv_stats_kernel(x_ref, w_ref, y_ref, stats_ref, acc_ref, *, H, W, Cp):
    """Pass 1: raw conv1 of one batch image + BN1 partial statistics."""
    _conv3x3_accumulate(acc_ref, x_ref, w_ref, H, W, Cp)
    a = acc_ref[...]
    y_ref[...] = a.astype(y_ref.dtype)
    _emit_stats(stats_ref, a)


def _bn_act_conv_stats_kernel(y1_ref, scale_ref, bias_ref, w_ref,
                              y2_ref, stats_ref, src_ref, acc_ref, *, H, W, Cp):
    """Pass 2: BN1 (affine from batch stats) + LeakyReLU in f32, then conv2 +
    BN2 partial statistics."""
    y1 = y1_ref[...].astype(jnp.float32) * scale_ref[...] + bias_ref[...]
    src_ref[...] = _leaky(y1).astype(src_ref.dtype)        # bf16 staging for MXU
    _conv3x3_accumulate(acc_ref, src_ref, w_ref, H, W, Cp)
    a = acc_ref[...]
    y2_ref[...] = a.astype(y2_ref.dtype)
    _emit_stats(stats_ref, a)


def _bn_residual_act_kernel(y2_ref, x_ref, scale_ref, bias_ref, out_ref):
    """Pass 3: BN2 (affine) + residual add + LeakyReLU, all in f32."""
    y2 = y2_ref[...].astype(jnp.float32) * scale_ref[...] + bias_ref[...]
    out_ref[...] = _leaky(y2 + x_ref[...].astype(jnp.float32))


# ---------------------------------- wrapper -----------------------------------
def resblock_forward(x_nchw, params):
    """ResBlock(in_channels, downsample=False) forward.  x_nchw: (N, C, H, W) f32."""
    N, C, H, W = x_nchw.shape
    Cp = _round_up(C, LANE)                     # lane-dense channel dimension

    # Boundary repack (single materialisation): NCHW f32 -> NHWC, channel pad, bf16.
    x = jnp.transpose(x_nchw, (0, 2, 3, 1))
    x = jnp.pad(x, ((0, 0), (0, 0), (0, 0), (0, Cp - C))).astype(MATMUL_DTYPE)

    def pad_w(w):      # HWIO (3,3,C,C) -> (3,3,Cp,Cp) bf16 (zero-padded channels)
        return jnp.pad(w, ((0, 0), (0, 0), (0, Cp - C), (0, Cp - C))).astype(MATMUL_DTYPE)

    def pad_vec(v):    # (1,C)/(C,) -> (1,Cp) f32; padded gammas are 0 -> dead channels stay 0
        return jnp.pad(jnp.reshape(v, (1, C)), ((0, 0), (0, Cp - C))).astype(jnp.float32)

    w1, w2 = pad_w(params["w1"]), pad_w(params["w2"])
    g1, b1 = pad_vec(params["g1"]), pad_vec(params["b1"])
    g2, b2 = pad_vec(params["g2"]), pad_vec(params["b2"])

    img_spec = pl.BlockSpec((None, H, W, Cp), lambda n: (n, 0, 0, 0))
    w_spec = pl.BlockSpec((3, 3, Cp, Cp), lambda n: (0, 0, 0, 0))
    vec_spec = pl.BlockSpec((1, Cp), lambda n: (0, 0))
    stats_spec = pl.BlockSpec((1, 2, Cp), lambda n: (n, 0, 0))

    cparams = pltpu.CompilerParams(
        dimension_semantics=("parallel",),        # batch axis shards across v7x's 2 TCs
        vmem_limit_bytes=48 * 1024 * 1024)        # explicit, headroom under v7x's 64 MiB

    conv_cost = pl.CostEstimate(
        flops=2 * 9 * N * H * W * Cp * Cp,
        transcendentals=0,
        bytes_accessed=2 * N * H * W * Cp * 2 + 9 * Cp * Cp * 2 + N * 2 * Cp * 4)
    ew_cost = pl.CostEstimate(
        flops=6 * N * H * W * Cp,
        transcendentals=0,
        bytes_accessed=N * H * W * Cp * (2 + 2 + 4))

    # ---- pass 1: conv1 + BN1 partial stats ---------------------------------
    y1_raw, stats1 = pl.pallas_call(
        functools.partial(_conv_stats_kernel, H=H, W=W, Cp=Cp),
        grid=(N,),
        in_specs=[img_spec, w_spec],
        out_specs=[img_spec, stats_spec],
        out_shape=[jax.ShapeDtypeStruct((N, H, W, Cp), MATMUL_DTYPE),
                   jax.ShapeDtypeStruct((N, 2, Cp), jnp.float32)],
        scratch_shapes=[pltpu.VMEM((H, W, Cp), jnp.float32)],
        compiler_params=cparams,
        cost_estimate=conv_cost,
    )(x, w1)

    cnt = float(N * H * W)

    def bn_affine(stats, g, b):
        # Fold training-mode BatchNorm (biased batch statistics) into scale/bias.
        s = jnp.sum(stats[:, 0, :], axis=0)
        s2 = jnp.sum(stats[:, 1, :], axis=0)
        mean = s / cnt
        var = s2 / cnt - mean * mean
        scale = g[0] * lax.rsqrt(var + BN_EPS)
        bias = b[0] - mean * scale
        return scale.reshape(1, Cp), bias.reshape(1, Cp)

    scale1, bias1 = bn_affine(stats1, g1, b1)

    # ---- pass 2: BN1 + LeakyReLU + conv2 + BN2 partial stats ----------------
    y2_raw, stats2 = pl.pallas_call(
        functools.partial(_bn_act_conv_stats_kernel, H=H, W=W, Cp=Cp),
        grid=(N,),
        in_specs=[img_spec, vec_spec, vec_spec, w_spec],
        out_specs=[img_spec, stats_spec],
        out_shape=[jax.ShapeDtypeStruct((N, H, W, Cp), MATMUL_DTYPE),
                   jax.ShapeDtypeStruct((N, 2, Cp), jnp.float32)],
        scratch_shapes=[pltpu.VMEM((H, W, Cp), MATMUL_DTYPE),
                        pltpu.VMEM((H, W, Cp), jnp.float32)],
        compiler_params=cparams,
        cost_estimate=conv_cost,
    )(y1_raw, scale1, bias1, w2)

    scale2, bias2 = bn_affine(stats2, g2, b2)

    # ---- pass 3: BN2 + residual + LeakyReLU ---------------------------------
    out = pl.pallas_call(
        _bn_residual_act_kernel,
        grid=(N,),
        in_specs=[img_spec, img_spec, vec_spec, vec_spec],
        out_specs=img_spec,
        out_shape=jax.ShapeDtypeStruct((N, H, W, Cp), jnp.float32),
        compiler_params=cparams,
        cost_estimate=ew_cost,
    )(y2_raw, x, scale2, bias2)

    return jnp.transpose(out[..., :C], (0, 3, 1, 2))      # NHWC -> NCHW, drop pad


# ----------------- pure-JAX reference (for correctness check) -----------------
def resblock_ref(x_nchw, params, matmul_dtype=jnp.float32):
    """Reference forward.  matmul_dtype=bf16 mirrors the kernel's MXU precision;
    matmul_dtype=f32 is the exact PyTorch-equivalent forward."""
    f32 = jnp.float32
    x = jnp.transpose(x_nchw, (0, 2, 3, 1))
    xm = x.astype(matmul_dtype)

    def conv(inp, w):
        return lax.conv_general_dilated(
            inp.astype(matmul_dtype), w.astype(matmul_dtype),
            window_strides=(1, 1), padding=((1, 1), (1, 1)),
            dimension_numbers=("NHWC", "HWIO", "NHWC"),
            preferred_element_type=f32)

    def bn(raw, g, b):
        mean = raw.mean(axis=(0, 1, 2))
        var = ((raw - mean) ** 2).mean(axis=(0, 1, 2))      # biased (training-mode)
        xr = raw.astype(matmul_dtype).astype(f32)           # kernel stores raw conv as bf16
        return (xr - mean) * lax.rsqrt(var + BN_EPS) * jnp.reshape(g, -1) \
            + jnp.reshape(b, -1)

    y1 = _leaky(bn(conv(xm, params["w1"]), params["g1"], params["b1"]))
    y2 = bn(conv(y1, params["w2"]), params["g2"], params["b2"])
    out = _leaky(y2 + xm.astype(f32))
    return jnp.transpose(out, (0, 3, 1, 2))


if __name__ == "__main__":
    N, C, H, W = 2, 4, 16, 16
    key = jax.random.PRNGKey(0)
    ks = jax.random.split(key, 7)
    params = {
        "w1": 0.1 * jax.random.normal(ks[0], (3, 3, C, C), jnp.float32),   # HWIO
        "g1": 1.0 + 0.1 * jax.random.normal(ks[1], (1, C), jnp.float32),
        "b1": 0.1 * jax.random.normal(ks[2], (1, C), jnp.float32),
        "w2": 0.1 * jax.random.normal(ks[3], (3, 3, C, C), jnp.float32),
        "g2": 1.0 + 0.1 * jax.random.normal(ks[4], (1, C), jnp.float32),
        "b2": 0.1 * jax.random.normal(ks[5], (1, C), jnp.float32),
    }
    x = jax.random.normal(ks[6], (N, C, H, W), jnp.float32)

    out = resblock_forward(x, params)
    jax.block_until_ready(out)
    assert out.shape == (N, C, H, W)

    # Strict check against a reference with matching precision (bf16 MXU inputs,
    # f32 accumulation) — validates the kernel itself.
    ref_mixed = resblock_ref(x, params, matmul_dtype=jnp.bfloat16)
    np.testing.assert_allclose(np.asarray(out), np.asarray(ref_mixed),
                               rtol=2e-2, atol=3e-2)

    # Sanity check against the full-f32 PyTorch-equivalent forward (looser
    # tolerance accounts for bf16 MXU inputs recommended by the perf review).
    ref_f32 = resblock_ref(x, params, matmul_dtype=jnp.float32)
    np.testing.assert_allclose(np.asarray(out), np.asarray(ref_f32),
                               rtol=5e-2, atol=1e-1)

    print("KERNEL_OK")
</pallas_src>

<mosaic_0001>
module attributes {stable_mosaic.version = 11 : i64} {
  func.func @_conv_stats_kernel(%arg0: i32, %arg1: memref<1x16x16x128xbf16, #tpu.memory_space<vmem>>, %arg2: memref<3x3x128x128xbf16, #tpu.memory_space<vmem>>, %arg3: memref<1x16x16x128xbf16, #tpu.memory_space<vmem>>, %arg4: memref<1x2x128xf32, #tpu.memory_space<vmem>>, %arg5: memref<16x16x128xf32, #tpu.memory_space<vmem>>) attributes {dimension_semantics = [#tpu.dimension_semantics<parallel>], iteration_bounds = array<i64: 2>, scalar_prefetch = 0 : i64, scratch_operands = 1 : i64, tpu.core_type = #tpu.core_type<tc>, window_params = [{transform_indices = @transform_0, window_bounds = array<i64: 1, 16, 16, 128>}, {pipeline_mode = #tpu.pipeline_mode<synchronous>, transform_indices = @transform_1, window_bounds = array<i64: 3, 3, 128, 128>}, {transform_indices = @transform_2, window_bounds = array<i64: 1, 16, 16, 128>}, {transform_indices = @transform_3, window_bounds = array<i64: 1, 2, 128>}]} {
    %c0 = arith.constant 0 : index
    %c0_0 = arith.constant 0 : index
    %c0_1 = arith.constant 0 : index
    %c0_2 = arith.constant 0 : index
    %0 = vector.load %arg1[%c0, %c0_0, %c0_1, %c0_2] : memref<1x16x16x128xbf16, #tpu.memory_space<vmem>>, vector<1x16x16x128xbf16>
    %1 = vector.shape_cast %0 : vector<1x16x16x128xbf16> to vector<16x16x128xbf16>
    %2 = vector.shape_cast %1 : vector<16x16x128xbf16> to vector<256x128xbf16>
    %c1 = arith.constant 1 : index
    %c1_3 = arith.constant 1 : index
    %c0_4 = arith.constant 0 : index
    %c0_5 = arith.constant 0 : index
    %3 = vector.load %arg2[%c1, %c1_3, %c0_4, %c0_5] : memref<3x3x128x128xbf16, #tpu.memory_space<vmem>>, vector<1x1x128x128xbf16>
    %4 = vector.shape_cast %3 : vector<1x1x128x128xbf16> to vector<128x128xbf16>
    %cst = arith.constant dense<0.000000e+00> : vector<256x128xf32>
    %5 = tpu.matmul %2, %4, %cst {dimension_numbers = #tpu.dot_dimension_numbers<[1], [0], [0], [1], [0, 0, 1, 1], [], []>} : vector<256x128xbf16>, vector<128x128xbf16>, vector<256x128xf32> -> vector<256x128xf32>
    %6 = vector.shape_cast %5 : vector<256x128xf32> to vector<16x16x128xf32>
    %c0_6 = arith.constant 0 : index
    %c0_7 = arith.constant 0 : index
    %c0_8 = arith.constant 0 : index
    %7 = vector.load %arg5[%c0_6, %c0_7, %c0_8] : memref<16x16x128xf32, #tpu.memory_space<vmem>>, vector<16x16x128xf32>
    tpu.vector_store %arg5[%c0_6, %c0_7, %c0_8], %6 {strides = array<i32>} : memref<16x16x128xf32, #tpu.memory_space<vmem>>, vector<16x16x128xf32>,
    %c0_9 = arith.constant 0 : index
    %c0_10 = arith.constant 0 : index
    %c0_11 = arith.constant 0 : index
    %c0_12 = arith.constant 0 : index
    %8 = vector.load %arg2[%c0_9, %c0_10, %c0_11, %c0_12] : memref<3x3x128x128xbf16, #tpu.memory_space<vmem>>, vector<1x1x128x128xbf16>
    %9 = vector.shape_cast %8 : vector<1x1x128x128xbf16> to vector<128x128xbf16>
    %cst_13 = arith.constant dense<0.000000e+00> : vector<256x128xf32>
    %10 = tpu.matmul %2, %9, %cst_13 {dimension_numbers = #tpu.dot_dimension_numbers<[1], [0], [0], [1], [0, 0, 1, 1], [], []>} : vector<256x128xbf16>, vector<128x128xbf16>, vector<256x128xf32> -> vector<256x128xf32>
    %11 = vector.shape_cast %10 : vector<256x128xf32> to vector<16x16x128xf32>
    %c1_14 = arith.constant 1 : index
    %c1_15 = arith.constant 1 : index
    %c0_16 = arith.constant 0 : index
    %12 = vector.load %arg5[%c1_14, %c1_15, %c0_16] : memref<16x16x128xf32, #tpu.memory_space<vmem>>, vector<15x15x128xf32>
    %13 = vector.extract_strided_slice %11 {offsets = [0, 0, 0], sizes = [15, 15, 128], strides = [1, 1, 1]} : vector<16x16x128xf32> to vector<15x15x128xf32>
    %14 = arith.addf %12, %13 : vector<15x15x128xf32>
    %c1_17 = arith.constant 1 : index
    %c1_18 = arith.constant 1 : index
    %c0_19 = arith.constant 0 : index
    %15 = vector.load %arg5[%c1_17, %c1_18, %c0_19] : memref<16x16x128xf32, #tpu.memory_space<vmem>>, vector<15x15x128xf32>
    tpu.vector_store %arg5[%c1_17, %c1_18, %c0_19], %14 {strides = array<i32>} : memref<16x16x128xf32, #tpu.memory_space<vmem>>, vector<15x15x128xf32>,
    %c0_20 = arith.constant 0 : index
    %c1_21 = arith.constant 1 : index
    %c0_22 = arith.constant 0 : index
    %c0_23 = arith.constant 0 : index
    %16 = vector.load %arg2[%c0_20, %c1_21, %c0_22, %c0_23] : memref<3x3x128x128xbf16, #tpu.memory_space<vmem>>, vector<1x1x128x128xbf16>
    %17 = vector.shape_cast %16 : vector<1x1x128x128xbf16> to vector<128x128xbf16>
    %cst_24 = arith.constant dense<0.000000e+00> : vector<256x128xf32>
    %18 = tpu.matmul %2, %17, %cst_24 {dimension_numbers = #tpu.dot_dimension_numbers<[1], [0], [0], [1], [0, 0, 1, 1], [], []>} : vector<256x128xbf16>, vector<128x128xbf16>, vector<256x128xf32> -> vector<256x128xf32>
    %19 = vector.shape_cast %18 : vector<256x128xf32> to vector<16x16x128xf32>
    %c1_25 = arith.constant 1 : index
    %c0_26 = arith.constant 0 : index
    %c0_27 = arith.constant 0 : index
    %20 = vector.load %arg5[%c1_25, %c0_26, %c0_27] : memref<16x16x128xf32, #tpu.memory_space<vmem>>, vector<15x16x128xf32>
    %21 = vector.extract_strided_slice %19 {offsets = [0, 0, 0], sizes = [15, 16, 128], strides = [1, 1, 1]} : vector<16x16x128xf32> to vector<15x16x128xf32>
    %22 = arith.addf %20, %21 : vector<15x16x128xf32>
    %c1_28 = arith.constant 1 : index
    %c0_29 = arith.constant 0 : index
    %c0_30 = arith.constant 0 : index
    %23 = vector.load %arg5[%c1_28, %c0_29, %c0_30] : memref<16x16x128xf32, #tpu.memory_space<vmem>>, vector<15x16x128xf32>
    tpu.vector_store %arg5[%c1_28, %c0_29, %c0_30], %22 {strides = array<i32>} : memref<16x16x128xf32, #tpu.memory_space<vmem>>, vector<15x16x128xf32>,
    %c0_31 = arith.constant 0 : index
    %c2 = arith.constant 2 : index
    %c0_32 = arith.constant 0 : index
    %c0_33 = arith.constant 0 : index
    %24 = vector.load %arg2[%c0_31, %c2, %c0_32, %c0_33] : memref<3x3x128x128xbf16, #tpu.memory_space<vmem>>, vector<1x1x128x128xbf16>
    %25 = vector.shape_cast %24 : vector<1x1x128x128xbf16> to vector<128x128xbf16>
    %cst_34 = arith.constant dense<0.000000e+00> : vector<256x128xf32>
    %26 = tpu.matmul %2, %25, %cst_34 {dimension_numbers = #tpu.dot_dimension_numbers<[1], [0], [0], [1], [0, 0, 1, 1], [], []>} : vector<256x128xbf16>, vector<128x128xbf16>, vector<256x128xf32> -> vector<256x128xf32>
    %27 = vector.shape_cast %26 : vector<256x128xf32> to vector<16x16x128xf32>
    %c1_35 = arith.constant 1 : index
    %c0_36 = arith.constant 0 : index
    %c0_37 = arith.constant 0 : index
    %28 = vector.load %arg5[%c1_35, %c0_36, %c0_37] : memref<16x16x128xf32, #tpu.memory_space<vmem>>, vector<15x15x128xf32>
    %29 = vector.extract_strided_slice %27 {offsets = [0, 1, 0], sizes = [15, 15, 128], strides = [1, 1, 1]} : vector<16x16x128xf32> to vector<15x15x128xf32>
    %30 = arith.addf %28, %29 : vector<15x15x128xf32>
    %c1_38 = arith.constant 1 : index
    %c0_39 = arith.constant 0 : index
    %c0_40 = arith.constant 0 : index
    %31 = vector.load %arg5[%c1_38, %c0_39, %c0_40] : memref<16x16x128xf32, #tpu.memory_space<vmem>>, vector<15x15x128xf32>
    tpu.vector_store %arg5[%c1_38, %c0_39, %c0_40], %30 {strides = array<i32>} : memref<16x16x128xf32, #tpu.memory_space<vmem>>, vector<15x15x128xf32>,
    %c1_41 = arith.constant 1 : index
    %c0_42 = arith.constant 0 : index
    %c0_43 = arith.constant 0 : index
    %c0_44 = arith.constant 0 : index
    %32 = vector.load %arg2[%c1_41, %c0_42, %c0_43, %c0_44] : memref<3x3x128x128xbf16, #tpu.memory_space<vmem>>, vector<1x1x128x128xbf16>
    %33 = vector.shape_cast %32 : vector<1x1x128x128xbf16> to vector<128x128xbf16>
    %cst_45 = arith.constant dense<0.000000e+00> : vector<256x128xf32>
    %34 = tpu.matmul %2, %33, %cst_45 {dimension_numbers = #tpu.dot_dimension_numbers<[1], [0], [0], [1], [0, 0, 1, 1], [], []>} : vector<256x128xbf16>, vector<128x128xbf16>, vector<256x128xf32> -> vector<256x128xf32>
    %35 = vector.shape_cast %34 : vector<256x128xf32> to vector<16x16x128xf32>
    %c0_46 = arith.constant 0 : index
    %c1_47 = arith.constant 1 : index
    %c0_48 = arith.constant 0 : index
    %36 = vector.load %arg5[%c0_46, %c1_47, %c0_48] : memref<16x16x128xf32, #tpu.memory_space<vmem>>, vector<16x15x128xf32>
    %37 = vector.extract_strided_slice %35 {offsets = [0, 0, 0], sizes = [16, 15, 128], strides = [1, 1, 1]} : vector<16x16x128xf32> to vector<16x15x128xf32>
    %38 = arith.addf %36, %37 : vector<16x15x128xf32>
    %c0_49 = arith.constant 0 : index
    %c1_50 = arith.constant 1 : index
    %c0_51 = arith.constant 0 : index
    %39 = vector.load %arg5[%c0_49, %c1_50, %c0_51] : memref<16x16x128xf32, #tpu.memory_space<vmem>>, vector<16x15x128xf32>
    tpu.vector_store %arg5[%c0_49, %c1_50, %c0_51], %38 {strides = array<i32>} : memref<16x16x128xf32, #tpu.memory_space<vmem>>, vector<16x15x128xf32>,
    %c1_52 = arith.constant 1 : index
    %c2_53 = arith.constant 2 : index
    %c0_54 = arith.constant 0 : index
    %c0_55 = arith.constant 0 : index
    %40 = vector.load %arg2[%c1_52, %c2_53, %c0_54, %c0_55] : memref<3x3x128x128xbf16, #tpu.memory_space<vmem>>, vector<1x1x128x128xbf16>
    %41 = vector.shape_cast %40 : vector<1x1x128x128xbf16> to vector<128x128xbf16>
    %cst_56 = arith.constant dense<0.000000e+00> : vector<256x128xf32>
    %42 = tpu.matmul %2, %41, %cst_56 {dimension_numbers = #tpu.dot_dimension_numbers<[1], [0], [0], [1], [0, 0, 1, 1], [], []>} : vector<256x128xbf16>, vector<128x128xbf16>, vector<256x128xf32> -> vector<256x128xf32>
    %43 = vector.shape_cast %42 : vector<256x128xf32> to vector<16x16x128xf32>
    %c0_57 = arith.constant 0 : index
    %c0_58 = arith.constant 0 : index
    %c0_59 = arith.constant 0 : index
    %44 = vector.load %arg5[%c0_57, %c0_58, %c0_59] : memref<16x16x128xf32, #tpu.memory_space<vmem>>, vector<16x15x128xf32>
    %45 = vector.extract_strided_slice %43 {offsets = [0, 1, 0], sizes = [16, 15, 128], strides = [1, 1, 1]} : vector<16x16x128xf32> to vector<16x15x128xf32>
    %46 = arith.addf %44, %45 : vector<16x15x128xf32>
    %c0_60 = arith.constant 0 : index
    %c0_61 = arith.constant 0 : index
    %c0_62 = arith.constant 0 : index
    %47 = vector.load %arg5[%c0_60, %c0_61, %c0_62] : memref<16x16x128xf32, #tpu.memory_space<vmem>>, vector<16x15x128xf32>
    tpu.vector_store %arg5[%c0_60, %c0_61, %c0_62], %46 {strides = array<i32>} : memref<16x16x128xf32, #tpu.memory_space<vmem>>, vector<16x15x128xf32>,
    %c2_63 = arith.constant 2 : index
    %c0_64 = arith.constant 0 : index
    %c0_65 = arith.constant 0 : index
    %c0_66 = arith.constant 0 : index
    %48 = vector.load %arg2[%c2_63, %c0_64, %c0_65, %c0_66] : memref<3x3x128x128xbf16, #tpu.memory_space<vmem>>, vector<1x1x128x128xbf16>
    %49 = vector.shape_cast %48 : vector<1x1x128x128xbf16> to vector<128x128xbf16>
    %cst_67 = arith.constant dense<0.000000e+00> : vector<256x128xf32>
    %50 = tpu.matmul %2, %49, %cst_67 {dimension_numbers = #tpu.dot_dimension_numbers<[1], [0], [0], [1], [0, 0, 1, 1], [], []>} : vector<256x128xbf16>, vector<128x128xbf16>, vector<256x128xf32> -> vector<256x128xf32>
    %51 = vector.shape_cast %50 : vector<256x128xf32> to vector<16x16x128xf32>
    %c0_68 = arith.constant 0 : index
    %c1_69 = arith.constant 1 : index
    %c0_70 = arith.constant 0 : index
    %52 = vector.load %arg5[%c0_68, %c1_69, %c0_70] : memref<16x16x128xf32, #tpu.memory_space<vmem>>, vector<15x15x128xf32>
    %53 = vector.extract_strided_slice %51 {offsets = [1, 0, 0], sizes = [15, 15, 128], strides = [1, 1, 1]} : vector<16x16x128xf32> to vector<15x15x128xf32>
    %54 = arith.addf %52, %53 : vector<15x15x128xf32>
    %c0_71 = arith.constant 0 : index
    %c1_72 = arith.constant 1 : index
    %c0_73 = arith.constant 0 : index
    %55 = vector.load %arg5[%c0_71, %c1_72, %c0_73] : memref<16x16x128xf32, #tpu.memory_space<vmem>>, vector<15x15x128xf32>
    tpu.vector_store %arg5[%c0_71, %c1_72, %c0_73], %54 {strides = array<i32>} : memref<16x16x128xf32, #tpu.memory_space<vmem>>, vector<15x15x128xf32>,
    %c2_74 = arith.constant 2 : index
    %c1_75 = arith.constant 1 : index
    %c0_76 = arith.constant 0 : index
    %c0_77 = arith.constant 0 : index
    %56 = vector.load %arg2[%c2_74, %c1_75, %c0_76, %c0_77] : memref<3x3x128x128xbf16, #tpu.memory_space<vmem>>, vector<1x1x128x128xbf16>
    %57 = vector.shape_cast %56 : vector<1x1x128x128xbf16> to vector<128x128xbf16>
    %cst_78 = arith.constant dense<0.000000e+00> : vector<256x128xf32>
    %58 = tpu.matmul %2, %57, %cst_78 {dimension_numbers = #tpu.dot_dimension_numbers<[1], [0], [0], [1], [0, 0, 1, 1], [], []>} : vector<256x128xbf16>, vector<128x128xbf16>, vector<256x128xf32> -> vector<256x128xf32>
    %59 = vector.shape_cast %58 : vector<256x128xf32> to vector<16x16x128xf32>
    %c0_79 = arith.constant 0 : index
    %c0_80 = arith.constant 0 : index
    %c0_81 = arith.constant 0 : index
    %60 = vector.load %arg5[%c0_79, %c0_80, %c0_81] : memref<16x16x128xf32, #tpu.memory_space<vmem>>, vector<15x16x128xf32>
    %61 = vector.extract_strided_slice %59 {offsets = [1, 0, 0], sizes = [15, 16, 128], strides = [1, 1, 1]} : vector<16x16x128xf32> to vector<15x16x128xf32>
    %62 = arith.addf %60, %61 : vector<15x16x128xf32>
    %c0_82 = arith.constant 0 : index
    %c0_83 = arith.constant 0 : index
    %c0_84 = arith.constant 0 : index
    %63 = vector.load %arg5[%c0_82, %c0_83, %c0_84] : memref<16x16x128xf32, #tpu.memory_space<vmem>>, vector<15x16x128xf32>
    tpu.vector_store %arg5[%c0_82, %c0_83, %c0_84], %62 {strides = array<i32>} : memref<16x16x128xf32, #tpu.memory_space<vmem>>, vector<15x16x128xf32>,
    %c2_85 = arith.constant 2 : index
    %c2_86 = arith.constant 2 : index
    %c0_87 = arith.constant 0 : index
    %c0_88 = arith.constant 0 : index
    %64 = vector.load %arg2[%c2_85, %c2_86, %c0_87, %c0_88] : memref<3x3x128x128xbf16, #tpu.memory_space<vmem>>, vector<1x1x128x128xbf16>
    %65 = vector.shape_cast %64 : vector<1x1x128x128xbf16> to vector<128x128xbf16>
    %cst_89 = arith.constant dense<0.000000e+00> : vector<256x128xf32>
    %66 = tpu.matmul %2, %65, %cst_89 {dimension_numbers = #tpu.dot_dimension_numbers<[1], [0], [0], [1], [0, 0, 1, 1], [], []>} : vector<256x128xbf16>, vector<128x128xbf16>, vector<256x128xf32> -> vector<256x128xf32>
    %67 = vector.shape_cast %66 : vector<256x128xf32> to vector<16x16x128xf32>
    %c0_90 = arith.constant 0 : index
    %c0_91 = arith.constant 0 : index
    %c0_92 = arith.constant 0 : index
    %68 = vector.load %arg5[%c0_90, %c0_91, %c0_92] : memref<16x16x128xf32, #tpu.memory_space<vmem>>, vector<15x15x128xf32>
    %69 = vector.extract_strided_slice %67 {offsets = [1, 1, 0], sizes = [15, 15, 128], strides = [1, 1, 1]} : vector<16x16x128xf32> to vector<15x15x128xf32>
    %70 = arith.addf %68, %69 : vector<15x15x128xf32>
    %c0_93 = arith.constant 0 : index
    %c0_94 = arith.constant 0 : index
    %c0_95 = arith.constant 0 : index
    %71 = vector.load %arg5[%c0_93, %c0_94, %c0_95] : memref<16x16x128xf32, #tpu.memory_space<vmem>>, vector<15x15x128xf32>
    tpu.vector_store %arg5[%c0_93, %c0_94, %c0_95], %70 {strides = array<i32>} : memref<16x16x128xf32, #tpu.memory_space<vmem>>, vector<15x15x128xf32>,
    %c0_96 = arith.constant 0 : index
    %c0_97 = arith.constant 0 : index
    %c0_98 = arith.constant 0 : index
    %72 = vector.load %arg5[%c0_96, %c0_97, %c0_98] : memref<16x16x128xf32, #tpu.memory_space<vmem>>, vector<16x16x128xf32>
    %73 = arith.truncf %72 : vector<16x16x128xf32> to vector<16x16x128xbf16>
    %c0_99 = arith.constant 0 : index
    %c0_100 = arith.constant 0 : index
    %c0_101 = arith.constant 0 : index
    %c0_102 = arith.constant 0 : index
    %74 = vector.load %arg3[%c0_99, %c0_100, %c0_101, %c0_102] : memref<1x16x16x128xbf16, #tpu.memory_space<vmem>>, vector<1x16x16x128xbf16>
    %75 = vector.shape_cast %74 : vector<1x16x16x128xbf16> to vector<16x16x128xbf16>
    %76 = vector.shape_cast %73 : vector<16x16x128xbf16> to vector<1x16x16x128xbf16>
    tpu.vector_store %arg3[%c0_99, %c0_100, %c0_101, %c0_102], %76 {strides = array<i32>} : memref<1x16x16x128xbf16, #tpu.memory_space<vmem>>, vector<1x16x16x128xbf16>,
    %cst_103 = arith.constant dense<0.000000e+00> : vector<128xf32>
    %77 = vector.multi_reduction <add>, %72, %cst_103 [0, 1] : vector<16x16x128xf32> to vector<128xf32>
    %78 = vector.shape_cast %77 : vector<128xf32> to vector<1x1x128xf32>
    %c0_104 = arith.constant 0 : index
    %c0_105 = arith.constant 0 : index
    %c0_106 = arith.constant 0 : index
    %79 = vector.load %arg4[%c0_104, %c0_105, %c0_106] : memref<1x2x128xf32, #tpu.memory_space<vmem>>, vector<1x1x128xf32>
    tpu.vector_store %arg4[%c0_104, %c0_105, %c0_106], %78 {strides = array<i32>} : memref<1x2x128xf32, #tpu.memory_space<vmem>>, vector<1x1x128xf32>,
    %80 = arith.mulf %72, %72 : vector<16x16x128xf32>
    %cst_107 = arith.constant dense<0.000000e+00> : vector<128xf32>
    %81 = vector.multi_reduction <add>, %80, %cst_107 [0, 1] : vector<16x16x128xf32> to vector<128xf32>
    %82 = vector.shape_cast %81 : vector<128xf32> to vector<1x1x128xf32>
    %c0_108 = arith.constant 0 : index
    %c1_109 = arith.constant 1 : index
    %c0_110 = arith.constant 0 : index
    %83 = vector.load %arg4[%c0_108, %c1_109, %c0_110] : memref<1x2x128xf32, #tpu.memory_space<vmem>>, vector<1x1x128xf32>
    tpu.vector_store %arg4[%c0_108, %c1_109, %c0_110], %82 {strides = array<i32>} : memref<1x2x128xf32, #tpu.memory_space<vmem>>, vector<1x1x128xf32>,
    return
  }
  func.func @transform_0(%arg0: i32) -> (i32, i32, i32, i32) {
    %c0_i32 = arith.constant 0 : i32
    %c0_i32_0 = arith.constant 0 : i32
    %c0_i32_1 = arith.constant 0 : i32
    %c0_i32_2 = arith.constant 0 : i32
    return %arg0, %c0_i32, %c0_i32_0, %c0_i32_1 : i32, i32, i32, i32
  }
  func.func @transform_1(%arg0: i32) -> (i32, i32, i32, i32) {
    %c0_i32 = arith.constant 0 : i32
    %c0_i32_0 = arith.constant 0 : i32
    %c0_i32_1 = arith.constant 0 : i32
    %c0_i32_2 = arith.constant 0 : i32
    %c0_i32_3 = arith.constant 0 : i32
    return %c0_i32, %c0_i32_0, %c0_i32_1, %c0_i32_2 : i32, i32, i32, i32
  }
  func.func @transform_2(%arg0: i32) -> (i32, i32, i32, i32) {
    %c0_i32 = arith.constant 0 : i32
    %c0_i32_0 = arith.constant 0 : i32
    %c0_i32_1 = arith.constant 0 : i32
    %c0_i32_2 = arith.constant 0 : i32
    return %arg0, %c0_i32, %c0_i32_0, %c0_i32_1 : i32, i32, i32, i32
  }
  func.func @transform_3(%arg0: i32) -> (i32, i32, i32) {
    %c0_i32 = arith.constant 0 : i32
    %c0_i32_0 = arith.constant 0 : i32
    %c0_i32_1 = arith.constant 0 : i32
    return %arg0, %c0_i32, %c0_i32_0 : i32, i32, i32
  }
}

</mosaic_0001>

<bundles_post_ra>
// kernel: tpu_custom_call.1
= control target key start
LH: loop header
LB: loop body
LE: loop exit
PB: predicated region body
PF: predicated region fallthrough
CT: control target
= control target key end

     0   :  { %9 = vsyncpa [#allocation4], 0  ;;  %s5914_s0 = inlined_call_operand.hbm [shape: bf16[2,16,16,128], index: 0, kind: input, shape index: {}]   ;;  %s5915_s1 = inlined_call_operand.hbm [shape: bf16[3,3,128,128], index: 1, kind: input, shape index: {}]   ;;  %s5916_s2 = inlined_call_operand.hbm [shape: bf16[2,16,16,128], index: 2, kind: output, shape index: {0}]   ;;  %s5917_s3 = inlined_call_operand.hbm [shape: f32[2,2,128], index: 3, kind: output, shape index: {1}]  }
   0x1   :  { %11 = vsyncpa [#allocation4 + $0x1], 0 }
   0x2   :  { %12 = vsyncpa [#allocation7], 0 }
   0x3   :  { %13 = vsyncpa [#allocation5], 0 }
   0x4   :  { %15 = vsyncpa [#allocation5 + $0x1], 0 }
   0x5   :  { %16 = vsyncpa [#allocation10], 0 }
   0x6   :  { %18 = vsyncpa [#allocation10 + $0x1], 0  ;;  %s5185_s12 = smov 0   ;;  %s5187_s13 = smov 0  }
   0x7   :  { %s5189_s14 = smov 0   ;;  %s5191_s15 = smov 0  }
   0x8 LB: > { %s5206_s16 = sadd.s32 4294967295, %s5155_s15   ;;  %s3900_s17 = sadd.s32 4294967294, %s5155_s15   ;;  %s5155_s15 = sphi %s5191_s15, %s5937_s15   ;;  %s5151_s14 = sphi %s5189_s14, %s5936_s14   ;;  %s5147_s13 = sphi %s5187_s13, %s5935_s13   ;;  %s5143_s12 = sphi %s5185_s12, %s5934_s12  }
   0x9   : > { %p44_p0 = scmp.ne.s32.totalorder %s5147_s13, %s5143_s12  ;;  %p5918_p1 = scmp.eq.s32.totalorder %s5206_s16, 0 }
   0xa   : > { %p95_p3 = scmp.eq.s32.totalorder %s3900_s17, 1  ;;  %p3901_p5 = scmp.ge.s32.totalorder %s5155_s15, 1 }
   0xb   : > { %p5215_p4 = por %p5918_p1, %p44_p0  ;;  %p128_p7 = scmp.lt.s32.totalorder %s5155_s15, 3 }
   0xc   : > { %p5220_p6 = por %p95_p3, %p44_p0  ;;  %s5157_s21 = smov [#allocation6]  }
   0xd   : > { %s5921_s18 = scalar_select %p5215_p4, 1, 0 }
   0xe   : > { %s5922_s19 = scalar_select %p5220_p6, 1, 0 }
   0xf   : > { %p5225_p8 = pnand %p3901_p5, %p128_p7  ;;  %s140_s22 = sshll.u32 %s5157_s21, 4  ;;  %s5229_s22 = int_to_ptr.vmem [resolvable:$true] %s140_s22 }
  0x10   : > { %s5241_s24 = sadd.s32 1, %s5155_s15   ;;  %s31_s25 = sadd.s32 1, %s5151_s14 }
  0x11   : > { %s5923_s20 = scalar_select %p5225_p8, 1, 0 }
  0x12   : > { %p4842_p9 = pneg %p5225_p8  ;;  %s28_s26 = ssub.s32 %s5155_s15, %s5241_s24 }
  0x13   : > { %s4995_s29 = scalar_lea.hbm %s5915_s1, 9216 }
  0x14   : > { %p5236_p11 = pnand %p4842_p9, %p5918_p1  ;;  %p4996_p12 = scmp.ne.s32.totalorder %s5915_s1, %s4995_s29 }
  0x15   : > { %p5002_p5 = scmp.lt.u32.totalorder %s4995_s29, %s5915_s1 }
  0x16   : > { %p4997_p13 = pneg %p5236_p11 }
  0x18   : > { %p4998_p0 = pnand %p4997_p13, %p4996_p12 }
  0x1a   : > { %p4999_p3 = pneg %p4998_p0 }
  0x1c   : > { %p5004_p7 = pnand %p5002_p5, %p4999_p3 }
  0x1e   : > { %5007 = shalt.err (!%p5004_p7)
}
  0x1f   : > { %s5008_s7 = scalar_lea.vmem %s5229_s22, 9216  ;;  %p5016_p2 = scmp.lt.s32.totalorder %s5229_s22, %s5229_s22 }
  0x20   : > { %p5009_p9 = scmp.ne.s32.totalorder %s5229_s22, %s5008_s7  ;;  %p5017_p6 = scmp.lt.s32.totalorder %s5008_s7, %s5008_s7 }
  0x22   : > { %p5011_p10 = pnand %p5009_p9, %p4997_p13  ;;  %p5018_p4 = por %p5017_p6, %p5016_p2 }
  0x24   : > { %p5012_p1 = pneg %p5011_p10 }
  0x26   : > { %p5019_p8 = pnand %p5018_p4, %p5012_p1 }
  0x28   : > { %5022 = shalt.err (!%p5019_p8)
}
  0x29   : > { %s5158_s8 = smov 64   ;;  %s5159_s9 = smov 4  }
  0x2a   : > { %4845 = dma.hbm_to_vmem [thread:$0]  (!%p5236_p11), %s5915_s1, 9216, %s5229_s22, [#allocation7], %s5158_s8, %s5158_s8, %s5159_s9  }
  0x2b   : > { %p29_p1 = scmp.eq.s32.totalorder %s28_s26, 0  ;;  %p38_p2 = scmp.ne.s32.totalorder %s5151_s14, %s5147_s13 }
  0x2c   : > { %p39_p4 = scmp.eq.s32.totalorder %s5155_s15, 0  ;;  %p4858_p6 = scmp.lt.s32.totalorder %s5155_s15, 2 }
  0x2d   : > { %s5275_s17 = scalar_select %p29_p1, %s5151_s14, %s31_s25  }
  0x2e   : > { %p40_p8 = por %p39_p4, %p38_p2  ;;  %p5925_p10 = scmp.eq.s32.totalorder %s5206_s16, 1 }
  0x2f   : > { %s154_s23 = sand.u32 1, %s5151_s14   ;;  %s4039_s27 = sshll.u32 %s5155_s15, 11 }
  0x30   : > { %p5279_p12 = por %p5925_p10, %p38_p2  ;;  %s3904_s28 = sshll.u32 %s154_s23, 7 }
  0x31   : > { %s5288_s4 = scalar_lea.hbm %s5914_s0, %s4039_s27  ;;  %s158_s22 = scalar_lea.vmem [#allocation3], %s3904_s28 }
  0x32   : > { %s165_s25 = sshll.u32 %s158_s22, 4  ;;  %p5290_p11 = pnand %p4858_p6, %p40_p8  ;;  %s5294_s25 = int_to_ptr.vmem [resolvable:$true] %s165_s25 }
  0x33   : > { %s5296_s5 = scalar_lea.sflag [#allocation4], %s154_s23  ;;  %s5023_s6 = scalar_lea.hbm %s5288_s4, 2048 }
  0x34   : > { %p5024_p13 = scmp.ne.s32.totalorder %s5288_s4, %s5023_s6  ;;  %p5025_p0 = pneg %p5290_p11 }
  0x35   : > { %s5028_s11 = scalar_lea.hbm %s5914_s0, 4096  ;;  %p5029_p7 = scmp.lt.u32.totalorder %s5288_s4, %s5914_s0 }
  0x36   : > { %p5026_p3 = pnand %p5025_p0, %p5024_p13  ;;  %p5030_p9 = scmp.lt.u32.totalorder %s5028_s11, %s5023_s6 }
  0x37   : > { %p5032_p2 = scmp.lt.u32.totalorder %s5023_s6, %s5288_s4 }
  0x38   : > { %p5027_p5 = pneg %p5026_p3  ;;  %p5031_p1 = por %p5030_p9, %p5029_p7 }
  0x3a   : > { %p5033_p4 = por %p5032_p2, %p5031_p1 }
  0x3c   : > { %p5034_p6 = pnand %p5033_p4, %p5027_p5 }
  0x3e   : > { %5037 = shalt.err (!%p5034_p6)
}
  0x3f   : > { %s5038_s23 = scalar_lea.vmem %s5294_s25, 2048  ;;  %s5160_s29 = smov [#allocation3]  }
  0x40   : > { %p5039_p8 = scmp.ne.s32.totalorder %s5294_s25, %s5038_s23  ;;  %s5043_s30 = sshll.u32 %s5160_s29, 4  ;;  %s5044_s30 = int_to_ptr.vmem [resolvable:$false] %s5043_s30 }
  0x41   : > { %s5045_s22 = scalar_lea.vmem %s5044_s30, 4096  ;;  %p5046_p3 = scmp.lt.s32.totalorder %s5294_s25, %s5044_s30 }
  0x42   : > { %p5041_p10 = pnand %p5039_p8, %p5025_p0  ;;  %p5047_p7 = scmp.lt.s32.totalorder %s5045_s22, %s5038_s23 }
  0x44   : > { %p5042_p13 = pneg %p5041_p10  ;;  %p5048_p9 = por %p5047_p7, %p5046_p3 }
  0x46   : > { %p5049_p1 = pnand %p5048_p9, %p5042_p13 }
  0x48   : > { %5052 = shalt.err (!%p5049_p1)
}
  0x49   : > { %4849 = dma.hbm_to_vmem [thread:$0]  (!%p5290_p11), %s5288_s4, 2048, %s5294_s25, %s5296_s5, %s5158_s8, %s5158_s8, %s5159_s9  }
  0x4a   : > { %p5928_p0 = scmp.ne.s32.totalorder %s5923_s20, 0 }
  0x4b   : > { %s5330_s6 = sand.u32 (!%p5928_p0), 1, %s5147_s13   ;;  %p5929_p5 = scmp.ne.s32.totalorder (!%p5928_p0), %s5921_s18, 0 }
  0x4c   : > { %177 = sbr.rel (%p5928_p0) target bundleno = 686 (0x2ae), region = 28  ;;  %s3908_s7 = sshll.u32 (!%p5928_p0), %s5330_s6, 7 }
  0x4d   : > { %s180_s10 = scalar_lea.sflag (!%p5928_p0), [#allocation4], %s5330_s6  ;;  %s5336_s26 = scalar_lea.vmem (!%p5928_p0), [#allocation3], %s3908_s7 }
  0x53   : > { %5126 = dma.done.wait (%p5929_p5), %s180_s10, 2048  }
  0x54   : > { %5128 = vsyncadd (%p5929_p5), %s180_s10, 4294965248  ;;  %p5930_p11 = scmp.eq.s32.totalorder %s5206_s16, 0 }
  0x56   : > { %5130 = dma.done.wait (%p5930_p11), [#allocation7], 9216   ;;  %p5931_p2 = pmov %p5930_p11 }
  0x57   : > { %v4898_v0 = vld [vmem:[#allocation6 + $0x100] sm:$0xff]   ;;  %v4899_v1 = vld [vmem:[#allocation6 + $0x108] sm:$0xff]   ;;  %v4900_v2 = vld [vmem:[#allocation6 + $0x110] sm:$0xff]   ;;  %vm1514_vm0 = vcmask 1046528   ;;  %s5680_s18 = scalar_lea.vmem [#allocation8], %s3908_s7  ;;  %s4072_s20 = sshll.u32 %s5206_s16, 11 }
  0x58   : > { %5132 = vsyncadd (%p5931_p2), [#allocation7], 4294958080  ;;  %4384 = vmatprep.subr.bf16.mxu0 %v4898_v0  ;;  %4816 = vmatprep.subr.bf16.mxu1 %v4898_v0  ;;  %v4901_v3 = vld [vmem:[#allocation6 + $0x118] sm:$0xff]   ;;  %v5347_v4 = vld [vmem:[%s5336_s26] sm:$0xff]   ;;  %s3772_s8 = sshll.u32 %s5680_s18, 4  ;;  %s5826_s25 = scalar_lea.hbm %s5916_s2, %s4072_s20  ;;  %s5828_s8 = int_to_ptr.vmem [resolvable:$true] %s3772_s8 }
  0x59   : > { %4385 = vmatpush3.bf16.msra.mxu0 %v4898_v0  ;;  %4824 = vmatpush3.bf16.msra.mxu1 %v4898_v0  ;;  %v5350_v5 = vld [vmem:[%s5336_s26 + $0x40] sm:$0xff]   ;;  %v4903_v7 = vld [vmem:[#allocation6 + $0x128] sm:$0xff]   ;;  %v4904_v8 = vld [vmem:[#allocation6 + $0x130] sm:$0xff]   ;;  %s3754_s5 = scalar_lea.sflag [#allocation5], %s5330_s6  ;;  %s5053_s11 = scalar_lea.vmem %s5828_s8, 2048 }
  0x5a   : > { %4386 = vmatprep.subr.bf16.mxu0 %v4899_v1  ;;  %4817 = vmatprep.subr.bf16.mxu1 %v4899_v1  ;;  %v4902_v6 = vld [vmem:[#allocation6 + $0x120] sm:$0xff]   ;;  %v4905_v9 = vld [vmem:[#allocation6 + $0x138] sm:$0xff]   ;;  %v5355_v11 = vld [vmem:[%s5336_s26 + $0x8] sm:$0xff]   ;;  %p5054_p4 = scmp.ne.s32.totalorder %s5828_s8, %s5053_s11  ;;  %s5161_s27 = smov [#allocation8]  }
  0x5b   : > { %4400 = vmatprep.mubr.bf16.mxu0 %v5347_v4  ;;  %4416 = vmatprep.mubr.bf16.mxu1 %v5350_v5  ;;  %v4910_v10 = vld [vmem:[#allocation6] sm:$0xff]   ;;  %v5358_v13 = vld [vmem:[%s5336_s26 + $0x48] sm:$0xff]   ;;  %v5361_v16 = vld [vmem:[%s5336_s26 + $0x10] sm:$0xff]   ;;  %s5057_s28 = sshll.u32 %s5161_s27, 4  ;;  %s5058_s28 = int_to_ptr.vmem [resolvable:$false] %s5057_s28 }
  0x5c   : > { %v4911_v12 = vld [vmem:[#allocation6 + $0x40] sm:$0xff]   ;;  %v4912_v14 = vld [vmem:[#allocation6 + $0x8] sm:$0xff]   ;;  %v5364_v17 = vld [vmem:[%s5336_s26 + $0x50] sm:$0xff]   ;;  %p5055_p6 = pnand %p5054_p4, %p5279_p12  ;;  %s5059_s23 = scalar_lea.vmem %s5058_s28, 4096 }
  0x5d   : > { %4387 = vmatpush3.bf16.msra.mxu0 %v4899_v1  ;;  %4825 = vmatpush3.bf16.msra.mxu1 %v4899_v1  ;;  %v4913_v15 = vld [vmem:[#allocation6 + $0x48] sm:$0xff]   ;;  %v4918_v18 = vld [vmem:[#allocation6 + $0x10] sm:$0xff]   ;;  %v5369_v19 = vld [vmem:[%s5336_s26 + $0x18] sm:$0xff]   ;;  %p5060_p10 = scmp.lt.s32.totalorder %s5828_s8, %s5058_s28  ;;  %p5061_p13 = scmp.lt.s32.totalorder %s5059_s23, %s5053_s11 }
  0x5e   : > { %4388 = vmatprep.subr.bf16.mxu0 %v4900_v2  ;;  %4818 = vmatprep.subr.bf16.mxu1 %v4900_v2  ;;  %v4919_v20 = vld [vmem:[#allocation6 + $0x50] sm:$0xff]   ;;  %v5374_v21 = vld [vmem:[%s5336_s26 + $0x58] sm:$0xff]   ;;  %v5377_v24 = vld [vmem:[%s5336_s26 + $0x20] sm:$0xff]   ;;  %p5056_p8 = pneg %p5055_p6 }
  0x5f   : > { %v4920_v22 = vld [vmem:[#allocation6 + $0x18] sm:$0xff]   ;;  %v5380_v25 = vld [vmem:[%s5336_s26 + $0x60] sm:$0xff]   ;;  %v5385_v27 = vld [vmem:[%s5336_s26 + $0x28] sm:$0xff]   ;;  %p5062_p3 = por %p5061_p13, %p5060_p10 }
  0x60   : > { %v4921_v23 = vld [vmem:[#allocation6 + $0x58] sm:$0xff]   ;;  %v4926_v26 = vld [vmem:[#allocation6 + $0x20] sm:$0xff]   ;;  %v5390_v29 = vld [vmem:[%s5336_s26 + $0x68] sm:$0xff]  }
  0x61   : > { %4389 = vmatpush3.bf16.msra.mxu0 %v4900_v2  ;;  %4826 = vmatpush3.bf16.msra.mxu1 %v4900_v2  ;;  %v4927_v28 = vld [vmem:[#allocation6 + $0x60] sm:$0xff]   ;;  %v4928_v30 = vld [vmem:[#allocation6 + $0x28] sm:$0xff]   ;;  %v5393_v32 = vld [vmem:[%s5336_s26 + $0x30] sm:$0xff]   ;;  %p5063_p7 = pnand %p5062_p3, %p5056_p8 }
  0x62   : > { %4390 = vmatprep.subr.bf16.mxu0 %v4901_v3  ;;  %4819 = vmatprep.subr.bf16.mxu1 %v4901_v3  ;;  %v4929_v31 = vld [vmem:[#allocation6 + $0x68] sm:$0xff]   ;;  %v5396_v33 = vld [vmem:[%s5336_s26 + $0x70] sm:$0xff]   ;;  %v5403_v36 = vld [vmem:[%s5336_s26 + $0x38] sm:$0xff]  }
  0x63   : > { %v4934_v34 = vld [vmem:[#allocation6 + $0x30] sm:$0xff]   ;;  %v5406_v37 = vld [vmem:[%s5336_s26 + $0x78] sm:$0xff]   ;;  %v4938_v40 = vld [vmem:[#allocation6 + $0x80] sm:$0xff]  }
  0x64   : > { %v4935_v35 = vld [vmem:[#allocation6 + $0x70] sm:$0xff]   ;;  %v4936_v38 = vld [vmem:[#allocation6 + $0x38] sm:$0xff]   ;;  %v4939_v41 = vld [vmem:[#allocation6 + $0xc0] sm:$0xff]  }
  0x65   : > { %4391 = vmatpush3.bf16.msra.mxu0 %v4901_v3  ;;  %4827 = vmatpush3.bf16.msra.mxu1 %v4901_v3  ;;  %v4937_v39 = vld [vmem:[#allocation6 + $0x78] sm:$0xff]   ;;  %v4940_v42 = vld [vmem:[#allocation6 + $0x88] sm:$0xff]   ;;  %v4942_v44 = vld [vmem:[#allocation6 + $0x90] sm:$0xff]  }
  0x66   : > { %4392 = vmatprep.subr.bf16.mxu0 %v4902_v6  ;;  %4820 = vmatprep.subr.bf16.mxu1 %v4902_v6  ;;  %v4941_v43 = vld [vmem:[#allocation6 + $0xc8] sm:$0xff]   ;;  %v4943_v45 = vld [vmem:[#allocation6 + $0xd0] sm:$0xff]   ;;  %v4944_v46 = vld [vmem:[#allocation6 + $0x98] sm:$0xff]  }
  0x67   : > { %v4945_v47 = vld [vmem:[#allocation6 + $0xd8] sm:$0xff]   ;;  %v4946_v48 = vld [vmem:[#allocation6 + $0xa0] sm:$0xff]   ;;  %v4948_v50 = vld [vmem:[#allocation6 + $0xa8] sm:$0xff]  }
  0x68   : > { %v4947_v49 = vld [vmem:[#allocation6 + $0xe0] sm:$0xff]   ;;  %v4949_v51 = vld [vmem:[#allocation6 + $0xe8] sm:$0xff]   ;;  %v4950_v52 = vld [vmem:[#allocation6 + $0xb0] sm:$0xff]  }
  0x69   : > { %4393 = vmatpush3.bf16.msra.mxu0 %v4902_v6  ;;  %4828 = vmatpush3.bf16.msra.mxu1 %v4902_v6  ;;  %v4951_v53 = vld [vmem:[#allocation6 + $0xf0] sm:$0xff]   ;;  %v4952_v54 = vld [vmem:[#allocation6 + $0xb8] sm:$0xff]   ;;  %v4954_v56 = vld [vmem:[#allocation6 + $0x140] sm:$0xff]  }
  0x6a   : > { %4394 = vmatprep.subr.bf16.mxu0 %v4903_v7  ;;  %4821 = vmatprep.subr.bf16.mxu1 %v4903_v7  ;;  %v4953_v55 = vld [vmem:[#allocation6 + $0xf8] sm:$0xff]   ;;  %v4955_v57 = vld [vmem:[#allocation6 + $0x180] sm:$0xff]   ;;  %v4956_v58 = vld [vmem:[#allocation6 + $0x148] sm:$0xff]  }
  0x6b   : > { %v4957_v59 = vld [vmem:[#allocation6 + $0x188] sm:$0xff]   ;;  %v4958_v60 = vld [vmem:[#allocation6 + $0x150] sm:$0xff]   ;;  %v4960_v62 = vld [vmem:[#allocation6 + $0x158] sm:$0xff]  }
  0x6c   : > { %v4959_v61 = vld [vmem:[#allocation6 + $0x190] sm:$0xff]   ;;  %v4961_v63 = vld [vmem:[#allocation6 + $0x198] sm:$0xff]   ;;  %v4962_v0 = vld [vmem:[#allocation6 + $0x160] sm:$0xff]  }
  0x6d   : > { %4395 = vmatpush3.bf16.msra.mxu0 %v4903_v7  ;;  %4829 = vmatpush3.bf16.msra.mxu1 %v4903_v7  ;;  %v4963_v1 = vld [vmem:[#allocation6 + $0x1a0] sm:$0xff]   ;;  %v4964_v2 = vld [vmem:[#allocation6 + $0x168] sm:$0xff]   ;;  %v4966_v6 = vld [vmem:[#allocation6 + $0x170] sm:$0xff]  }
  0x6e   : > { %4396 = vmatprep.subr.bf16.mxu0 %v4904_v8  ;;  %4822 = vmatprep.subr.bf16.mxu1 %v4904_v8  ;;  %v4965_v3 = vld [vmem:[#allocation6 + $0x1a8] sm:$0xff]   ;;  %v4967_v7 = vld [vmem:[#allocation6 + $0x1b0] sm:$0xff]  }
  0x71   : > { %4397 = vmatpush3.bf16.msra.mxu0 %v4904_v8  ;;  %4830 = vmatpush3.bf16.msra.mxu1 %v4904_v8  ;;  %v4968_v8 = vld [vmem:[#allocation6 + $0x178] sm:$0xff]  }
  0x72   : > { %4398 = vmatprep.subr.bf16.mxu0 %v4905_v9  ;;  %4823 = vmatprep.subr.bf16.mxu1 %v4905_v9 }
  0x75   : > { %4399 = vmatpush3.bf16.msra.mxu0 %v4905_v9  ;;  %4831 = vmatpush3.bf16.msra.mxu1 %v4905_v9  ;;  %v4969_v9 = vld [vmem:[#allocation6 + $0x1b8] sm:$0xff]  }
  0x76   : > { %4432 = vmatprep.subr.bf16.mxu1 %v4910_v10  ;;  %4480 = vmatprep.subr.bf16.mxu0 %v4911_v12 }
  0x78   : > { %4401 = vmatmul.mubr.bf16.vlgmr.msra.gmra.mrb[0].mxu0 %v5355_v11  ;;  %4417 = vmatmul.mubr.bf16.vlgmr.msra.gmra.mrb[0].mxu1 %v5358_v13 }
  0x79   : > { %4433 = vmatpush3.bf16.msra.mxu1 %v4910_v10  ;;  %4481 = vmatpush3.bf16.msra.mxu0 %v4911_v12  ;;  %v4970_v10 = vld [vmem:[#allocation6 + $0x1c0] sm:$0xff]  }
  0x7a   : > { %4434 = vmatprep.subr.bf16.mxu1 %v4912_v14  ;;  %4482 = vmatprep.subr.bf16.mxu0 %v4913_v15  ;;  %v4971_v12 = vld [vmem:[#allocation6 + $0x200] sm:$0xff]  }
  0x7b   : > { %4404 = vmatprep.mubr.bf16.mxu0 %v5361_v16  ;;  %4420 = vmatprep.mubr.bf16.mxu1 %v5364_v17 }
  0x7d   : > { %4435 = vmatpush3.bf16.msra.mxu1 %v4912_v14  ;;  %4483 = vmatpush3.bf16.msra.mxu0 %v4913_v15  ;;  %v4972_v14 = vld [vmem:[#allocation6 + $0x1c8] sm:$0xff]  }
  0x7e   : > { %4436 = vmatprep.subr.bf16.mxu1 %v4918_v18  ;;  %4484 = vmatprep.subr.bf16.mxu0 %v4919_v20  ;;  %v4973_v15 = vld [vmem:[#allocation6 + $0x208] sm:$0xff]  }
  0x80   : > { %4405 = vmatmul.mubr.bf16.gmra.mrb[4].mxu0 %v5369_v19  ;;  %4421 = vmatmul.mubr.bf16.gmra.mrb[4].mxu1 %v5374_v21 }
  0x81   : > { %4437 = vmatpush3.bf16.msra.mxu1 %v4918_v18  ;;  %4485 = vmatpush3.bf16.msra.mxu0 %v4919_v20  ;;  %v4974_v18 = vld [vmem:[#allocation6 + $0x1d0] sm:$0xff]  }
  0x82   : > { %4438 = vmatprep.subr.bf16.mxu1 %v4920_v22  ;;  %4486 = vmatprep.subr.bf16.mxu0 %v4921_v23  ;;  %v4975_v20 = vld [vmem:[#allocation6 + $0x210] sm:$0xff]  }
  0x83   : > { %4408 = vmatprep.mubr.bf16.mxu0 %v5377_v24  ;;  %4424 = vmatprep.mubr.bf16.mxu1 %v5380_v25 }
  0x85   : > { %4439 = vmatpush3.bf16.msra.mxu1 %v4920_v22  ;;  %4487 = vmatpush3.bf16.msra.mxu0 %v4921_v23  ;;  %v4977_v22 = vld [vmem:[#allocation6 + $0x218] sm:$0xff]   ;;  %v4978_v23 = vld [vmem:[#allocation6 + $0x1e0] sm:$0xff]  }
  0x86   : > { %4440 = vmatprep.subr.bf16.mxu1 %v4926_v26  ;;  %4488 = vmatprep.subr.bf16.mxu0 %v4927_v28 }
  0x88   : > { %4409 = vmatmul.mubr.bf16.gmra.mrb[8].mxu0 %v5385_v27  ;;  %4425 = vmatmul.mubr.bf16.gmra.mrb[8].mxu1 %v5390_v29 }
  0x89   : > { %4441 = vmatpush3.bf16.msra.mxu1 %v4926_v26  ;;  %4489 = vmatpush3.bf16.msra.mxu0 %v4927_v28  ;;  %v4979_v26 = vld [vmem:[#allocation6 + $0x220] sm:$0xff]   ;;  %v4980_v28 = vld [vmem:[#allocation6 + $0x1e8] sm:$0xff]  }
  0x8a   : > { %4442 = vmatprep.subr.bf16.mxu1 %v4928_v30  ;;  %4490 = vmatprep.subr.bf16.mxu0 %v4929_v31 }
  0x8b   : > { %4412 = vmatprep.mubr.bf16.mxu0 %v5393_v32  ;;  %4428 = vmatprep.mubr.bf16.mxu1 %v5396_v33 }
  0x8d   : > { %4443 = vmatpush3.bf16.msra.mxu1 %v4928_v30  ;;  %4491 = vmatpush3.bf16.msra.mxu0 %v4929_v31  ;;  %v4981_v30 = vld [vmem:[#allocation6 + $0x228] sm:$0xff]   ;;  %v4982_v31 = vld [vmem:[#allocation6 + $0x1f0] sm:$0xff]  }
  0x8e   : > { %4444 = vmatprep.subr.bf16.mxu1 %v4934_v34  ;;  %4492 = vmatprep.subr.bf16.mxu0 %v4935_v35 }
  0x90   : > { %4413 = vmatmul.mubr.bf16.gmra.mrb[12].mxu0 %v5403_v36  ;;  %4429 = vmatmul.mubr.bf16.gmra.mrb[12].mxu1 %v5406_v37 }
  0x91   : > { %4445 = vmatpush3.bf16.msra.mxu1 %v4934_v34  ;;  %4493 = vmatpush3.bf16.msra.mxu0 %v4935_v35  ;;  %v4983_v34 = vld [vmem:[#allocation6 + $0x230] sm:$0xff]   ;;  %v4984_v35 = vld [vmem:[#allocation6 + $0x1f8] sm:$0xff]  }
  0x92   : > { %4446 = vmatprep.subr.bf16.mxu1 %v4936_v38  ;;  %4494 = vmatprep.subr.bf16.mxu0 %v4937_v39 }
  0x93   : > { %4448 = vmatprep.mubr.bf16.mxu1 %v5347_v4  ;;  %4496 = vmatprep.mubr.bf16.mxu0 %v5347_v4 }
  0x95   : > { %4447 = vmatpush3.bf16.msra.mxu1 %v4936_v38  ;;  %4495 = vmatpush3.bf16.msra.mxu0 %v4937_v39  ;;  %v4985_v38 = vld [vmem:[#allocation6 + $0x238] sm:$0xff]  }
  0x96   : > { %4528 = vmatprep.subr.bf16.mxu1 %v4938_v40  ;;  %4576 = vmatprep.subr.bf16.mxu0 %v4939_v41 }
  0x98   : > { %4449 = vmatmul.mubr.bf16.vlgmr.msra.gmra.mrb[16].mxu1 %v5355_v11  ;;  %4497 = vmatmul.mubr.bf16.vlgmr.msra.gmra.mrb[16].mxu0 %v5355_v11 }
  0x99   : > { %4529 = vmatpush3.bf16.msra.mxu1 %v4938_v40  ;;  %4577 = vmatpush3.bf16.msra.mxu0 %v4939_v41 }
  0x9a   : > { %4452 = vmatprep.mubr.bf16.mxu1 %v5361_v16  ;;  %4500 = vmatprep.mubr.bf16.mxu0 %v5361_v16 }
  0x9b   : > { %4530 = vmatprep.subr.bf16.mxu1 %v4940_v42  ;;  %4578 = vmatprep.subr.bf16.mxu0 %v4941_v43 }
  0x9d   : > { %4531 = vmatpush3.bf16.msra.mxu1 %v4940_v42  ;;  %4579 = vmatpush3.bf16.msra.mxu0 %v4941_v43 }
  0x9e   : > { %4532 = vmatprep.subr.bf16.mxu1 %v4942_v44  ;;  %4580 = vmatprep.subr.bf16.mxu0 %v4943_v45 }
  0xa0   : > { %4453 = vmatmul.mubr.bf16.gmra.mrb[20].mxu1 %v5369_v19  ;;  %4501 = vmatmul.mubr.bf16.gmra.mrb[20].mxu0 %v5369_v19 }
  0xa1   : > { %4456 = vmatprep.mubr.bf16.mxu1 %v5377_v24  ;;  %4504 = vmatprep.mubr.bf16.mxu0 %v5377_v24 }
  0xa2   : > { %4533 = vmatpush3.bf16.msra.mxu1 %v4942_v44  ;;  %4581 = vmatpush3.bf16.msra.mxu0 %v4943_v45 }
  0xa3   : > { %4534 = vmatprep.subr.bf16.mxu1 %v4944_v46  ;;  %4582 = vmatprep.subr.bf16.mxu0 %v4945_v47 }
  0xa6   : > { %4535 = vmatpush3.bf16.msra.mxu1 %v4944_v46  ;;  %4583 = vmatpush3.bf16.msra.mxu0 %v4945_v47 }
  0xa7   : > { %4536 = vmatprep.subr.bf16.mxu1 %v4946_v48  ;;  %4584 = vmatprep.subr.bf16.mxu0 %v4947_v49 }
  0xa8   : > { %4457 = vmatmul.mubr.bf16.gmra.mrb[24].mxu1 %v5385_v27  ;;  %4505 = vmatmul.mubr.bf16.gmra.mrb[24].mxu0 %v5385_v27 }
  0xa9   : > { %4460 = vmatprep.mubr.bf16.mxu1 %v5393_v32  ;;  %4508 = vmatprep.mubr.bf16.mxu0 %v5393_v32 }
  0xaa   : > { %4537 = vmatpush3.bf16.msra.mxu1 %v4946_v48  ;;  %4585 = vmatpush3.bf16.msra.mxu0 %v4947_v49 }
  0xab   : > { %4538 = vmatprep.subr.bf16.mxu1 %v4948_v50  ;;  %4586 = vmatprep.subr.bf16.mxu0 %v4949_v51 }
  0xae   : > { %4539 = vmatpush3.bf16.msra.mxu1 %v4948_v50  ;;  %4587 = vmatpush3.bf16.msra.mxu0 %v4949_v51 }
  0xaf   : > { %4540 = vmatprep.subr.bf16.mxu1 %v4950_v52  ;;  %4588 = vmatprep.subr.bf16.mxu0 %v4951_v53 }
  0xb0   : > { %4461 = vmatmul.mubr.bf16.gmra.mrb[28].mxu1 %v5403_v36  ;;  %4509 = vmatmul.mubr.bf16.gmra.mrb[28].mxu0 %v5403_v36 }
  0xb1   : > { %4464 = vmatprep.mubr.bf16.mxu1 %v5350_v5  ;;  %4512 = vmatprep.mubr.bf16.mxu0 %v5350_v5 }
  0xb2   : > { %4541 = vmatpush3.bf16.msra.mxu1 %v4950_v52  ;;  %4589 = vmatpush3.bf16.msra.mxu0 %v4951_v53 }
  0xb3   : > { %4542 = vmatprep.subr.bf16.mxu1 %v4952_v54  ;;  %4590 = vmatprep.subr.bf16.mxu0 %v4953_v55 }
  0xb6   : > { %4543 = vmatpush3.bf16.msra.mxu1 %v4952_v54  ;;  %4591 = vmatpush3.bf16.msra.mxu0 %v4953_v55 }
  0xb7   : > { %4624 = vmatprep.subr.bf16.mxu1 %v4954_v56  ;;  %4672 = vmatprep.subr.bf16.mxu0 %v4955_v57 }
  0xb8   : > { %4465 = vmatmul.mubr.bf16.gmra.mrb[32].mxu1 %v5358_v13  ;;  %4513 = vmatmul.mubr.bf16.gmra.mrb[32].mxu0 %v5358_v13 }
  0xb9   : > { %4468 = vmatprep.mubr.bf16.mxu1 %v5364_v17  ;;  %4516 = vmatprep.mubr.bf16.mxu0 %v5364_v17 }
  0xc0   : > { %4469 = vmatmul.mubr.bf16.gmra.mrb[36].mxu1 %v5374_v21  ;;  %4517 = vmatmul.mubr.bf16.gmra.mrb[36].mxu0 %v5374_v21 }
  0xc1   : > { %4472 = vmatprep.mubr.bf16.mxu1 %v5380_v25  ;;  %4520 = vmatprep.mubr.bf16.mxu0 %v5380_v25 }
  0xc8   : > { %4473 = vmatmul.mubr.bf16.gmra.mrb[40].mxu1 %v5390_v29  ;;  %4521 = vmatmul.mubr.bf16.gmra.mrb[40].mxu0 %v5390_v29 }
  0xc9   : > { %4476 = vmatprep.mubr.bf16.mxu1 %v5396_v33  ;;  %4524 = vmatprep.mubr.bf16.mxu0 %v5396_v33 }
  0xd0   : > { %4477 = vmatmul.mubr.bf16.gmra.mrb[44].mxu1 %v5406_v37  ;;  %4525 = vmatmul.mubr.bf16.gmra.mrb[44].mxu0 %v5406_v37 }
  0xd1   : > { %4544 = vmatprep.mubr.bf16.mxu1 %v5347_v4  ;;  %4592 = vmatprep.mubr.bf16.mxu0 %v5347_v4 }
  0xd8   : > { %4545 = vmatmul.mubr.bf16.vlgmr.msra.gmra.mrb[48].mxu1 %v5355_v11  ;;  %4593 = vmatmul.mubr.bf16.vlgmr.msra.gmra.mrb[48].mxu0 %v5355_v11 }
  0xd9   : > { %4625 = vmatpush3.bf16.msra.mxu1 %v4954_v56  ;;  %4673 = vmatpush3.bf16.msra.mxu0 %v4955_v57 }
  0xda   : > { %4548 = vmatprep.mubr.bf16.mxu1 %v5361_v16  ;;  %4626 = vmatprep.subr.bf16.mxu1 %v4956_v58 }
  0xdb   : > { %4596 = vmatprep.mubr.bf16.mxu0 %v5361_v16  ;;  %4674 = vmatprep.subr.bf16.mxu0 %v4957_v59 }
  0xdd   : > { %4627 = vmatpush3.bf16.msra.mxu1 %v4956_v58  ;;  %4675 = vmatpush3.bf16.msra.mxu0 %v4957_v59 }
  0xde   : > { %4628 = vmatprep.subr.bf16.mxu1 %v4958_v60  ;;  %4676 = vmatprep.subr.bf16.mxu0 %v4959_v61 }
  0xe0   : > { %4549 = vmatmul.mubr.bf16.gmra.mrb[52].mxu1 %v5369_v19  ;;  %4597 = vmatmul.mubr.bf16.gmra.mrb[52].mxu0 %v5369_v19 }
  0xe1   : > { %4552 = vmatprep.mubr.bf16.mxu1 %v5377_v24  ;;  %4629 = vmatpush3.bf16.msra.mxu1 %v4958_v60 }
  0xe2   : > { %4600 = vmatprep.mubr.bf16.mxu0 %v5377_v24  ;;  %4677 = vmatpush3.bf16.msra.mxu0 %v4959_v61 }
  0xe3   : > { %4630 = vmatprep.subr.bf16.mxu1 %v4960_v62  ;;  %4678 = vmatprep.subr.bf16.mxu0 %v4961_v63 }
  0xe5   : > { %4631 = vmatpush3.bf16.msra.mxu1 %v4960_v62 }
  0xe6   : > { %4679 = vmatpush3.bf16.msra.mxu0 %v4961_v63  ;;  %4632 = vmatprep.subr.bf16.mxu1 %v4962_v0 }
  0xe7   : > { %4680 = vmatprep.subr.bf16.mxu0 %v4963_v1 }
  0xe8   : > { %4553 = vmatmul.mubr.bf16.gmra.mrb[56].mxu1 %v5385_v27  ;;  %4601 = vmatmul.mubr.bf16.gmra.mrb[56].mxu0 %v5385_v27 }
  0xe9   : > { %4556 = vmatprep.mubr.bf16.mxu1 %v5393_v32  ;;  %4604 = vmatprep.mubr.bf16.mxu0 %v5393_v32 }
  0xea   : > { %4633 = vmatpush3.bf16.msra.mxu1 %v4962_v0  ;;  %4681 = vmatpush3.bf16.msra.mxu0 %v4963_v1 }
  0xeb   : > { %4634 = vmatprep.subr.bf16.mxu1 %v4964_v2  ;;  %4682 = vmatprep.subr.bf16.mxu0 %v4965_v3 }
  0xee   : > { %4635 = vmatpush3.bf16.msra.mxu1 %v4964_v2  ;;  %4683 = vmatpush3.bf16.msra.mxu0 %v4965_v3 }
  0xef   : > { %4636 = vmatprep.subr.bf16.mxu1 %v4966_v6  ;;  %4684 = vmatprep.subr.bf16.mxu0 %v4967_v7 }
  0xf0   : > { %4557 = vmatmul.mubr.bf16.gmra.mrb[60].mxu1 %v5403_v36  ;;  %4605 = vmatmul.mubr.bf16.gmra.mrb[60].mxu0 %v5403_v36 }
  0xf1   : > { %4560 = vmatprep.mubr.bf16.mxu1 %v5350_v5  ;;  %4608 = vmatprep.mubr.bf16.mxu0 %v5350_v5 }
  0xf2   : > { %4637 = vmatpush3.bf16.msra.mxu1 %v4966_v6  ;;  %4685 = vmatpush3.bf16.msra.mxu0 %v4967_v7 }
  0xf3   : > { %4638 = vmatprep.subr.bf16.mxu1 %v4968_v8  ;;  %4686 = vmatprep.subr.bf16.mxu0 %v4969_v9 }
  0xf6   : > { %4639 = vmatpush3.bf16.msra.mxu1 %v4968_v8  ;;  %4687 = vmatpush3.bf16.msra.mxu0 %v4969_v9 }
  0xf7   : > { %4720 = vmatprep.subr.bf16.mxu1 %v4970_v10  ;;  %4768 = vmatprep.subr.bf16.mxu0 %v4971_v12 }
  0xf8   : > { %4561 = vmatmul.mubr.bf16.gmra.mrb[64].mxu1 %v5358_v13  ;;  %4609 = vmatmul.mubr.bf16.gmra.mrb[64].mxu0 %v5358_v13 }
  0xf9   : > { %4564 = vmatprep.mubr.bf16.mxu1 %v5364_v17  ;;  %4612 = vmatprep.mubr.bf16.mxu0 %v5364_v17 }
 0x100   : > { %4565 = vmatmul.mubr.bf16.gmra.mrb[68].mxu1 %v5374_v21  ;;  %4613 = vmatmul.mubr.bf16.gmra.mrb[68].mxu0 %v5374_v21 }
 0x101   : > { %4568 = vmatprep.mubr.bf16.mxu1 %v5380_v25  ;;  %4616 = vmatprep.mubr.bf16.mxu0 %v5380_v25 }
 0x108   : > { %4569 = vmatmul.mubr.bf16.gmra.mrb[72].mxu1 %v5390_v29  ;;  %4617 = vmatmul.mubr.bf16.gmra.mrb[72].mxu0 %v5390_v29 }
 0x109   : > { %4572 = vmatprep.mubr.bf16.mxu1 %v5396_v33  ;;  %4620 = vmatprep.mubr.bf16.mxu0 %v5396_v33 }
 0x110   : > { %4573 = vmatmul.mubr.bf16.gmra.mrb[76].mxu1 %v5406_v37  ;;  %4621 = vmatmul.mubr.bf16.gmra.mrb[76].mxu0 %v5406_v37 }
 0x111   : > { %4640 = vmatprep.mubr.bf16.mxu1 %v5347_v4  ;;  %4688 = vmatprep.mubr.bf16.mxu0 %v5347_v4  ;;  %v4976_v4 = vld [vmem:[#allocation6 + $0x1d8] sm:$0xff]  }
 0x118   : > { %4641 = vmatmul.mubr.bf16.vlgmr.msra.gmra.mrb[80].mxu1 %v5355_v11  ;;  %4689 = vmatmul.mubr.bf16.vlgmr.msra.gmra.mrb[80].mxu0 %v5355_v11 }
 0x119   : > { %4721 = vmatpush3.bf16.msra.mxu1 %v4970_v10  ;;  %4769 = vmatpush3.bf16.msra.mxu0 %v4971_v12 }
 0x11a   : > { %4644 = vmatprep.mubr.bf16.mxu1 %v5361_v16  ;;  %4722 = vmatprep.subr.bf16.mxu1 %v4972_v14 }
 0x11b   : > { %4692 = vmatprep.mubr.bf16.mxu0 %v5361_v16  ;;  %4770 = vmatprep.subr.bf16.mxu0 %v4973_v15 }
 0x11d   : > { %4723 = vmatpush3.bf16.msra.mxu1 %v4972_v14  ;;  %4771 = vmatpush3.bf16.msra.mxu0 %v4973_v15  ;;  %v4987_v14 = vld [vmem:[%s5336_s26 + $0x40] sm:$0xff]  }
 0x11e   : > { %4724 = vmatprep.subr.bf16.mxu1 %v4974_v18  ;;  %4772 = vmatprep.subr.bf16.mxu0 %v4975_v20 }
 0x120   : > { %4645 = vmatmul.mubr.bf16.gmra.mrb[84].mxu1 %v5369_v19  ;;  %4693 = vmatmul.mubr.bf16.gmra.mrb[84].mxu0 %v5369_v19 }
 0x121   : > { %4648 = vmatprep.mubr.bf16.mxu1 %v5377_v24  ;;  %4725 = vmatpush3.bf16.msra.mxu1 %v4974_v18 }
 0x122   : > { %4696 = vmatprep.mubr.bf16.mxu0 %v5377_v24  ;;  %4773 = vmatpush3.bf16.msra.mxu0 %v4975_v20 }
 0x123   : > { %4726 = vmatprep.subr.bf16.mxu1 %v4976_v4  ;;  %4774 = vmatprep.subr.bf16.mxu0 %v4977_v22 }
 0x125   : > { %4727 = vmatpush3.bf16.msra.mxu1 %v4976_v4 }
 0x126   : > { %4775 = vmatpush3.bf16.msra.mxu0 %v4977_v22  ;;  %4728 = vmatprep.subr.bf16.mxu1 %v4978_v23 }
 0x127   : > { %4776 = vmatprep.subr.bf16.mxu0 %v4979_v26 }
 0x128   : > { %4649 = vmatmul.mubr.bf16.gmra.mrb[88].mxu1 %v5385_v27  ;;  %4697 = vmatmul.mubr.bf16.gmra.mrb[88].mxu0 %v5385_v27 }
 0x129   : > { %4652 = vmatprep.mubr.bf16.mxu1 %v5393_v32  ;;  %4700 = vmatprep.mubr.bf16.mxu0 %v5393_v32 }
 0x12a   : > { %4729 = vmatpush3.bf16.msra.mxu1 %v4978_v23  ;;  %4777 = vmatpush3.bf16.msra.mxu0 %v4979_v26 }
 0x12b   : > { %4730 = vmatprep.subr.bf16.mxu1 %v4980_v28  ;;  %4778 = vmatprep.subr.bf16.mxu0 %v4981_v30 }
 0x12e   : > { %4731 = vmatpush3.bf16.msra.mxu1 %v4980_v28  ;;  %4779 = vmatpush3.bf16.msra.mxu0 %v4981_v30 }
 0x12f   : > { %4732 = vmatprep.subr.bf16.mxu1 %v4982_v31  ;;  %4780 = vmatprep.subr.bf16.mxu0 %v4983_v34 }
 0x130   : > { %4653 = vmatmul.mubr.bf16.gmra.mrb[92].mxu1 %v5403_v36  ;;  %4701 = vmatmul.mubr.bf16.gmra.mrb[92].mxu0 %v5403_v36 }
 0x131   : > { %4656 = vmatprep.mubr.bf16.mxu1 %v5350_v5  ;;  %4704 = vmatprep.mubr.bf16.mxu0 %v5350_v5 }
 0x132   : > { %4733 = vmatpush3.bf16.msra.mxu1 %v4982_v31  ;;  %4781 = vmatpush3.bf16.msra.mxu0 %v4983_v34 }
 0x133   : > { %4734 = vmatprep.subr.bf16.mxu1 %v4984_v35  ;;  %4782 = vmatprep.subr.bf16.mxu0 %v4985_v38 }
 0x136   : > { %4735 = vmatpush3.bf16.msra.mxu1 %v4984_v35  ;;  %4783 = vmatpush3.bf16.msra.mxu0 %v4985_v38 }
 0x138   : > { %4657 = vmatmul.mubr.bf16.gmra.mrb[96].mxu1 %v5358_v13  ;;  %4705 = vmatmul.mubr.bf16.gmra.mrb[96].mxu0 %v5358_v13 }
 0x139   : > { %4660 = vmatprep.mubr.bf16.mxu1 %v5364_v17  ;;  %4708 = vmatprep.mubr.bf16.mxu0 %v5364_v17 }
 0x140   : > { %4661 = vmatmul.mubr.bf16.gmra.mrb[100].mxu1 %v5374_v21  ;;  %4709 = vmatmul.mubr.bf16.gmra.mrb[100].mxu0 %v5374_v21 }
 0x141   : > { %4664 = vmatprep.mubr.bf16.mxu1 %v5380_v25  ;;  %4712 = vmatprep.mubr.bf16.mxu0 %v5380_v25 }
 0x148   : > { %4665 = vmatmul.mubr.bf16.gmra.mrb[104].mxu1 %v5390_v29  ;;  %4713 = vmatmul.mubr.bf16.gmra.mrb[104].mxu0 %v5390_v29  ;;  %v4986_v29 = vld [vmem:[%s5336_s26] sm:$0xff]  }
 0x149   : > { %4668 = vmatprep.mubr.bf16.mxu1 %v5396_v33  ;;  %4716 = vmatprep.mubr.bf16.mxu0 %v5396_v33 }
 0x14b   : > { %v4418_v5 = vpop.f32.mrb[0].mxu1  ;;  %v4402_v13 = vpop.f32.mrb[0].mxu0 }
 0x14c   : > { %588 = vst [vmem:[#allocation2 + $0x90] sm:$0xff] %v4418_v5  ;;  %v507_v17 = vpop.f32.mrb[1].mxu1  ;;  %572 = vst [vmem:[#allocation2 + $0x10] sm:$0xff] %v4402_v13  ;;  %v443_v39 = vpop.f32.mrb[1].mxu0 }
 0x14d   : > { %586 = vst [vmem:[#allocation2 + $0x80] sm:$0xff] %v507_v17  ;;  %v4419_v21 = vpop.f32.mrb[2].mxu1  ;;  %570 = vst [vmem:[#allocation2] sm:$0xff] %v443_v39  ;;  %v4403_v40 = vpop.f32.mrb[2].mxu0 }
 0x14e   : > { %589 = vst [vmem:[#allocation2 + $0x98] sm:$0xff] %v4419_v21  ;;  %v510_v25 = vpop.f32.mrb[3].mxu1  ;;  %573 = vst [vmem:[#allocation2 + $0x18] sm:$0xff] %v4403_v40  ;;  %v446_v41 = vpop.f32.mrb[3].mxu0  ;;  %v4988_v40 = vld [vmem:[%s5336_s26 + $0x48] sm:$0xff]  }
 0x14f   : > { %587 = vst [vmem:[#allocation2 + $0x88] sm:$0xff] %v510_v25  ;;  %571 = vst [vmem:[#allocation2 + $0x8] sm:$0xff] %v446_v41  ;;  %v4989_v41 = vld [vmem:[%s5336_s26 + $0x50] sm:$0xff]  }
 0x150   : > { %4669 = vmatmul.mubr.bf16.gmra.mrb[108].mxu1 %v5406_v37  ;;  %4717 = vmatmul.mubr.bf16.gmra.mrb[108].mxu0 %v5406_v37 }
 0x151   : > { %4736 = vmatprep.mubr.bf16.mxu1 %v4986_v29  ;;  %4784 = vmatprep.mubr.bf16.mxu0 %v4986_v29 }
 0x153   : > { %v4422_v33 = vpop.f32.mrb[4].mxu1  ;;  %v4406_v42 = vpop.f32.mrb[4].mxu0 }
 0x154   : > { %592 = vst [vmem:[#allocation2 + $0xb0] sm:$0xff] %v4422_v33  ;;  %v523_v43 = vpop.f32.mrb[5].mxu1  ;;  %576 = vst [vmem:[#allocation2 + $0x30] sm:$0xff] %v4406_v42  ;;  %v459_v44 = vpop.f32.mrb[5].mxu0 }
 0x155   : > { %590 = vst [vmem:[#allocation2 + $0xa0] sm:$0xff] %v523_v43  ;;  %v4423_v45 = vpop.f32.mrb[6].mxu1  ;;  %574 = vst [vmem:[#allocation2 + $0x20] sm:$0xff] %v459_v44  ;;  %v4407_v46 = vpop.f32.mrb[6].mxu0  ;;  %v826_v1 = vld [vmem:[#allocation2 + $0x11] sm:$0xff] }
 0x156   : > { %593 = vst [vmem:[#allocation2 + $0xb8] sm:$0xff] %v4423_v45  ;;  %v526_v47 = vpop.f32.mrb[7].mxu1  ;;  %577 = vst [vmem:[#allocation2 + $0x38] sm:$0xff] %v4407_v46  ;;  %v462_v48 = vpop.f32.mrb[7].mxu0  ;;  %v827_v10 = vld [vmem:[#allocation2 + $0x19] sm:$0x7f] }
 0x157   : > { %591 = vst [vmem:[#allocation2 + $0xa8] sm:$0xff] %v526_v47  ;;  %575 = vst [vmem:[#allocation2 + $0x28] sm:$0xff] %v462_v48 }
 0x158   : > { %4737 = vmatmul.mubr.bf16.vlgmr.msra.gmra.mrb[112].mxu1 %v5355_v11  ;;  %4785 = vmatmul.mubr.bf16.vlgmr.msra.gmra.mrb[112].mxu0 %v5355_v11 }
 0x159   : > { %4740 = vmatprep.mubr.bf16.mxu1 %v5361_v16  ;;  %4788 = vmatprep.mubr.bf16.mxu0 %v5361_v16 }
 0x15b   : > { %v4426_v37 = vpop.f32.mrb[8].mxu1  ;;  %v4410_v49 = vpop.f32.mrb[8].mxu0 }
 0x15c   : > { %596 = vst [vmem:[#allocation2 + $0xd0] sm:$0xff] %v4426_v37  ;;  %v539_v50 = vpop.f32.mrb[9].mxu1  ;;  %580 = vst [vmem:[#allocation2 + $0x50] sm:$0xff] %v4410_v49  ;;  %v475_v51 = vpop.f32.mrb[9].mxu0 }
 0x15d   : > { %594 = vst [vmem:[#allocation2 + $0xc0] sm:$0xff] %v539_v50  ;;  %v4427_v52 = vpop.f32.mrb[10].mxu1  ;;  %578 = vst [vmem:[#allocation2 + $0x40] sm:$0xff] %v475_v51  ;;  %v4411_v53 = vpop.f32.mrb[10].mxu0  ;;  %v830_v23 = vld [vmem:[#allocation2 + $0x31] sm:$0xff] }
 0x15e   : > { %597 = vst [vmem:[#allocation2 + $0xd8] sm:$0xff] %v4427_v52  ;;  %v542_v54 = vpop.f32.mrb[11].mxu1  ;;  %581 = vst [vmem:[#allocation2 + $0x58] sm:$0xff] %v4411_v53  ;;  %v478_v55 = vpop.f32.mrb[11].mxu0  ;;  %v829_v7 = vld [vmem:[#allocation2 + $0x29] sm:$0x7f] }
 0x15f   : > { %595 = vst [vmem:[#allocation2 + $0xc8] sm:$0xff] %v542_v54  ;;  %579 = vst [vmem:[#allocation2 + $0x48] sm:$0xff] %v478_v55  ;;  %v831_v38 = vld [vmem:[#allocation2 + $0x39] sm:$0x7f] }
 0x160   : > { %4741 = vmatmul.mubr.bf16.gmra.mrb[116].mxu1 %v5369_v19  ;;  %4789 = vmatmul.mubr.bf16.gmra.mrb[116].mxu0 %v5369_v19 }
 0x161   : > { %4744 = vmatprep.mubr.bf16.mxu1 %v5377_v24  ;;  %4792 = vmatprep.mubr.bf16.mxu0 %v5377_v24  ;;  %v828_v24 = vld [vmem:[#allocation2 + $0x21] sm:$0xff] }
 0x163   : > { %v4430_v11 = vpop.f32.mrb[12].mxu1  ;;  %v4414_v16 = vpop.f32.mrb[12].mxu0 }
 0x164   : > { %600 = vst [vmem:[#allocation2 + $0xf0] sm:$0xff] %v4430_v11  ;;  %v555_v56 = vpop.f32.mrb[13].mxu1  ;;  %584 = vst [vmem:[#allocation2 + $0x70] sm:$0xff] %v4414_v16  ;;  %v491_v57 = vpop.f32.mrb[13].mxu0 }
 0x165   : > { %598 = vst [vmem:[#allocation2 + $0xe0] sm:$0xff] %v555_v56  ;;  %v4431_v58 = vpop.f32.mrb[14].mxu1  ;;  %582 = vst [vmem:[#allocation2 + $0x60] sm:$0xff] %v491_v57  ;;  %v4415_v59 = vpop.f32.mrb[14].mxu0  ;;  %v834_v45 = vld [vmem:[#allocation2 + $0x51] sm:$0xff] }
 0x166   : > { %601 = vst [vmem:[#allocation2 + $0xf8] sm:$0xff] %v4431_v58  ;;  %v558_v60 = vpop.f32.mrb[15].mxu1  ;;  %585 = vst [vmem:[#allocation2 + $0x78] sm:$0xff] %v4415_v59  ;;  %v494_v61 = vpop.f32.mrb[15].mxu0  ;;  %v832_v18 = vld [vmem:[#allocation2 + $0x41] sm:$0xff]  ;;  %v4990_v56 = vld [vmem:[%s5336_s26 + $0x58] sm:$0xff]  }
 0x167   : > { %599 = vst [vmem:[#allocation2 + $0xe8] sm:$0xff] %v558_v60  ;;  %583 = vst [vmem:[#allocation2 + $0x68] sm:$0xff] %v494_v61  ;;  %v833_v31 = vld [vmem:[#allocation2 + $0x49] sm:$0x7f]  ;;  %v835_v52 = vld [vmem:[#allocation2 + $0x59] sm:$0x7f] }
 0x168   : > { %4745 = vmatmul.mubr.bf16.gmra.mrb[120].mxu1 %v5385_v27  ;;  %4793 = vmatmul.mubr.bf16.gmra.mrb[120].mxu0 %v5385_v27  ;;  %v4991_v58 = vld [vmem:[%s5336_s26 + $0x60] sm:$0xff]  }
 0x169   : > { %4748 = vmatprep.mubr.bf16.mxu1 %v5393_v32  ;;  %4796 = vmatprep.mubr.bf16.mxu0 %v5393_v32  ;;  %v840_v60 = vld [vmem:[#allocation2 + $0x81] sm:$0xff] }
 0x16b   : > { %v4450_v19 = vpop.f32.mrb[16].mxu1  ;;  %v5519_v62 = vpop.f32.mrb[16].mxu0 }
 0x16c   : > { %v858_v63 = vadd.f32 %v4450_v19, %v828_v24  ;;  %v700_v0 = vpop.f32.mrb[17].mxu1  ;;  %v5521_v2 = vpop.f32.mrb[17].mxu0 }
 0x16d   : > { %v856_v3 = vadd.f32 %v826_v1, %v700_v0  ;;  %v4451_v6 = vpop.f32.mrb[18].mxu1  ;;  %v4499_v8 = vpop.f32.mrb[18].mxu0 }
 0x16e   : > { %888 = vst [vmem:[#allocation2 + $0x21] sm:$0xff] %v858_v63  ;;  %v859_v27 = vadd.f32 %v4451_v6, %v829_v7  ;;  %v703_v9 = vpop.f32.mrb[19].mxu1  ;;  %v1018_v12 = vpop.f32.mrb[19].mxu0  ;;  %v836_v33 = vld [vmem:[#allocation2 + $0x61] sm:$0xff]  ;;  %v837_v37 = vld [vmem:[#allocation2 + $0x69] sm:$0x7f] }
 0x16f   : > { %886 = vst [vmem:[#allocation2 + $0x11] sm:$0xff] %v856_v3  ;;  %v857_v32 = vadd.f32 %v827_v10, %v703_v9  ;;  %v838_v63 = vld [vmem:[#allocation2 + $0x71] sm:$0xff]  ;;  %v841_v6 = vld [vmem:[#allocation2 + $0x89] sm:$0x7f]  ;;  %v839_v9 = vld [vmem:[#allocation2 + $0x79] sm:$0x7f] }
 0x170   : > { %889 = vst [vmem:[#allocation2 + $0x29] sm:$0x7f] %v859_v27  ;;  %4749 = vmatmul.mubr.bf16.gmra.mrb[124].mxu1 %v5403_v36  ;;  %4797 = vmatmul.mubr.bf16.gmra.mrb[124].mxu0 %v5403_v36 }
 0x171   : > { %887 = vst [vmem:[#allocation2 + $0x19] sm:$0x7f] %v857_v32  ;;  %4752 = vmatprep.mubr.bf16.mxu1 %v4987_v14  ;;  %4800 = vmatprep.mubr.bf16.mxu0 %v4987_v14 }
 0x173   : > { %v4454_v15 = vpop.f32.mrb[20].mxu1  ;;  %v5526_v20 = vpop.f32.mrb[20].mxu0 }
 0x174   : > { %v862_v4 = vadd.f32 %v4454_v15, %v832_v18  ;;  %v716_v22 = vpop.f32.mrb[21].mxu1  ;;  %v5528_v26 = vpop.f32.mrb[21].mxu0  ;;  %v4992_v18 = vld [vmem:[%s5336_s26 + $0x68] sm:$0xff]  }
 0x175   : > { %v860_v28 = vadd.f32 %v830_v23, %v716_v22  ;;  %v4455_v30 = vpop.f32.mrb[22].mxu1  ;;  %v4503_v34 = vpop.f32.mrb[22].mxu0  ;;  %v4993_v22 = vld [vmem:[%s5336_s26 + $0x70] sm:$0xff]  }
 0x176   : > { %892 = vst [vmem:[#allocation2 + $0x41] sm:$0xff] %v862_v4  ;;  %v863_v36 = vadd.f32 %v4455_v30, %v833_v31  ;;  %v719_v35 = vpop.f32.mrb[23].mxu1  ;;  %v1034_v5 = vpop.f32.mrb[23].mxu0 }
 0x177   : > { %v1143_v13 = vld [vmem:[#allocation2 + $0x28] sm:$0xff]  ;;  %890 = vst [vmem:[#allocation2 + $0x31] sm:$0xff] %v860_v28  ;;  %v861_v17 = vadd.f32 %v831_v38, %v719_v35 }
 0x178   : > { %v1173_v39 = vadd.f32 %v4499_v8, %v1143_v13  ;;  %v1141_v21 = vld [vmem:[#allocation2 + $0x18] sm:$0xff]  ;;  %893 = vst [vmem:[#allocation2 + $0x49] sm:$0x7f] %v863_v36  ;;  %4753 = vmatmul.mubr.bf16.gmra.mrb[128].mxu1 %v4988_v40  ;;  %4801 = vmatmul.mubr.bf16.gmra.mrb[128].mxu0 %v4988_v40  ;;  %v844_v28 = vld [vmem:[#allocation2 + $0xa1] sm:$0xff]  ;;  %v845_v13 = vld [vmem:[#allocation2 + $0xa9] sm:$0x7f] }
 0x179   : > { %v1171_v25 = vadd.f32 %v1141_v21, %v1018_v12  ;;  %891 = vst [vmem:[#allocation2 + $0x39] sm:$0x7f] %v861_v17  ;;  %4756 = vmatprep.mubr.bf16.mxu1 %v4989_v41  ;;  %4804 = vmatprep.mubr.bf16.mxu0 %v4989_v41  ;;  %v842_v36 = vld [vmem:[#allocation2 + $0x91] sm:$0xff]  ;;  %v843_v40 = vld [vmem:[#allocation2 + $0x99] sm:$0x7f] }
 0x17a   : > { %1203 = vst [vmem:[#allocation2 + $0x28] sm:$0xff] %v1173_v39 }
 0x17b   : > { %1201 = vst [vmem:[#allocation2 + $0x18] sm:$0xff] %v1171_v25  ;;  %v4458_v29 = vpop.f32.mrb[24].mxu1  ;;  %v5532_v42 = vpop.f32.mrb[24].mxu0 }
 0x17c   : > { %v866_v43 = vadd.f32 %v4458_v29, %v836_v33  ;;  %v732_v44 = vpop.f32.mrb[25].mxu1  ;;  %v5534_v46 = vpop.f32.mrb[25].mxu0 }
 0x17d   : > { %v864_v47 = vadd.f32 %v834_v45, %v732_v44  ;;  %v4459_v48 = vpop.f32.mrb[26].mxu1  ;;  %v4507_v49 = vpop.f32.mrb[26].mxu0  ;;  %v4994_v44 = vld [vmem:[%s5336_s26 + $0x78] sm:$0xff]  }
 0x17e   : > { %896 = vst [vmem:[#allocation2 + $0x61] sm:$0xff] %v866_v43  ;;  %v867_v50 = vadd.f32 %v4459_v48, %v837_v37  ;;  %v735_v51 = vpop.f32.mrb[27].mxu1  ;;  %v1050_v53 = vpop.f32.mrb[27].mxu0  ;;  %v848_v48 = vld [vmem:[#allocation2 + $0xc1] sm:$0xff] }
 0x17f   : > { %v1147_v54 = vld [vmem:[#allocation2 + $0x48] sm:$0xff]  ;;  %894 = vst [vmem:[#allocation2 + $0x51] sm:$0xff] %v864_v47  ;;  %v865_v55 = vadd.f32 %v835_v52, %v735_v51  ;;  %v846_v51 = vld [vmem:[#allocation2 + $0xb1] sm:$0xff] }
 0x180   : > { %v1177_v11 = vadd.f32 %v4503_v34, %v1147_v54  ;;  %v1145_v16 = vld [vmem:[#allocation2 + $0x38] sm:$0xff]  ;;  %897 = vst [vmem:[#allocation2 + $0x69] sm:$0x7f] %v867_v50  ;;  %4757 = vmatmul.mubr.bf16.gmra.mrb[132].mxu1 %v4990_v56  ;;  %4805 = vmatmul.mubr.bf16.gmra.mrb[132].mxu0 %v4990_v56 }
 0x181   : > { %v1175_v57 = vadd.f32 %v1145_v16, %v1034_v5  ;;  %895 = vst [vmem:[#allocation2 + $0x59] sm:$0x7f] %v865_v55  ;;  %4760 = vmatprep.mubr.bf16.mxu1 %v4991_v58  ;;  %4808 = vmatprep.mubr.bf16.mxu0 %v4991_v58  ;;  %v849_v55 = vld [vmem:[#allocation2 + $0xc9] sm:$0x7f] }
 0x182   : > { %1207 = vst [vmem:[#allocation2 + $0x48] sm:$0xff] %v1177_v11 }
 0x183   : > { %1205 = vst [vmem:[#allocation2 + $0x38] sm:$0xff] %v1175_v57  ;;  %v4462_v59 = vpop.f32.mrb[28].mxu1  ;;  %v5538_v61 = vpop.f32.mrb[28].mxu0  ;;  %v847_v57 = vld [vmem:[#allocation2 + $0xb9] sm:$0x7f] }
 0x184   : > { %v870_v19 = vadd.f32 %v4462_v59, %v840_v60  ;;  %v748_v24 = vpop.f32.mrb[29].mxu1  ;;  %v5540_v0 = vpop.f32.mrb[29].mxu0 }
 0x185   : > { %v868_v1 = vadd.f32 %v838_v63, %v748_v24  ;;  %v4463_v3 = vpop.f32.mrb[30].mxu1  ;;  %v4511_v7 = vpop.f32.mrb[30].mxu0 }
 0x186   : > { %900 = vst [vmem:[#allocation2 + $0x81] sm:$0xff] %v870_v19  ;;  %v871_v8 = vadd.f32 %v4463_v3, %v841_v6  ;;  %v751_v27 = vpop.f32.mrb[31].mxu1  ;;  %v1066_v10 = vpop.f32.mrb[31].mxu0  ;;  %v852_v3 = vld [vmem:[#allocation2 + $0xe1] sm:$0xff] }
 0x187   : > { %v1151_v12 = vld [vmem:[#allocation2 + $0x68] sm:$0xff]  ;;  %898 = vst [vmem:[#allocation2 + $0x71] sm:$0xff] %v868_v1  ;;  %v869_v32 = vadd.f32 %v839_v9, %v751_v27  ;;  %v850_v27 = vld [vmem:[#allocation2 + $0xd1] sm:$0xff] }
 0x188   : > { %v1181_v14 = vadd.f32 %v4507_v49, %v1151_v12  ;;  %v1149_v15 = vld [vmem:[#allocation2 + $0x58] sm:$0xff]  ;;  %901 = vst [vmem:[#allocation2 + $0x89] sm:$0x7f] %v871_v8  ;;  %4761 = vmatmul.mubr.bf16.gmra.mrb[136].mxu1 %v4992_v18  ;;  %4809 = vmatmul.mubr.bf16.gmra.mrb[136].mxu0 %v4992_v18 }
 0x189   : > { %v1179_v4 = vadd.f32 %v1149_v15, %v1050_v53  ;;  %899 = vst [vmem:[#allocation2 + $0x79] sm:$0x7f] %v869_v32  ;;  %4764 = vmatprep.mubr.bf16.mxu1 %v4993_v22  ;;  %4812 = vmatprep.mubr.bf16.mxu0 %v4993_v22  ;;  %v853_v32 = vld [vmem:[#allocation2 + $0xe9] sm:$0x7f] }
 0x18a   : > { %1211 = vst [vmem:[#allocation2 + $0x68] sm:$0xff] %v1181_v14 }
 0x18b   : > { %1209 = vst [vmem:[#allocation2 + $0x58] sm:$0xff] %v1179_v4  ;;  %v4466_v23 = vpop.f32.mrb[32].mxu1  ;;  %v5544_v30 = vpop.f32.mrb[32].mxu0  ;;  %v851_v4 = vld [vmem:[#allocation2 + $0xd9] sm:$0x7f] }
 0x18c   : > { %v874_v31 = vadd.f32 %v4466_v23, %v844_v28  ;;  %v764_v34 = vpop.f32.mrb[33].mxu1  ;;  %v5546_v35 = vpop.f32.mrb[33].mxu0 }
 0x18d   : > { %v872_v38 = vadd.f32 %v842_v36, %v764_v34  ;;  %v4467_v5 = vpop.f32.mrb[34].mxu1  ;;  %v4515_v17 = vpop.f32.mrb[34].mxu0 }
 0x18e   : > { %904 = vst [vmem:[#allocation2 + $0xa1] sm:$0xff] %v874_v31  ;;  %v875_v39 = vadd.f32 %v4467_v5, %v845_v13  ;;  %v767_v21 = vpop.f32.mrb[35].mxu1  ;;  %v1082_v25 = vpop.f32.mrb[35].mxu0 }
 0x18f   : > { %v1155_v41 = vld [vmem:[#allocation2 + $0x88] sm:$0xff]  ;;  %902 = vst [vmem:[#allocation2 + $0x91] sm:$0xff] %v872_v38  ;;  %v873_v29 = vadd.f32 %v843_v40, %v767_v21 }
 0x190   : > { %v1185_v33 = vadd.f32 %v4511_v7, %v1155_v41  ;;  %v1153_v43 = vld [vmem:[#allocation2 + $0x78] sm:$0xff]  ;;  %905 = vst [vmem:[#allocation2 + $0xa9] sm:$0x7f] %v875_v39  ;;  %4765 = vmatmul.mubr.bf16.gmra.mrb[140].mxu1 %v4994_v44  ;;  %4813 = vmatmul.mubr.bf16.gmra.mrb[140].mxu0 %v4994_v44 }
 0x191   : > { %v1183_v45 = vadd.f32 %v1153_v43, %v1066_v10  ;;  %903 = vst [vmem:[#allocation2 + $0x99] sm:$0x7f] %v873_v29  ;;  %v855_v29 = vld [vmem:[#allocation2 + $0xf9] sm:$0x7f] }
 0x192   : > { %1215 = vst [vmem:[#allocation2 + $0x88] sm:$0xff] %v1185_v33 }
 0x193   : > { %1213 = vst [vmem:[#allocation2 + $0x78] sm:$0xff] %v1183_v45  ;;  %v4470_v47 = vpop.f32.mrb[36].mxu1  ;;  %v5549_v37 = vpop.f32.mrb[36].mxu0 }
 0x194   : > { %v878_v49 = vadd.f32 %v4470_v47, %v848_v48  ;;  %v780_v50 = vpop.f32.mrb[37].mxu1  ;;  %v5551_v52 = vpop.f32.mrb[37].mxu0 }
 0x195   : > { %v876_v53 = vadd.f32 %v846_v51, %v780_v50  ;;  %v4471_v54 = vpop.f32.mrb[38].mxu1  ;;  %v4519_v11 = vpop.f32.mrb[38].mxu0  ;;  %v1142_v51 = vld [vmem:[#allocation2 + $0x20] sm:$0xff] }
 0x196   : > { %908 = vst [vmem:[#allocation2 + $0xc1] sm:$0xff] %v878_v49  ;;  %v879_v16 = vadd.f32 %v4471_v54, %v849_v55  ;;  %v783_v56 = vpop.f32.mrb[39].mxu1  ;;  %v1098_v58 = vpop.f32.mrb[39].mxu0  ;;  %v1876_v55 = vld [vmem:[#allocation2 + $0x1] sm:$0xff] }
 0x197   : > { %v1159_v59 = vld [vmem:[#allocation2 + $0xa8] sm:$0xff]  ;;  %906 = vst [vmem:[#allocation2 + $0xb1] sm:$0xff] %v876_v53  ;;  %v877_v60 = vadd.f32 %v847_v57, %v783_v56 }
 0x198   : > { %v1189_v19 = vadd.f32 %v4515_v17, %v1159_v59  ;;  %v1157_v24 = vld [vmem:[#allocation2 + $0x98] sm:$0xff]  ;;  %909 = vst [vmem:[#allocation2 + $0xc9] sm:$0x7f] %v879_v16 }
 0x199   : > { %v1187_v63 = vadd.f32 %v1157_v24, %v1082_v25  ;;  %907 = vst [vmem:[#allocation2 + $0xb9] sm:$0x7f] %v877_v60  ;;  %v854_v17 = vld [vmem:[#allocation2 + $0xf1] sm:$0xff]  ;;  %v1877_v24 = vld [vmem:[#allocation2 + $0x9] sm:$0x7f] }
 0x19a   : > { %1219 = vst [vmem:[#allocation2 + $0xa8] sm:$0xff] %v1189_v19 }
 0x19b   : > { %1217 = vst [vmem:[#allocation2 + $0x98] sm:$0xff] %v1187_v63  ;;  %v4474_v1 = vpop.f32.mrb[40].mxu1  ;;  %v5553_v6 = vpop.f32.mrb[40].mxu0  ;;  %v1172_v63 = vadd.f32 %v5519_v62, %v1142_v51 }
 0x19c   : > { %v882_v7 = vadd.f32 %v4474_v1, %v852_v3  ;;  %v796_v8 = vpop.f32.mrb[41].mxu1  ;;  %v5555_v9 = vpop.f32.mrb[41].mxu0  ;;  %v1457_v3 = vld [vmem:[#allocation2 + $0x28] sm:$0x7f] }
 0x19d   : > { %v880_v10 = vadd.f32 %v850_v27, %v796_v8  ;;  %v4475_v12 = vpop.f32.mrb[42].mxu1  ;;  %v4523_v14 = vpop.f32.mrb[42].mxu0 }
 0x19e   : > { %912 = vst [vmem:[#allocation2 + $0xe1] sm:$0xff] %v882_v7  ;;  %v883_v15 = vadd.f32 %v4475_v12, %v853_v32  ;;  %v799_v18 = vpop.f32.mrb[43].mxu1  ;;  %v1114_v22 = vpop.f32.mrb[43].mxu0 }
 0x19f   : > { %v1163_v23 = vld [vmem:[#allocation2 + $0xc8] sm:$0xff]  ;;  %910 = vst [vmem:[#allocation2 + $0xd1] sm:$0xff] %v880_v10  ;;  %v881_v28 = vadd.f32 %v851_v4, %v799_v18 }
 0x1a0   : > { %v1193_v31 = vadd.f32 %v4519_v11, %v1163_v23  ;;  %v1161_v34 = vld [vmem:[#allocation2 + $0xb8] sm:$0xff]  ;;  %913 = vst [vmem:[#allocation2 + $0xe9] sm:$0x7f] %v883_v15  ;;  %v1140_v11 = vld [vmem:[#allocation2 + $0x10] sm:$0xff] }
 0x1a1   : > { %v1191_v36 = vadd.f32 %v1161_v34, %v1098_v58  ;;  %911 = vst [vmem:[#allocation2 + $0xd9] sm:$0x7f] %v881_v28  ;;  %v1170_v27 = vadd.f32 %v1140_v11, %v5521_v2  ;;  %v1146_v2 = vld [vmem:[#allocation2 + $0x40] sm:$0xff] }
 0x1a2   : > { %1223 = vst [vmem:[#allocation2 + $0xc8] sm:$0xff] %v1193_v31 }
 0x1a3   : > { %1221 = vst [vmem:[#allocation2 + $0xb8] sm:$0xff] %v1191_v36  ;;  %v4478_v38 = vpop.f32.mrb[44].mxu1  ;;  %v4526_v5 = vpop.f32.mrb[44].mxu0  ;;  %v1144_v36 = vld [vmem:[#allocation2 + $0x30] sm:$0xff] }
 0x1a4   : > { %v812_v13 = vpop.f32.mrb[45].mxu1  ;;  %v5557_v39 = vpop.f32.mrb[45].mxu0 }
 0x1a5   : > { %v884_v21 = vadd.f32 %v854_v17, %v812_v13  ;;  %v4479_v40 = vpop.f32.mrb[46].mxu1  ;;  %v4527_v25 = vpop.f32.mrb[46].mxu0 }
 0x1a6   : > { %v815_v41 = vpop.f32.mrb[47].mxu1  ;;  %v1130_v33 = vpop.f32.mrb[47].mxu0  ;;  %v1176_v25 = vadd.f32 %v5526_v20, %v1146_v2 }
 0x1a7   : > { %v1167_v43 = vld [vmem:[#allocation2 + $0xe8] sm:$0xff]  ;;  %914 = vst [vmem:[#allocation2 + $0xf1] sm:$0xff] %v884_v21  ;;  %v885_v44 = vadd.f32 %v855_v29, %v815_v41 }
 0x1a8   : > { %v1197_v45 = vadd.f32 %v4523_v14, %v1167_v43  ;;  %v1165_v47 = vld [vmem:[#allocation2 + $0xd8] sm:$0xff]  ;;  %v1461_v29 = vld [vmem:[#allocation2 + $0x48] sm:$0x7f]  ;;  %v1174_v43 = vadd.f32 %v1144_v36, %v5528_v26 }
 0x1a9   : > { %v1195_v48 = vadd.f32 %v1165_v47, %v1114_v22  ;;  %915 = vst [vmem:[#allocation2 + $0xf9] sm:$0x7f] %v885_v44  ;;  %v1455_v14 = vld [vmem:[#allocation2 + $0x18] sm:$0x7f] }
 0x1aa   : > { %1227 = vst [vmem:[#allocation2 + $0xe8] sm:$0xff] %v1197_v45  ;;  %v1459_v47 = vld [vmem:[#allocation2 + $0x38] sm:$0x7f] }
 0x1ab   : > { %1225 = vst [vmem:[#allocation2 + $0xd8] sm:$0xff] %v1195_v48  ;;  %v4546_v49 = vpop.f32.mrb[48].mxu1  ;;  %v5559_v50 = vpop.f32.mrb[48].mxu0 }
 0x1ac   : > { %v1329_v53 = vpop.f32.mrb[49].mxu1  ;;  %v1749_v54 = vpop.f32.mrb[49].mxu0  ;;  %v1518_v58 = vrot.slane %v4546_v49, 1 }
 0x1ad   : > { %v1908_v16 = vadd.f32 %v1876_v55, %v1749_v54  ;;  %v4547_v56 = vpop.f32.mrb[50].mxu1  ;;  %v4595_v57 = vpop.f32.mrb[50].mxu0  ;;  %v1515_v1 = vrot.slane %v1329_v53, 1 }
 0x1ae   : > { %v1519_v59 = vrot.slane %v4547_v56, 1  ;;  %v1332_v60 = vpop.f32.mrb[51].mxu1  ;;  %v1752_v19 = vpop.f32.mrb[51].mxu0 }
 0x1af   : > { %1940 = vst [vmem:[#allocation2 + $0x1] sm:$0xff] %v1908_v16  ;;  %v1516_v7 = vrot.slane %v1332_v60, 1  ;;  %v1909_v8 = vadd.f32 %v1877_v24, %v1752_v19  ;;  %v1150_v60 = vld [vmem:[#allocation2 + $0x60] sm:$0xff] }
 0x1b0   : > { %v1169_v10 = vld [vmem:[#allocation2 + $0xf8] sm:$0xff]  ;;  %v1520_v12 = vsel %vm1514_vm0, %v1518_v58, %v1519_v59  ;;  %v1593_v32 = vadd.f32 %v1519_v59, %v1457_v3 }
 0x1b1   : > { %v1199_v15 = vadd.f32 %v1169_v10, %v1130_v33  ;;  %v1592_v18 = vadd.f32 %v1520_v12, %v1172_v63  ;;  %v1517_v4 = vsel %vm1514_vm0, %v1515_v1, %v1516_v7  ;;  %v1591_v22 = vadd.f32 %v1516_v7, %v1455_v14  ;;  %1941 = vst [vmem:[#allocation2 + $0x9] sm:$0x7f] %v1909_v8  ;;  %v1148_v1 = vld [vmem:[#allocation2 + $0x50] sm:$0xff]  ;;  %v1465_v14 = vld [vmem:[#allocation2 + $0x68] sm:$0x7f] }
 0x1b2   : > { %1623 = vst [vmem:[#allocation2 + $0x28] sm:$0x7f] %v1593_v32  ;;  %v1590_v62 = vadd.f32 %v1517_v4, %v1170_v27  ;;  %v1180_v12 = vadd.f32 %v5532_v42, %v1150_v60 }
 0x1b3   : > { %1229 = vst [vmem:[#allocation2 + $0xf8] sm:$0xff] %v1199_v15  ;;  %1622 = vst [vmem:[#allocation2 + $0x20] sm:$0xff] %v1592_v18  ;;  %v4550_v23 = vpop.f32.mrb[52].mxu1  ;;  %v5565_v28 = vpop.f32.mrb[52].mxu0  ;;  %v1178_v18 = vadd.f32 %v1148_v1, %v5534_v46 }
 0x1b4   : > { %1621 = vst [vmem:[#allocation2 + $0x18] sm:$0x7f] %v1591_v22  ;;  %1620 = vst [vmem:[#allocation2 + $0x10] sm:$0xff] %v1590_v62  ;;  %v1345_v31 = vpop.f32.mrb[53].mxu1  ;;  %v1765_v34 = vpop.f32.mrb[53].mxu0  ;;  %v1524_v13 = vrot.slane %v4550_v23, 1 }
 0x1b5   : > { %v4551_v38 = vpop.f32.mrb[54].mxu1  ;;  %v5567_v5 = vpop.f32.mrb[54].mxu0  ;;  %v1521_v41 = vrot.slane %v1345_v31, 1  ;;  %v1463_v22 = vld [vmem:[#allocation2 + $0x58] sm:$0x7f] }
 0x1b6   : > { %v1525_v17 = vrot.slane %v4551_v38, 1  ;;  %v1348_v21 = vpop.f32.mrb[55].mxu1  ;;  %v1768_v40 = vpop.f32.mrb[55].mxu0 }
 0x1b7   : > { %v1522_v33 = vrot.slane %v1348_v21, 1 }
 0x1b8   : > { %v1526_v44 = vsel %vm1514_vm0, %v1524_v13, %v1525_v17  ;;  %v1597_v45 = vadd.f32 %v1525_v17, %v1461_v29 }
 0x1b9   : > { %v1596_v48 = vadd.f32 %v1526_v44, %v1176_v25  ;;  %v1523_v49 = vsel %vm1514_vm0, %v1521_v41, %v1522_v33  ;;  %v1595_v51 = vadd.f32 %v1522_v33, %v1459_v47  ;;  %v1881_v53 = vld [vmem:[#allocation2 + $0x29] sm:$0x7f]  ;;  %v1154_v25 = vld [vmem:[#allocation2 + $0x80] sm:$0xff] }
 0x1ba   : > { %1627 = vst [vmem:[#allocation2 + $0x48] sm:$0x7f] %v1597_v45  ;;  %v1594_v55 = vadd.f32 %v1523_v49, %v1174_v43  ;;  %v1880_v11 = vld [vmem:[#allocation2 + $0x21] sm:$0xff]  ;;  %v1913_v16 = vadd.f32 %v1881_v53, %v1768_v40  ;;  %v1152_v43 = vld [vmem:[#allocation2 + $0x70] sm:$0xff] }
 0x1bb   : > { %v1879_v54 = vld [vmem:[#allocation2 + $0x19] sm:$0x7f]  ;;  %1626 = vst [vmem:[#allocation2 + $0x40] sm:$0xff] %v1596_v48  ;;  %1625 = vst [vmem:[#allocation2 + $0x38] sm:$0x7f] %v1595_v51  ;;  %v1912_v56 = vadd.f32 %v1880_v11, %v1765_v34  ;;  %v4554_v58 = vpop.f32.mrb[56].mxu1  ;;  %v1184_v51 = vadd.f32 %v5538_v61, %v1154_v25 }
 0x1bc   : > { %v1911_v20 = vadd.f32 %v4595_v57, %v1879_v54  ;;  %v5573_v26 = vpop.f32.mrb[56].mxu0  ;;  %v1878_v59 = vld [vmem:[#allocation2 + $0x11] sm:$0xff]  ;;  %1624 = vst [vmem:[#allocation2 + $0x30] sm:$0xff] %v1594_v55  ;;  %1945 = vst [vmem:[#allocation2 + $0x29] sm:$0x7f] %v1913_v16  ;;  %v1361_v19 = vpop.f32.mrb[57].mxu1  ;;  %v1182_v55 = vadd.f32 %v1152_v43, %v5540_v0 }
 0x1bd   : > { %v1781_v24 = vpop.f32.mrb[57].mxu0  ;;  %v1910_v63 = vadd.f32 %v5559_v50, %v1878_v59  ;;  %1944 = vst [vmem:[#allocation2 + $0x21] sm:$0xff] %v1912_v56  ;;  %v4555_v3 = vpop.f32.mrb[58].mxu1  ;;  %v1530_v57 = vrot.slane %v4554_v58, 1  ;;  %v1527_v32 = vrot.slane %v1361_v19, 1 }
 0x1be   : > { %1943 = vst [vmem:[#allocation2 + $0x19] sm:$0x7f] %v1911_v20  ;;  %v5576_v7 = vpop.f32.mrb[58].mxu0  ;;  %v1531_v8 = vrot.slane %v4555_v3, 1  ;;  %v1364_v27 = vpop.f32.mrb[59].mxu1 }
 0x1bf   : > { %v1784_v10 = vpop.f32.mrb[59].mxu0  ;;  %1942 = vst [vmem:[#allocation2 + $0x11] sm:$0xff] %v1910_v63  ;;  %v1528_v15 = vrot.slane %v1364_v27, 1  ;;  %v1469_v54 = vld [vmem:[#allocation2 + $0x88] sm:$0x7f]  ;;  %v1158_v27 = vld [vmem:[#allocation2 + $0xa0] sm:$0xff] }
 0x1c0   : > { %v1532_v50 = vsel %vm1514_vm0, %v1530_v57, %v1531_v8  ;;  %v1601_v4 = vadd.f32 %v1531_v8, %v1465_v14  ;;  %v1467_v20 = vld [vmem:[#allocation2 + $0x78] sm:$0x7f]  ;;  %v1156_v14 = vld [vmem:[#allocation2 + $0x90] sm:$0xff] }
 0x1c1   : > { %v1600_v62 = vadd.f32 %v1532_v50, %v1180_v12  ;;  %v1529_v23 = vsel %vm1514_vm0, %v1527_v32, %v1528_v15  ;;  %v1599_v2 = vadd.f32 %v1528_v15, %v1463_v22  ;;  %v1885_v31 = vld [vmem:[#allocation2 + $0x49] sm:$0x7f] }
 0x1c2   : > { %v1883_v34 = vld [vmem:[#allocation2 + $0x39] sm:$0x7f]  ;;  %1631 = vst [vmem:[#allocation2 + $0x68] sm:$0x7f] %v1601_v4  ;;  %v1598_v36 = vadd.f32 %v1529_v23, %v1178_v18  ;;  %v1884_v38 = vld [vmem:[#allocation2 + $0x41] sm:$0xff]  ;;  %v1917_v13 = vadd.f32 %v1885_v31, %v1784_v10  ;;  %v1186_v31 = vadd.f32 %v1156_v14, %v5546_v35 }
 0x1c3   : > { %v1882_v42 = vld [vmem:[#allocation2 + $0x31] sm:$0xff]  ;;  %v1915_v17 = vadd.f32 %v5567_v5, %v1883_v34  ;;  %1630 = vst [vmem:[#allocation2 + $0x60] sm:$0xff] %v1600_v62  ;;  %1629 = vst [vmem:[#allocation2 + $0x58] sm:$0x7f] %v1599_v2  ;;  %v1916_v46 = vadd.f32 %v1884_v38, %v1781_v24  ;;  %v4558_v21 = vpop.f32.mrb[60].mxu1  ;;  %v5583_v40 = vpop.f32.mrb[60].mxu0  ;;  %v1188_v62 = vadd.f32 %v5544_v30, %v1158_v27 }
 0x1c4   : > { %v1914_v41 = vadd.f32 %v5565_v28, %v1882_v42  ;;  %1628 = vst [vmem:[#allocation2 + $0x50] sm:$0xff] %v1598_v36  ;;  %1949 = vst [vmem:[#allocation2 + $0x49] sm:$0x7f] %v1917_v13  ;;  %v1377_v29 = vpop.f32.mrb[61].mxu1  ;;  %v1797_v33 = vpop.f32.mrb[61].mxu0  ;;  %v1536_v5 = vrot.slane %v4558_v21, 1 }
 0x1c5   : > { %1947 = vst [vmem:[#allocation2 + $0x39] sm:$0x7f] %v1915_v17  ;;  %1948 = vst [vmem:[#allocation2 + $0x41] sm:$0xff] %v1916_v46  ;;  %v4559_v44 = vpop.f32.mrb[62].mxu1  ;;  %v5586_v45 = vpop.f32.mrb[62].mxu0  ;;  %v1533_v53 = vrot.slane %v1377_v29, 1 }
 0x1c6   : > { %1946 = vst [vmem:[#allocation2 + $0x31] sm:$0xff] %v1914_v41  ;;  %v1537_v47 = vrot.slane %v4559_v44, 1  ;;  %v1380_v48 = vpop.f32.mrb[63].mxu1  ;;  %v1800_v49 = vpop.f32.mrb[63].mxu0  ;;  %v1473_v2 = vld [vmem:[#allocation2 + $0xa8] sm:$0x7f] }
 0x1c7   : > { %v1534_v28 = vrot.slane %v1380_v48, 1  ;;  %v1471_v38 = vld [vmem:[#allocation2 + $0x98] sm:$0x7f]  ;;  %v1166_v14 = vld [vmem:[#allocation2 + $0xe0] sm:$0xff] }
 0x1c8   : > { %v1538_v11 = vsel %vm1514_vm0, %v1536_v5, %v1537_v47  ;;  %v1605_v16 = vadd.f32 %v1537_v47, %v1469_v54  ;;  %v1162_v5 = vld [vmem:[#allocation2 + $0xc0] sm:$0xff] }
 0x1c9   : > { %v1604_v56 = vadd.f32 %v1538_v11, %v1184_v51  ;;  %v1535_v58 = vsel %vm1514_vm0, %v1533_v53, %v1534_v28  ;;  %v1603_v59 = vadd.f32 %v1534_v28, %v1467_v20  ;;  %v1889_v60 = vld [vmem:[#allocation2 + $0x69] sm:$0x7f]  ;;  %v1160_v51 = vld [vmem:[#allocation2 + $0xb0] sm:$0xff] }
 0x1ca   : > { %v1887_v19 = vld [vmem:[#allocation2 + $0x59] sm:$0x7f]  ;;  %1635 = vst [vmem:[#allocation2 + $0x88] sm:$0x7f] %v1605_v16  ;;  %v1602_v24 = vadd.f32 %v1535_v58, %v1182_v55  ;;  %v1888_v63 = vld [vmem:[#allocation2 + $0x61] sm:$0xff]  ;;  %v1921_v1 = vadd.f32 %v1889_v60, %v1800_v49  ;;  %v1192_v16 = vadd.f32 %v5549_v37, %v1162_v5  ;;  %v1190_v58 = vadd.f32 %v1160_v51, %v5551_v52 }
 0x1cb   : > { %v1886_v61 = vld [vmem:[#allocation2 + $0x51] sm:$0xff]  ;;  %v1919_v3 = vadd.f32 %v5576_v7, %v1887_v19  ;;  %1634 = vst [vmem:[#allocation2 + $0x80] sm:$0xff] %v1604_v56  ;;  %1633 = vst [vmem:[#allocation2 + $0x78] sm:$0x7f] %v1603_v59  ;;  %v1920_v0 = vadd.f32 %v1888_v63, %v1797_v33  ;;  %v4562_v57 = vpop.f32.mrb[64].mxu1  ;;  %v5593_v8 = vpop.f32.mrb[64].mxu0 }
 0x1cc   : > { %v1918_v10 = vadd.f32 %v5573_v26, %v1886_v61  ;;  %1632 = vst [vmem:[#allocation2 + $0x70] sm:$0xff] %v1602_v24  ;;  %1953 = vst [vmem:[#allocation2 + $0x69] sm:$0x7f] %v1921_v1  ;;  %v1393_v12 = vpop.f32.mrb[65].mxu1  ;;  %v1813_v32 = vpop.f32.mrb[65].mxu0  ;;  %v1542_v7 = vrot.slane %v4562_v57, 1 }
 0x1cd   : > { %1951 = vst [vmem:[#allocation2 + $0x59] sm:$0x7f] %v1919_v3  ;;  %1952 = vst [vmem:[#allocation2 + $0x61] sm:$0xff] %v1920_v0  ;;  %v4563_v15 = vpop.f32.mrb[66].mxu1  ;;  %v5596_v18 = vpop.f32.mrb[66].mxu0  ;;  %v1539_v23 = vrot.slane %v1393_v12, 1 }
 0x1ce   : > { %1950 = vst [vmem:[#allocation2 + $0x51] sm:$0xff] %v1918_v10  ;;  %v1543_v50 = vrot.slane %v4563_v15, 1  ;;  %v1396_v4 = vpop.f32.mrb[67].mxu1  ;;  %v1816_v22 = vpop.f32.mrb[67].mxu0  ;;  %v1477_v56 = vld [vmem:[#allocation2 + $0xc8] sm:$0x7f] }
 0x1cf   : > { %v1540_v26 = vrot.slane %v1396_v4, 1  ;;  %v1475_v19 = vld [vmem:[#allocation2 + $0xb8] sm:$0x7f]  ;;  %v1164_v4 = vld [vmem:[#allocation2 + $0xd0] sm:$0xff] }
 0x1d0   : > { %v1544_v34 = vsel %vm1514_vm0, %v1542_v7, %v1543_v50  ;;  %v1609_v36 = vadd.f32 %v1543_v50, %v1473_v2 }
 0x1d1   : > { %v1608_v13 = vadd.f32 %v1544_v34, %v1188_v62  ;;  %v1541_v42 = vsel %vm1514_vm0, %v1539_v23, %v1540_v26  ;;  %v1607_v17 = vadd.f32 %v1540_v26, %v1471_v38  ;;  %v1893_v46 = vld [vmem:[#allocation2 + $0x89] sm:$0x7f] }
 0x1d2   : > { %v1891_v21 = vld [vmem:[#allocation2 + $0x79] sm:$0x7f]  ;;  %1639 = vst [vmem:[#allocation2 + $0xa8] sm:$0x7f] %v1609_v36  ;;  %v1606_v25 = vadd.f32 %v1541_v42, %v1186_v31  ;;  %v1892_v41 = vld [vmem:[#allocation2 + $0x81] sm:$0xff]  ;;  %v1925_v29 = vadd.f32 %v1893_v46, %v1816_v22  ;;  %v1196_v31 = vadd.f32 %v5553_v6, %v1166_v14 }
 0x1d3   : > { %v1890_v30 = vld [vmem:[#allocation2 + $0x71] sm:$0xff]  ;;  %v1923_v33 = vadd.f32 %v5586_v45, %v1891_v21  ;;  %1638 = vst [vmem:[#allocation2 + $0xa0] sm:$0xff] %v1608_v13  ;;  %1637 = vst [vmem:[#allocation2 + $0x98] sm:$0x7f] %v1607_v17  ;;  %v1924_v35 = vadd.f32 %v1892_v41, %v1813_v32  ;;  %v4566_v43 = vpop.f32.mrb[68].mxu1  ;;  %v5603_v44 = vpop.f32.mrb[68].mxu0 }
 0x1d4   : > { %v1922_v47 = vadd.f32 %v5583_v40, %v1890_v30  ;;  %1636 = vst [vmem:[#allocation2 + $0x90] sm:$0xff] %v1606_v25  ;;  %1957 = vst [vmem:[#allocation2 + $0x89] sm:$0x7f] %v1925_v29  ;;  %v1409_v48 = vpop.f32.mrb[69].mxu1  ;;  %v1829_v49 = vpop.f32.mrb[69].mxu0  ;;  %v1548_v45 = vrot.slane %v4566_v43, 1 }
 0x1d5   : > { %1955 = vst [vmem:[#allocation2 + $0x79] sm:$0x7f] %v1923_v33  ;;  %1956 = vst [vmem:[#allocation2 + $0x81] sm:$0xff] %v1924_v35  ;;  %v4567_v53 = vpop.f32.mrb[70].mxu1  ;;  %v5606_v54 = vpop.f32.mrb[70].mxu0  ;;  %v1545_v20 = vrot.slane %v1409_v48, 1 }
 0x1d6   : > { %1954 = vst [vmem:[#allocation2 + $0x71] sm:$0xff] %v1922_v47  ;;  %v1549_v28 = vrot.slane %v4567_v53, 1  ;;  %v1412_v55 = vpop.f32.mrb[71].mxu1  ;;  %v1832_v11 = vpop.f32.mrb[71].mxu0  ;;  %v1481_v36 = vld [vmem:[#allocation2 + $0xe8] sm:$0x7f] }
 0x1d7   : > { %v1546_v40 = vrot.slane %v1412_v55, 1  ;;  %v1479_v17 = vld [vmem:[#allocation2 + $0xd8] sm:$0x7f]  ;;  %v1168_v53 = vld [vmem:[#allocation2 + $0xf0] sm:$0xff] }
 0x1d8   : > { %v1550_v59 = vsel %vm1514_vm0, %v1548_v45, %v1549_v28  ;;  %v1613_v60 = vadd.f32 %v1549_v28, %v1477_v56  ;;  %v1483_v56 = vld [vmem:[#allocation2 + $0xf8] sm:$0x7f] }
 0x1d9   : > { %v1612_v24 = vadd.f32 %v1550_v59, %v1192_v16  ;;  %v1547_v63 = vsel %vm1514_vm0, %v1545_v20, %v1546_v40  ;;  %v1611_v1 = vadd.f32 %v1546_v40, %v1475_v19  ;;  %v1897_v61 = vld [vmem:[#allocation2 + $0xa9] sm:$0x7f]  ;;  %v1198_v20 = vadd.f32 %v1168_v53, %v5557_v39  ;;  %v2202_v53 = vld [vmem:[#allocation2 + $0x20] sm:$0xff] }
 0x1da   : > { %v1895_v3 = vld [vmem:[#allocation2 + $0x99] sm:$0x7f]  ;;  %1643 = vst [vmem:[#allocation2 + $0xc8] sm:$0x7f] %v1613_v60  ;;  %v1610_v0 = vadd.f32 %v1547_v63, %v1190_v58  ;;  %v1896_v57 = vld [vmem:[#allocation2 + $0xa1] sm:$0xff]  ;;  %v1929_v27 = vadd.f32 %v1897_v61, %v1832_v11 }
 0x1db   : > { %v1894_v37 = vld [vmem:[#allocation2 + $0x91] sm:$0xff]  ;;  %v1927_v10 = vadd.f32 %v5596_v18, %v1895_v3  ;;  %1642 = vst [vmem:[#allocation2 + $0xc0] sm:$0xff] %v1612_v24  ;;  %1641 = vst [vmem:[#allocation2 + $0xb8] sm:$0x7f] %v1611_v1  ;;  %v1928_v52 = vadd.f32 %v1896_v57, %v1829_v49  ;;  %v4570_v12 = vpop.f32.mrb[72].mxu1  ;;  %v5613_v32 = vpop.f32.mrb[72].mxu0 }
 0x1dc   : > { %v1926_v15 = vadd.f32 %v5593_v8, %v1894_v37  ;;  %1640 = vst [vmem:[#allocation2 + $0xb0] sm:$0xff] %v1610_v0  ;;  %1961 = vst [vmem:[#allocation2 + $0xa9] sm:$0x7f] %v1929_v27  ;;  %v1425_v7 = vpop.f32.mrb[73].mxu1  ;;  %v1845_v50 = vpop.f32.mrb[73].mxu0  ;;  %v1554_v18 = vrot.slane %v4570_v12, 1  ;;  %v1194_v8 = vadd.f32 %v1164_v4, %v5555_v9 }
 0x1dd   : > { %1959 = vst [vmem:[#allocation2 + $0x99] sm:$0x7f] %v1927_v10  ;;  %1960 = vst [vmem:[#allocation2 + $0xa1] sm:$0xff] %v1928_v52  ;;  %v4571_v22 = vpop.f32.mrb[74].mxu1  ;;  %v4619_v62 = vpop.f32.mrb[74].mxu0  ;;  %v1551_v34 = vrot.slane %v1425_v7, 1 }
 0x1de   : > { %1958 = vst [vmem:[#allocation2 + $0x91] sm:$0xff] %v1926_v15  ;;  %v1555_v23 = vrot.slane %v4571_v22, 1  ;;  %v1428_v2 = vpop.f32.mrb[75].mxu1  ;;  %v1848_v26 = vpop.f32.mrb[75].mxu0  ;;  %v2200_v22 = vld [vmem:[#allocation2 + $0x10] sm:$0xff] }
 0x1df   : > { %v1552_v38 = vrot.slane %v1428_v2, 1  ;;  %v2198_v2 = vld [vmem:[#allocation2] sm:$0xff] }
 0x1e0   : > { %v1556_v13 = vsel %vm1514_vm0, %v1554_v18, %v1555_v23  ;;  %v1617_v42 = vadd.f32 %v1555_v23, %v1481_v36  ;;  %v2199_v18 = vld [vmem:[#allocation2 + $0x8] sm:$0x7f] }
 0x1e1   : > { %v1616_v46 = vadd.f32 %v1556_v13, %v1196_v31  ;;  %v1553_v21 = vsel %vm1514_vm0, %v1551_v34, %v1552_v38  ;;  %v1615_v25 = vadd.f32 %v1552_v38, %v1479_v17  ;;  %v1901_v41 = vld [vmem:[#allocation2 + $0xc9] sm:$0x7f] }
 0x1e2   : > { %v1899_v29 = vld [vmem:[#allocation2 + $0xb9] sm:$0x7f]  ;;  %1647 = vst [vmem:[#allocation2 + $0xe8] sm:$0x7f] %v1617_v42  ;;  %v1614_v30 = vadd.f32 %v1553_v21, %v1194_v8  ;;  %v1900_v33 = vld [vmem:[#allocation2 + $0xc1] sm:$0xff]  ;;  %v1933_v35 = vadd.f32 %v1901_v41, %v1848_v26 }
 0x1e3   : > { %v1898_v6 = vld [vmem:[#allocation2 + $0xb1] sm:$0xff]  ;;  %v1931_v43 = vadd.f32 %v5606_v54, %v1899_v29  ;;  %1646 = vst [vmem:[#allocation2 + $0xe0] sm:$0xff] %v1616_v46  ;;  %1645 = vst [vmem:[#allocation2 + $0xd8] sm:$0x7f] %v1615_v25  ;;  %v1932_v9 = vadd.f32 %v1900_v33, %v1845_v50  ;;  %v4574_v5 = vpop.f32.mrb[76].mxu1  ;;  %v5621_v47 = vpop.f32.mrb[76].mxu0 }
 0x1e4   : > { %v1930_v48 = vadd.f32 %v5603_v44, %v1898_v6  ;;  %1644 = vst [vmem:[#allocation2 + $0xd0] sm:$0xff] %v1614_v30  ;;  %1965 = vst [vmem:[#allocation2 + $0xc9] sm:$0x7f] %v1933_v35  ;;  %v1441_v49 = vpop.f32.mrb[77].mxu1  ;;  %v1861_v51 = vpop.f32.mrb[77].mxu0  ;;  %v2204_v5 = vld [vmem:[#allocation2 + $0x30] sm:$0xff] }
 0x1e5   : > { %1963 = vst [vmem:[#allocation2 + $0xb9] sm:$0x7f] %v1931_v43  ;;  %1964 = vst [vmem:[#allocation2 + $0xc1] sm:$0xff] %v1932_v9  ;;  %v4575_v45 = vpop.f32.mrb[78].mxu1  ;;  %v4623_v28 = vpop.f32.mrb[78].mxu0  ;;  %v1557_v11 = vrot.slane %v1441_v49, 1 }
 0x1e6   : > { %1962 = vst [vmem:[#allocation2 + $0xb1] sm:$0xff] %v1930_v48  ;;  %v1444_v55 = vpop.f32.mrb[79].mxu1  ;;  %v1864_v54 = vpop.f32.mrb[79].mxu0  ;;  %v2201_v50 = vld [vmem:[#allocation2 + $0x18] sm:$0x7f] }
 0x1e7   : > { %v1558_v16 = vrot.slane %v1444_v55, 1  ;;  %v2205_v43 = vld [vmem:[#allocation2 + $0x38] sm:$0x7f] }
 0x1e9   : > { %v1559_v40 = vsel %vm1514_vm0, %v1557_v11, %v1558_v16  ;;  %v1619_v44 = vadd.f32 %v1558_v16, %v1483_v56  ;;  %v1905_v58 = vld [vmem:[#allocation2 + $0xe9] sm:$0x7f] }
 0x1ea   : > { %v1903_v59 = vld [vmem:[#allocation2 + $0xd9] sm:$0x7f]  ;;  %v1618_v60 = vadd.f32 %v1559_v40, %v1198_v20  ;;  %v1904_v19 = vld [vmem:[#allocation2 + $0xe1] sm:$0xff]  ;;  %v1937_v24 = vadd.f32 %v1905_v58, %v1864_v54 }
 0x1eb   : > { %v1902_v63 = vld [vmem:[#allocation2 + $0xd1] sm:$0xff]  ;;  %v1935_v1 = vadd.f32 %v4619_v62, %v1903_v59  ;;  %1649 = vst [vmem:[#allocation2 + $0xf8] sm:$0x7f] %v1619_v44  ;;  %v1936_v61 = vadd.f32 %v1904_v19, %v1861_v51  ;;  %v4642_v3 = vpop.f32.mrb[80].mxu1  ;;  %v5626_v0 = vpop.f32.mrb[80].mxu0 }
 0x1ec   : > { %v1934_v57 = vadd.f32 %v5613_v32, %v1902_v63  ;;  %1648 = vst [vmem:[#allocation2 + $0xf0] sm:$0xff] %v1618_v60  ;;  %1969 = vst [vmem:[#allocation2 + $0xe9] sm:$0x7f] %v1937_v24  ;;  %v2071_v39 = vpop.f32.mrb[81].mxu1  ;;  %v2505_v27 = vpop.f32.mrb[81].mxu0  ;;  %v2265_v52 = vrot.slane %v4642_v3, 1 }
 0x1ed   : > { %1967 = vst [vmem:[#allocation2 + $0xd9] sm:$0x7f] %v1935_v1  ;;  %1968 = vst [vmem:[#allocation2 + $0xe1] sm:$0xff] %v1936_v61  ;;  %v4643_v37 = vpop.f32.mrb[82].mxu1  ;;  %v4691_v10 = vpop.f32.mrb[82].mxu0  ;;  %v2262_v7 = vrot.slane %v2071_v39, 1 }
 0x1ee   : > { %1966 = vst [vmem:[#allocation2 + $0xd1] sm:$0xff] %v1934_v57  ;;  %v2266_v12 = vrot.slane %v4643_v37, 1  ;;  %v2074_v14 = vpop.f32.mrb[83].mxu1  ;;  %v2507_v15 = vpop.f32.mrb[83].mxu0  ;;  %v2203_v51 = vld [vmem:[#allocation2 + $0x28] sm:$0x7f] }
 0x1ef   : > { %v2263_v4 = vrot.slane %v2074_v14, 1  ;;  %v2209_v37 = vld [vmem:[#allocation2 + $0x58] sm:$0x7f]  ;;  %v2207_v14 = vld [vmem:[#allocation2 + $0x48] sm:$0x7f] }
 0x1f0   : > { %v2267_v62 = vsel %vm1514_vm0, %v2265_v52, %v2266_v12  ;;  %v2345_v32 = vadd.f32 %v2266_v12, %v2201_v50  ;;  %v2208_v52 = vld [vmem:[#allocation2 + $0x50] sm:$0xff] }
 0x1f1   : > { %v2344_v23 = vadd.f32 %v2267_v62, %v2200_v22  ;;  %v2264_v26 = vsel %vm1514_vm0, %v2262_v7, %v2263_v4  ;;  %v2343_v31 = vadd.f32 %v2263_v4, %v2199_v18  ;;  %v2206_v7 = vld [vmem:[#allocation2 + $0x40] sm:$0xff] }
 0x1f2   : > { %v1907_v34 = vld [vmem:[#allocation2 + $0xf9] sm:$0x7f]  ;;  %2377 = vst [vmem:[#allocation2 + $0x18] sm:$0x7f] %v2345_v32  ;;  %v2342_v36 = vadd.f32 %v2264_v26, %v2198_v2 }
 0x1f3   : > { %v1906_v38 = vld [vmem:[#allocation2 + $0xf1] sm:$0xff]  ;;  %v1939_v8 = vadd.f32 %v4623_v28, %v1907_v34  ;;  %2376 = vst [vmem:[#allocation2 + $0x10] sm:$0xff] %v2344_v23  ;;  %2375 = vst [vmem:[#allocation2 + $0x8] sm:$0x7f] %v2343_v31  ;;  %v4646_v13 = vpop.f32.mrb[84].mxu1  ;;  %v5631_v42 = vpop.f32.mrb[84].mxu0 }
 0x1f4   : > { %v1938_v17 = vadd.f32 %v5621_v47, %v1906_v38  ;;  %2374 = vst [vmem:[#allocation2] sm:$0xff] %v2342_v36  ;;  %v2087_v46 = vpop.f32.mrb[85].mxu1  ;;  %v2519_v21 = vpop.f32.mrb[85].mxu0  ;;  %v2271_v29 = vrot.slane %v4646_v13, 1 }
 0x1f5   : > { %1971 = vst [vmem:[#allocation2 + $0xf9] sm:$0x7f] %v1939_v8  ;;  %v4647_v25 = vpop.f32.mrb[86].mxu1  ;;  %v4695_v41 = vpop.f32.mrb[86].mxu0  ;;  %v2268_v6 = vrot.slane %v2087_v46, 1 }
 0x1f6   : > { %1970 = vst [vmem:[#allocation2 + $0xf1] sm:$0xff] %v1938_v17  ;;  %v2272_v30 = vrot.slane %v4647_v25, 1  ;;  %v2090_v33 = vpop.f32.mrb[87].mxu1  ;;  %v2522_v35 = vpop.f32.mrb[87].mxu0 }
 0x1f7   : > { %v2269_v9 = vrot.slane %v2090_v33, 1  ;;  %v2213_v33 = vld [vmem:[#allocation2 + $0x78] sm:$0x7f] }
 0x1f8   : > { %v2273_v48 = vsel %vm1514_vm0, %v2271_v29, %v2272_v30  ;;  %v2349_v49 = vadd.f32 %v2272_v30, %v2205_v43 }
 0x1f9   : > { %v2348_v47 = vadd.f32 %v2273_v48, %v2204_v5  ;;  %v2270_v45 = vsel %vm1514_vm0, %v2268_v6, %v2269_v9  ;;  %v2347_v28 = vadd.f32 %v2269_v9, %v2203_v51  ;;  %v2633_v55 = vld [vmem:[#allocation2 + $0x19] sm:$0x7f]  ;;  %v2212_v6 = vld [vmem:[#allocation2 + $0x70] sm:$0xff]  ;;  %v2211_v9 = vld [vmem:[#allocation2 + $0x68] sm:$0x7f] }
 0x1fa   : > { %v2631_v54 = vld [vmem:[#allocation2 + $0x9] sm:$0x7f]  ;;  %2381 = vst [vmem:[#allocation2 + $0x38] sm:$0x7f] %v2349_v49  ;;  %v2346_v11 = vadd.f32 %v2270_v45, %v2202_v53  ;;  %v2632_v16 = vld [vmem:[#allocation2 + $0x11] sm:$0xff]  ;;  %v2663_v20 = vadd.f32 %v2633_v55, %v2522_v35  ;;  %v2210_v48 = vld [vmem:[#allocation2 + $0x60] sm:$0xff] }
 0x1fb   : > { %v2630_v56 = vld [vmem:[#allocation2 + $0x1] sm:$0xff]  ;;  %v2661_v40 = vadd.f32 %v4691_v10, %v2631_v54  ;;  %2380 = vst [vmem:[#allocation2 + $0x30] sm:$0xff] %v2348_v47  ;;  %2379 = vst [vmem:[#allocation2 + $0x28] sm:$0x7f] %v2347_v28  ;;  %v2662_v44 = vadd.f32 %v2632_v16, %v2519_v21  ;;  %v4650_v58 = vpop.f32.mrb[88].mxu1  ;;  %v5636_v59 = vpop.f32.mrb[88].mxu0 }
 0x1fc   : > { %v2660_v60 = vadd.f32 %v5626_v0, %v2630_v56  ;;  %2378 = vst [vmem:[#allocation2 + $0x20] sm:$0xff] %v2346_v11  ;;  %2693 = vst [vmem:[#allocation2 + $0x19] sm:$0x7f] %v2663_v20  ;;  %v2103_v19 = vpop.f32.mrb[89].mxu1  ;;  %v2535_v24 = vpop.f32.mrb[89].mxu0  ;;  %v2277_v61 = vrot.slane %v4650_v58, 1 }
 0x1fd   : > { %2691 = vst [vmem:[#allocation2 + $0x9] sm:$0x7f] %v2661_v40  ;;  %2692 = vst [vmem:[#allocation2 + $0x11] sm:$0xff] %v2662_v44  ;;  %v4651_v63 = vpop.f32.mrb[90].mxu1  ;;  %v4699_v1 = vpop.f32.mrb[90].mxu0  ;;  %v2274_v27 = vrot.slane %v2103_v19, 1 }
 0x1fe   : > { %2690 = vst [vmem:[#allocation2 + $0x1] sm:$0xff] %v2660_v60  ;;  %v2278_v3 = vrot.slane %v4651_v63, 1  ;;  %v2106_v57 = vpop.f32.mrb[91].mxu1  ;;  %v2538_v39 = vpop.f32.mrb[91].mxu0 }
 0x1ff   : > { %v2275_v10 = vrot.slane %v2106_v57, 1  ;;  %v2217_v57 = vld [vmem:[#allocation2 + $0x98] sm:$0x7f] }
 0x200   : > { %v2279_v12 = vsel %vm1514_vm0, %v2277_v61, %v2278_v3  ;;  %v2353_v0 = vadd.f32 %v2278_v3, %v2209_v37 }
 0x201   : > { %v2352_v15 = vadd.f32 %v2279_v12, %v2208_v52  ;;  %v2276_v50 = vsel %vm1514_vm0, %v2274_v27, %v2275_v10  ;;  %v2351_v4 = vadd.f32 %v2275_v10, %v2207_v14  ;;  %v2637_v22 = vld [vmem:[#allocation2 + $0x39] sm:$0x7f]  ;;  %v2216_v27 = vld [vmem:[#allocation2 + $0x90] sm:$0xff]  ;;  %v2215_v10 = vld [vmem:[#allocation2 + $0x88] sm:$0x7f] }
 0x202   : > { %v2635_v62 = vld [vmem:[#allocation2 + $0x29] sm:$0x7f]  ;;  %2385 = vst [vmem:[#allocation2 + $0x58] sm:$0x7f] %v2353_v0  ;;  %v2350_v32 = vadd.f32 %v2276_v50, %v2206_v7  ;;  %v2636_v18 = vld [vmem:[#allocation2 + $0x31] sm:$0xff]  ;;  %v2667_v23 = vadd.f32 %v2637_v22, %v2538_v39  ;;  %v2214_v12 = vld [vmem:[#allocation2 + $0x80] sm:$0xff] }
 0x203   : > { %v2634_v2 = vld [vmem:[#allocation2 + $0x21] sm:$0xff]  ;;  %v2665_v26 = vadd.f32 %v4695_v41, %v2635_v62  ;;  %2384 = vst [vmem:[#allocation2 + $0x50] sm:$0xff] %v2352_v15  ;;  %2383 = vst [vmem:[#allocation2 + $0x48] sm:$0x7f] %v2351_v4  ;;  %v2666_v31 = vadd.f32 %v2636_v18, %v2535_v24  ;;  %v4654_v34 = vpop.f32.mrb[92].mxu1  ;;  %v5641_v36 = vpop.f32.mrb[92].mxu0 }
 0x204   : > { %v2664_v38 = vadd.f32 %v5631_v42, %v2634_v2  ;;  %2382 = vst [vmem:[#allocation2 + $0x40] sm:$0xff] %v2350_v32  ;;  %2697 = vst [vmem:[#allocation2 + $0x39] sm:$0x7f] %v2667_v23  ;;  %v2119_v8 = vpop.f32.mrb[93].mxu1  ;;  %v2551_v13 = vpop.f32.mrb[93].mxu0  ;;  %v2283_v21 = vrot.slane %v4654_v34, 1 }
 0x205   : > { %2695 = vst [vmem:[#allocation2 + $0x29] sm:$0x7f] %v2665_v26  ;;  %2696 = vst [vmem:[#allocation2 + $0x31] sm:$0xff] %v2666_v31  ;;  %v4655_v17 = vpop.f32.mrb[94].mxu1  ;;  %v4703_v46 = vpop.f32.mrb[94].mxu0  ;;  %v2280_v30 = vrot.slane %v2119_v8, 1 }
 0x206   : > { %2694 = vst [vmem:[#allocation2 + $0x21] sm:$0xff] %v2664_v38  ;;  %v2284_v25 = vrot.slane %v4655_v17, 1  ;;  %v2122_v41 = vpop.f32.mrb[95].mxu1  ;;  %v2554_v29 = vpop.f32.mrb[95].mxu0 }
 0x207   : > { %v2281_v35 = vrot.slane %v2122_v41, 1  ;;  %v2221_v41 = vld [vmem:[#allocation2 + $0xb8] sm:$0x7f] }
 0x208   : > { %v2285_v43 = vsel %vm1514_vm0, %v2283_v21, %v2284_v25  ;;  %v2357_v42 = vadd.f32 %v2284_v25, %v2213_v33 }
 0x209   : > { %v2356_v5 = vadd.f32 %v2285_v43, %v2212_v6  ;;  %v2282_v49 = vsel %vm1514_vm0, %v2280_v30, %v2281_v35  ;;  %v2355_v51 = vadd.f32 %v2281_v35, %v2211_v9  ;;  %v2641_v47 = vld [vmem:[#allocation2 + $0x59] sm:$0x7f]  ;;  %v2220_v30 = vld [vmem:[#allocation2 + $0xb0] sm:$0xff]  ;;  %v2219_v35 = vld [vmem:[#allocation2 + $0xa8] sm:$0x7f] }
 0x20a   : > { %v2639_v53 = vld [vmem:[#allocation2 + $0x49] sm:$0x7f]  ;;  %2389 = vst [vmem:[#allocation2 + $0x78] sm:$0x7f] %v2357_v42  ;;  %v2354_v45 = vadd.f32 %v2282_v49, %v2210_v48  ;;  %v2640_v28 = vld [vmem:[#allocation2 + $0x51] sm:$0xff]  ;;  %v2671_v55 = vadd.f32 %v2641_v47, %v2554_v29  ;;  %v2218_v43 = vld [vmem:[#allocation2 + $0xa0] sm:$0xff] }
 0x20b   : > { %v2638_v54 = vld [vmem:[#allocation2 + $0x41] sm:$0xff]  ;;  %v2669_v11 = vadd.f32 %v4699_v1, %v2639_v53  ;;  %2388 = vst [vmem:[#allocation2 + $0x70] sm:$0xff] %v2356_v5  ;;  %2387 = vst [vmem:[#allocation2 + $0x68] sm:$0x7f] %v2355_v51  ;;  %v2670_v16 = vadd.f32 %v2640_v28, %v2551_v13  ;;  %v4658_v20 = vpop.f32.mrb[96].mxu1  ;;  %v5646_v56 = vpop.f32.mrb[96].mxu0 }
 0x20c   : > { %v2668_v40 = vadd.f32 %v5636_v59, %v2638_v54  ;;  %2386 = vst [vmem:[#allocation2 + $0x60] sm:$0xff] %v2354_v45  ;;  %2701 = vst [vmem:[#allocation2 + $0x59] sm:$0x7f] %v2671_v55  ;;  %v2135_v44 = vpop.f32.mrb[97].mxu1  ;;  %v2567_v58 = vpop.f32.mrb[97].mxu0  ;;  %v2289_v24 = vrot.slane %v4658_v20, 1 }
 0x20d   : > { %2699 = vst [vmem:[#allocation2 + $0x49] sm:$0x7f] %v2669_v11  ;;  %2700 = vst [vmem:[#allocation2 + $0x51] sm:$0xff] %v2670_v16  ;;  %v4659_v60 = vpop.f32.mrb[98].mxu1  ;;  %v4707_v19 = vpop.f32.mrb[98].mxu0  ;;  %v2286_v3 = vrot.slane %v2135_v44, 1 }
 0x20e   : > { %2698 = vst [vmem:[#allocation2 + $0x41] sm:$0xff] %v2668_v40  ;;  %v2290_v63 = vrot.slane %v4659_v60, 1  ;;  %v2138_v1 = vpop.f32.mrb[99].mxu1  ;;  %v2570_v61 = vpop.f32.mrb[99].mxu0 }
 0x20f   : > { %v2287_v39 = vrot.slane %v2138_v1, 1  ;;  %v2225_v1 = vld [vmem:[#allocation2 + $0xd8] sm:$0x7f] }
 0x210   : > { %v2291_v37 = vsel %vm1514_vm0, %v2289_v24, %v2290_v63  ;;  %v2361_v59 = vadd.f32 %v2290_v63, %v2217_v57 }
 0x211   : > { %v2360_v52 = vadd.f32 %v2291_v37, %v2216_v27  ;;  %v2288_v0 = vsel %vm1514_vm0, %v2286_v3, %v2287_v39  ;;  %v2359_v14 = vadd.f32 %v2287_v39, %v2215_v10  ;;  %v2645_v15 = vld [vmem:[#allocation2 + $0x79] sm:$0x7f]  ;;  %v2224_v3 = vld [vmem:[#allocation2 + $0xd0] sm:$0xff]  ;;  %v2223_v39 = vld [vmem:[#allocation2 + $0xc8] sm:$0x7f] }
 0x212   : > { %v2643_v7 = vld [vmem:[#allocation2 + $0x69] sm:$0x7f]  ;;  %2393 = vst [vmem:[#allocation2 + $0x98] sm:$0x7f] %v2361_v59  ;;  %v2358_v50 = vadd.f32 %v2288_v0, %v2214_v12  ;;  %v2644_v4 = vld [vmem:[#allocation2 + $0x71] sm:$0xff]  ;;  %v2675_v22 = vadd.f32 %v2645_v15, %v2570_v61  ;;  %v2222_v37 = vld [vmem:[#allocation2 + $0xc0] sm:$0xff] }
 0x213   : > { %v2642_v62 = vld [vmem:[#allocation2 + $0x61] sm:$0xff]  ;;  %v2673_v32 = vadd.f32 %v4703_v46, %v2643_v7  ;;  %2392 = vst [vmem:[#allocation2 + $0x90] sm:$0xff] %v2360_v52  ;;  %2391 = vst [vmem:[#allocation2 + $0x88] sm:$0x7f] %v2359_v14  ;;  %v2674_v18 = vadd.f32 %v2644_v4, %v2567_v58  ;;  %v4662_v23 = vpop.f32.mrb[100].mxu1  ;;  %v5651_v2 = vpop.f32.mrb[100].mxu0 }
 0x214   : > { %v2672_v26 = vadd.f32 %v5641_v36, %v2642_v62  ;;  %2390 = vst [vmem:[#allocation2 + $0x80] sm:$0xff] %v2358_v50  ;;  %2705 = vst [vmem:[#allocation2 + $0x79] sm:$0x7f] %v2675_v22  ;;  %v2151_v31 = vpop.f32.mrb[101].mxu1  ;;  %v2583_v34 = vpop.f32.mrb[101].mxu0  ;;  %v2295_v13 = vrot.slane %v4662_v23, 1 }
 0x215   : > { %2703 = vst [vmem:[#allocation2 + $0x69] sm:$0x7f] %v2673_v32  ;;  %2704 = vst [vmem:[#allocation2 + $0x71] sm:$0xff] %v2674_v18  ;;  %v4663_v38 = vpop.f32.mrb[102].mxu1  ;;  %v4711_v8 = vpop.f32.mrb[102].mxu0  ;;  %v2292_v25 = vrot.slane %v2151_v31, 1 }
 0x216   : > { %2702 = vst [vmem:[#allocation2 + $0x61] sm:$0xff] %v2672_v26  ;;  %v2296_v17 = vrot.slane %v4663_v38, 1  ;;  %v2154_v46 = vpop.f32.mrb[103].mxu1  ;;  %v2586_v21 = vpop.f32.mrb[103].mxu0 }
 0x217   : > { %v2293_v29 = vrot.slane %v2154_v46, 1  ;;  %v2229_v46 = vld [vmem:[#allocation2 + $0xf8] sm:$0x7f] }
 0x218   : > { %v2297_v33 = vsel %vm1514_vm0, %v2295_v13, %v2296_v17  ;;  %v2365_v36 = vadd.f32 %v2296_v17, %v2221_v41 }
 0x219   : > { %v2364_v6 = vadd.f32 %v2297_v33, %v2220_v30  ;;  %v2294_v42 = vsel %vm1514_vm0, %v2292_v25, %v2293_v29  ;;  %v2363_v9 = vadd.f32 %v2293_v29, %v2219_v35  ;;  %v2649_v5 = vld [vmem:[#allocation2 + $0x99] sm:$0x7f]  ;;  %v2228_v25 = vld [vmem:[#allocation2 + $0xf0] sm:$0xff]  ;;  %v2227_v29 = vld [vmem:[#allocation2 + $0xe8] sm:$0x7f] }
 0x21a   : > { %v2647_v48 = vld [vmem:[#allocation2 + $0x89] sm:$0x7f]  ;;  %2397 = vst [vmem:[#allocation2 + $0xb8] sm:$0x7f] %v2365_v36  ;;  %v2362_v49 = vadd.f32 %v2294_v42, %v2218_v43  ;;  %v2648_v51 = vld [vmem:[#allocation2 + $0x91] sm:$0xff]  ;;  %v2679_v47 = vadd.f32 %v2649_v5, %v2586_v21  ;;  %v2226_v33 = vld [vmem:[#allocation2 + $0xe0] sm:$0xff] }
 0x21b   : > { %v2646_v53 = vld [vmem:[#allocation2 + $0x81] sm:$0xff]  ;;  %v2677_v45 = vadd.f32 %v4707_v19, %v2647_v48  ;;  %2396 = vst [vmem:[#allocation2 + $0xb0] sm:$0xff] %v2364_v6  ;;  %2395 = vst [vmem:[#allocation2 + $0xa8] sm:$0x7f] %v2363_v9  ;;  %v2678_v28 = vadd.f32 %v2648_v51, %v2583_v34  ;;  %v4666_v55 = vpop.f32.mrb[104].mxu1  ;;  %v5656_v54 = vpop.f32.mrb[104].mxu0 }
 0x21c   : > { %v2676_v11 = vadd.f32 %v5646_v56, %v2646_v53  ;;  %2394 = vst [vmem:[#allocation2 + $0xa0] sm:$0xff] %v2362_v49  ;;  %2709 = vst [vmem:[#allocation2 + $0x99] sm:$0x7f] %v2679_v47  ;;  %v2167_v16 = vpop.f32.mrb[105].mxu1  ;;  %v2599_v20 = vpop.f32.mrb[105].mxu0  ;;  %v2301_v58 = vrot.slane %v4666_v55, 1 }
 0x21d   : > { %2707 = vst [vmem:[#allocation2 + $0x89] sm:$0x7f] %v2677_v45  ;;  %2708 = vst [vmem:[#allocation2 + $0x91] sm:$0xff] %v2678_v28  ;;  %v4667_v40 = vpop.f32.mrb[106].mxu1  ;;  %v4715_v44 = vpop.f32.mrb[106].mxu0  ;;  %v2298_v63 = vrot.slane %v2167_v16, 1 }
 0x21e   : > { %2706 = vst [vmem:[#allocation2 + $0x81] sm:$0xff] %v2676_v11  ;;  %v2302_v60 = vrot.slane %v4667_v40, 1  ;;  %v2170_v19 = vpop.f32.mrb[107].mxu1  ;;  %v2602_v24 = vpop.f32.mrb[107].mxu0 }
 0x21f   : > { %v2299_v61 = vrot.slane %v2170_v19, 1 }
 0x220   : > { %v2303_v57 = vsel %vm1514_vm0, %v2301_v58, %v2302_v60  ;;  %v2369_v56 = vadd.f32 %v2302_v60, %v2225_v1 }
 0x221   : > { %v2368_v27 = vadd.f32 %v2303_v57, %v2224_v3  ;;  %v2300_v59 = vsel %vm1514_vm0, %v2298_v63, %v2299_v61  ;;  %v2367_v10 = vadd.f32 %v2299_v61, %v2223_v39  ;;  %v2653_v52 = vld [vmem:[#allocation2 + $0xb9] sm:$0x7f] }
 0x222   : > { %v2651_v12 = vld [vmem:[#allocation2 + $0xa9] sm:$0x7f]  ;;  %2401 = vst [vmem:[#allocation2 + $0xd8] sm:$0x7f] %v2369_v56  ;;  %v2366_v0 = vadd.f32 %v2300_v59, %v2222_v37  ;;  %v2652_v14 = vld [vmem:[#allocation2 + $0xb1] sm:$0xff]  ;;  %v2683_v15 = vadd.f32 %v2653_v52, %v2602_v24 }
 0x223   : > { %v2650_v7 = vld [vmem:[#allocation2 + $0xa1] sm:$0xff]  ;;  %v2681_v50 = vadd.f32 %v4711_v8, %v2651_v12  ;;  %2400 = vst [vmem:[#allocation2 + $0xd0] sm:$0xff] %v2368_v27  ;;  %2399 = vst [vmem:[#allocation2 + $0xc8] sm:$0x7f] %v2367_v10  ;;  %v2682_v4 = vadd.f32 %v2652_v14, %v2599_v20  ;;  %v4670_v22 = vpop.f32.mrb[108].mxu1  ;;  %v5661_v62 = vpop.f32.mrb[108].mxu0 }
 0x224   : > { %v2680_v32 = vadd.f32 %v5651_v2, %v2650_v7  ;;  %2398 = vst [vmem:[#allocation2 + $0xc0] sm:$0xff] %v2366_v0  ;;  %2713 = vst [vmem:[#allocation2 + $0xb9] sm:$0x7f] %v2683_v15  ;;  %v2183_v18 = vpop.f32.mrb[109].mxu1  ;;  %v2615_v23 = vpop.f32.mrb[109].mxu0  ;;  %v2307_v34 = vrot.slane %v4670_v22, 1 }
 0x225   : > { %2711 = vst [vmem:[#allocation2 + $0xa9] sm:$0x7f] %v2681_v50  ;;  %2712 = vst [vmem:[#allocation2 + $0xb1] sm:$0xff] %v2682_v4  ;;  %v4671_v26 = vpop.f32.mrb[110].mxu1  ;;  %v4719_v31 = vpop.f32.mrb[110].mxu0  ;;  %v2304_v17 = vrot.slane %v2183_v18, 1 }
 0x226   : > { %2710 = vst [vmem:[#allocation2 + $0xa1] sm:$0xff] %v2680_v32  ;;  %v2308_v38 = vrot.slane %v4671_v26, 1  ;;  %v2186_v8 = vpop.f32.mrb[111].mxu1  ;;  %v2618_v13 = vpop.f32.mrb[111].mxu0  ;;  %v2945_v20 = vld [vmem:[#allocation2 + $0x8] sm:$0xff]  ;;  %v2948_v50 = vld [vmem:[#allocation2 + $0x20] sm:$0xff] }
 0x227   : > { %v2305_v21 = vrot.slane %v2186_v8, 1  ;;  %v2949_v14 = vld [vmem:[#allocation2 + $0x28] sm:$0xff]  ;;  %v2947_v32 = vld [vmem:[#allocation2 + $0x18] sm:$0xff] }
 0x228   : > { %v2309_v41 = vsel %vm1514_vm0, %v2307_v34, %v2308_v38  ;;  %v2373_v2 = vadd.f32 %v2308_v38, %v2229_v46  ;;  %v2946_v34 = vld [vmem:[#allocation2 + $0x10] sm:$0xff] }
 0x229   : > { %v5665_v30 = vadd.f32 %v2309_v41, %v2228_v25  ;;  %v2306_v36 = vsel %vm1514_vm0, %v2304_v17, %v2305_v21  ;;  %v2371_v35 = vadd.f32 %v2305_v21, %v2227_v29  ;;  %v2657_v6 = vld [vmem:[#allocation2 + $0xd9] sm:$0x7f] }
 0x22a   : > { %v2655_v43 = vld [vmem:[#allocation2 + $0xc9] sm:$0x7f]  ;;  %2405 = vst [vmem:[#allocation2 + $0xf8] sm:$0x7f] %v2373_v2  ;;  %v2370_v42 = vadd.f32 %v2306_v36, %v2226_v33  ;;  %v2656_v9 = vld [vmem:[#allocation2 + $0xd1] sm:$0xff]  ;;  %v2687_v5 = vadd.f32 %v2657_v6, %v2618_v13 }
 0x22b   : > { %v2654_v48 = vld [vmem:[#allocation2 + $0xc1] sm:$0xff]  ;;  %v2685_v49 = vadd.f32 %v4715_v44, %v2655_v43  ;;  %2404 = vst [vmem:[#allocation2 + $0xf0] sm:$0xff] %v5665_v30  ;;  %2403 = vst [vmem:[#allocation2 + $0xe8] sm:$0x7f] %v2371_v35  ;;  %v2686_v51 = vadd.f32 %v2656_v9, %v2615_v23  ;;  %v4738_v47 = vpop.f32.mrb[112].mxu1  ;;  %v4786_v53 = vpop.f32.mrb[112].mxu0 }
 0x22c   : > { %v2684_v45 = vadd.f32 %v5656_v54, %v2654_v48  ;;  %2402 = vst [vmem:[#allocation2 + $0xe0] sm:$0xff] %v2370_v42  ;;  %2717 = vst [vmem:[#allocation2 + $0xd9] sm:$0x7f] %v2687_v5  ;;  %v2819_v28 = vpop.f32.mrb[113].mxu1  ;;  %v3318_v55 = vrot.slane %v4786_v53, 1  ;;  %v3133_v11 = vpop.f32.mrb[113].mxu0 }
 0x22d   : > { %2715 = vst [vmem:[#allocation2 + $0xc9] sm:$0x7f] %v2685_v49  ;;  %2716 = vst [vmem:[#allocation2 + $0xd1] sm:$0xff] %v2686_v51  ;;  %v4739_v16 = vpop.f32.mrb[114].mxu1  ;;  %v4787_v40 = vpop.f32.mrb[114].mxu0  ;;  %v2944_v44 = vld [vmem:[#allocation2] sm:$0xff] }
 0x22e   : > { %2714 = vst [vmem:[#allocation2 + $0xc1] sm:$0xff] %v2684_v45  ;;  %v2975_v58 = vadd.f32 %v4739_v16, %v2945_v20  ;;  %v2821_v60 = vpop.f32.mrb[115].mxu1  ;;  %v3319_v19 = vrot.slane %v4787_v40, 1  ;;  %v3135_v24 = vpop.f32.mrb[115].mxu0  ;;  %v2974_v63 = vadd.f32 %v4738_v47, %v2944_v44  ;;  %v2953_v6 = vld [vmem:[#allocation2 + $0x48] sm:$0xff]  ;;  %v2952_v9 = vld [vmem:[#allocation2 + $0x40] sm:$0xff] }
 0x22f   : > { %v2951_v49 = vld [vmem:[#allocation2 + $0x38] sm:$0xff]  ;;  %v2950_v28 = vld [vmem:[#allocation2 + $0x30] sm:$0xff] }
 0x230   : > { %3005 = vst [vmem:[#allocation2 + $0x8] sm:$0xff] %v2975_v58  ;;  %v3320_v54 = vsel %vm1514_vm0, %v3318_v55, %v3319_v19 }
 0x231   : > { %v5671_v1 = vld [vmem:[#allocation2 + $0xf8] sm:$0xff]  ;;  %v5673_v61 = vadd.f32 %v3320_v54, %v2974_v63 }
 0x232   : > { %v4151_v3 = vpack.c.bf16 %v5671_v1, %v5665_v30  ;;  %v2659_v57 = vld [vmem:[#allocation2 + $0xe9] sm:$0x7f] }
 0x233   : > { %v2658_v56 = vld [vmem:[#allocation2 + $0xe1] sm:$0xff]  ;;  %v2689_v39 = vadd.f32 %v4719_v31, %v2659_v57  ;;  %3423 = vst [vmem:[#allocation2] sm:$0xff] %v5673_v61  ;;  %v4742_v27 = vpop.f32.mrb[116].mxu1  ;;  %v4790_v37 = vpop.f32.mrb[116].mxu0  ;;  %v3683_v60 = vmul.f32 %v5673_v61, %v5673_v61 }
 0x234   : > { %4167 = vst [vmem:[%s5680_s18 + $0x78] sm:$0xff] %v4151_v3   ;;  %v2688_v59 = vadd.f32 %v5661_v62, %v2658_v56  ;;  %v2833_v10 = vpop.f32.mrb[117].mxu1  ;;  %v3324_v52 = vrot.slane %v4790_v37, 1  ;;  %v3147_v12 = vpop.f32.mrb[117].mxu0  ;;  %v2978_v31 = vadd.f32 %v4742_v27, %v2948_v50 }
 0x235   : > { %2719 = vst [vmem:[#allocation2 + $0xe9] sm:$0x7f] %v2689_v39  ;;  %v4743_v0 = vpop.f32.mrb[118].mxu1  ;;  %v3321_v15 = vrot.slane %v3147_v12, 1  ;;  %v4791_v7 = vpop.f32.mrb[118].mxu0  ;;  %v2976_v13 = vadd.f32 %v2946_v34, %v2833_v10 }
 0x236   : > { %2718 = vst [vmem:[#allocation2 + $0xe1] sm:$0xff] %v2688_v59  ;;  %v2979_v4 = vadd.f32 %v4743_v0, %v2949_v14  ;;  %v2836_v22 = vpop.f32.mrb[119].mxu1  ;;  %v3325_v18 = vrot.slane %v4791_v7, 1  ;;  %v3150_v23 = vpop.f32.mrb[119].mxu0  ;;  %v2957_v0 = vld [vmem:[#allocation2 + $0x68] sm:$0xff] }
 0x237   : > { %v3259_v26 = vld [vmem:[#allocation2 + $0x8] sm:$0x7f]  ;;  %v2977_v38 = vadd.f32 %v2947_v32, %v2836_v22  ;;  %v3322_v62 = vrot.slane %v3150_v23, 1 }
 0x238   : > { %v3394_v8 = vadd.f32 %v3319_v19, %v3259_v26  ;;  %3009 = vst [vmem:[#allocation2 + $0x28] sm:$0xff] %v2979_v4  ;;  %v3326_v17 = vsel %vm1514_vm0, %v3324_v52, %v3325_v18  ;;  %v2956_v4 = vld [vmem:[#allocation2 + $0x60] sm:$0xff] }
 0x239   : > { %3007 = vst [vmem:[#allocation2 + $0x18] sm:$0xff] %v2977_v38  ;;  %v5685_v46 = vadd.f32 %v3326_v17, %v2978_v31  ;;  %v3323_v21 = vsel %vm1514_vm0, %v3321_v15, %v3322_v62  ;;  %v2954_v38 = vld [vmem:[#allocation2 + $0x50] sm:$0xff] }
 0x23a   : > { %3424 = vst [vmem:[#allocation2 + $0x8] sm:$0x7f] %v3394_v8  ;;  %v5688_v25 = vadd.f32 %v3323_v21, %v2976_v13 }
 0x23b   : > { %3427 = vst [vmem:[#allocation2 + $0x20] sm:$0xff] %v5685_v46  ;;  %v4746_v41 = vpop.f32.mrb[120].mxu1  ;;  %v4794_v2 = vpop.f32.mrb[120].mxu0 }
 0x23c   : > { %3425 = vst [vmem:[#allocation2 + $0x10] sm:$0xff] %v5688_v25  ;;  %v2849_v29 = vpop.f32.mrb[121].mxu1  ;;  %v3330_v33 = vrot.slane %v4794_v2, 1  ;;  %v3163_v36 = vpop.f32.mrb[121].mxu0  ;;  %v2982_v45 = vadd.f32 %v4746_v41, %v2952_v9  ;;  %v3685_v10 = vmul.f32 %v5688_v25, %v5688_v25 }
 0x23d   : > { %v4747_v35 = vpop.f32.mrb[122].mxu1  ;;  %v3327_v43 = vrot.slane %v3163_v36, 1  ;;  %v4795_v42 = vpop.f32.mrb[122].mxu0  ;;  %v2980_v40 = vadd.f32 %v2950_v28, %v2849_v29 }
 0x23e   : > { %v2983_v5 = vadd.f32 %v4747_v35, %v2953_v6  ;;  %v2852_v48 = vpop.f32.mrb[123].mxu1  ;;  %v3331_v51 = vrot.slane %v4795_v42, 1  ;;  %v3166_v47 = vpop.f32.mrb[123].mxu0 }
 0x23f   : > { %v3263_v53 = vld [vmem:[#allocation2 + $0x28] sm:$0x7f]  ;;  %v2981_v55 = vadd.f32 %v2951_v49, %v2852_v48  ;;  %v3328_v11 = vrot.slane %v3166_v47, 1 }
 0x240   : > { %v3398_v16 = vadd.f32 %v3325_v18, %v3263_v53  ;;  %v3261_v20 = vld [vmem:[#allocation2 + $0x18] sm:$0x7f]  ;;  %3013 = vst [vmem:[#allocation2 + $0x48] sm:$0xff] %v2983_v5  ;;  %v3332_v44 = vsel %vm1514_vm0, %v3330_v33, %v3331_v51 }
 0x241   : > { %v3454_v58 = vld [vmem:[#allocation2 + $0x8] sm:$0xff]  ;;  %v3396_v19 = vadd.f32 %v3322_v62, %v3261_v20  ;;  %3011 = vst [vmem:[#allocation2 + $0x38] sm:$0xff] %v2981_v55  ;;  %v5695_v24 = vadd.f32 %v3332_v44, %v2982_v45  ;;  %v3329_v63 = vsel %vm1514_vm0, %v3327_v43, %v3328_v11  ;;  %v2955_v18 = vld [vmem:[#allocation2 + $0x58] sm:$0xff]  ;;  %v3687_v45 = vmul.f32 %v5685_v46, %v5685_v46 }
 0x242   : > { %v4076_v54 = vpack.c.bf16 %v3454_v58, %v5673_v61  ;;  %v3645_v3 = vadd.f32 %v3454_v58, %v5673_v61  ;;  %v3684_v57 = vmul.f32 %v3454_v58, %v3454_v58  ;;  %3428 = vst [vmem:[#allocation2 + $0x28] sm:$0x7f] %v3398_v16  ;;  %v5700_v56 = vadd.f32 %v3329_v63, %v2980_v40  ;;  %v2961_v20 = vld [vmem:[#allocation2 + $0x88] sm:$0xff] }
 0x243   : > { %3426 = vst [vmem:[#allocation2 + $0x18] sm:$0x7f] %v3396_v19  ;;  %3431 = vst [vmem:[#allocation2 + $0x40] sm:$0xff] %v5695_v24  ;;  %v4750_v39 = vpop.f32.mrb[124].mxu1  ;;  %v4798_v27 = vpop.f32.mrb[124].mxu0  ;;  %v2959_v19 = vld [vmem:[#allocation2 + $0x78] sm:$0xff] }
 0x244   : > { %4077 = vst [vmem:[%s5680_s18] sm:$0xff] %v4076_v54   ;;  %v3715_v37 = vadd.f32 %v3684_v57, %v3683_v60  ;;  %v3646_v59 = vadd.f32 %v3645_v3, %v5688_v25  ;;  %3429 = vst [vmem:[#allocation2 + $0x30] sm:$0xff] %v5700_v56  ;;  %v2865_v52 = vpop.f32.mrb[125].mxu1  ;;  %v3179_v61 = vpop.f32.mrb[125].mxu0  ;;  %v3336_v14 = vrot.slane %v4798_v27, 1  ;;  %v2986_v34 = vadd.f32 %v4750_v39, %v2956_v4 }
 0x245   : > { %v4751_v12 = vpop.f32.mrb[126].mxu1  ;;  %v3333_v15 = vrot.slane %v3179_v61, 1  ;;  %v4799_v7 = vpop.f32.mrb[126].mxu0  ;;  %v2984_v21 = vadd.f32 %v2954_v38, %v2865_v52 }
 0x246   : > { %v3716_v50 = vadd.f32 %v3715_v37, %v3685_v10  ;;  %v2987_v22 = vadd.f32 %v4751_v12, %v2957_v0  ;;  %v2868_v32 = vpop.f32.mrb[127].mxu1  ;;  %v3337_v23 = vrot.slane %v4799_v7, 1  ;;  %v3182_v26 = vpop.f32.mrb[127].mxu0  ;;  %v2958_v7 = vld [vmem:[#allocation2 + $0x70] sm:$0xff] }
 0x247   : > { %v3267_v31 = vld [vmem:[#allocation2 + $0x48] sm:$0x7f]  ;;  %v2985_v62 = vadd.f32 %v2955_v18, %v2868_v32  ;;  %v3334_v8 = vrot.slane %v3182_v26, 1 }
 0x248   : > { %v3402_v13 = vadd.f32 %v3331_v51, %v3267_v31  ;;  %v3265_v17 = vld [vmem:[#allocation2 + $0x38] sm:$0x7f]  ;;  %3017 = vst [vmem:[#allocation2 + $0x68] sm:$0xff] %v2987_v22  ;;  %v3338_v41 = vsel %vm1514_vm0, %v3336_v14, %v3337_v23 }
 0x249   : > { %v3458_v2 = vld [vmem:[#allocation2 + $0x28] sm:$0xff]  ;;  %v3400_v29 = vadd.f32 %v3328_v11, %v3265_v17  ;;  %3015 = vst [vmem:[#allocation2 + $0x58] sm:$0xff] %v2985_v62  ;;  %v5709_v33 = vadd.f32 %v3338_v41, %v2986_v34  ;;  %v3335_v36 = vsel %vm1514_vm0, %v3333_v15, %v3334_v8  ;;  %v2960_v11 = vld [vmem:[#allocation2 + $0x80] sm:$0xff]  ;;  %v3691_v41 = vmul.f32 %v5695_v24, %v5695_v24 }
 0x24a   : > { %v4086_v35 = vpack.c.bf16 %v3458_v2, %v5685_v46  ;;  %v3456_v6 = vld [vmem:[#allocation2 + $0x18] sm:$0xff]  ;;  %3432 = vst [vmem:[#allocation2 + $0x48] sm:$0x7f] %v3402_v13  ;;  %v5713_v43 = vadd.f32 %v3335_v36, %v2984_v21  ;;  %v3688_v28 = vmul.f32 %v3458_v2, %v3458_v2  ;;  %v2964_v36 = vld [vmem:[#allocation2 + $0xa0] sm:$0xff] }
 0x24b   : > { %v4081_v42 = vpack.c.bf16 %v3456_v6, %v5688_v25  ;;  %v3647_v9 = vadd.f32 %v3646_v59, %v3456_v6  ;;  %v3686_v5 = vmul.f32 %v3456_v6, %v3456_v6  ;;  %3430 = vst [vmem:[#allocation2 + $0x38] sm:$0x7f] %v3400_v29  ;;  %3435 = vst [vmem:[#allocation2 + $0x60] sm:$0xff] %v5709_v33  ;;  %v4754_v48 = vpop.f32.mrb[128].mxu1  ;;  %v4802_v49 = vpop.f32.mrb[128].mxu0  ;;  %v2965_v6 = vld [vmem:[#allocation2 + $0xa8] sm:$0xff] }
 0x24c   : > { %4154 = vst [vmem:[%s5680_s18 + $0x10] sm:$0xff] %v4086_v35   ;;  %3433 = vst [vmem:[#allocation2 + $0x50] sm:$0xff] %v5713_v43  ;;  %v2881_v51 = vpop.f32.mrb[129].mxu1  ;;  %v3342_v47 = vrot.slane %v4802_v49, 1  ;;  %v3195_v53 = vpop.f32.mrb[129].mxu0  ;;  %v2990_v44 = vadd.f32 %v4754_v48, %v2960_v11  ;;  %v3689_v59 = vmul.f32 %v5700_v56, %v5700_v56  ;;  %v2963_v49 = vld [vmem:[#allocation2 + $0x98] sm:$0xff]  ;;  %v3693_v11 = vmul.f32 %v5713_v43, %v5713_v43 }
 0x24d   : > { %4153 = vst [vmem:[%s5680_s18 + $0x8] sm:$0xff] %v4081_v42   ;;  %v3717_v55 = vadd.f32 %v3716_v50, %v3686_v5  ;;  %v3648_v25 = vadd.f32 %v3647_v9, %v5685_v46  ;;  %v4755_v16 = vpop.f32.mrb[130].mxu1  ;;  %v5723_v40 = vpop.f32.mrb[130].mxu0  ;;  %v3339_v63 = vrot.slane %v3195_v53, 1  ;;  %v2988_v32 = vadd.f32 %v2958_v7, %v2881_v51 }
 0x24e   : > { %v2991_v58 = vadd.f32 %v4755_v16, %v2961_v20  ;;  %v2884_v60 = vpop.f32.mrb[131].mxu1  ;;  %v3343_v54 = vrot.slane %v5723_v40, 1  ;;  %v5726_v3 = vpop.f32.mrb[131].mxu0  ;;  %v3695_v7 = vmul.f32 %v5709_v33, %v5709_v33 }
 0x24f   : > { %v3649_v57 = vadd.f32 %v3648_v25, %v3458_v2  ;;  %v3718_v39 = vadd.f32 %v3717_v55, %v3687_v45  ;;  %v3271_v27 = vld [vmem:[#allocation2 + $0x68] sm:$0x7f]  ;;  %v2989_v37 = vadd.f32 %v2959_v19, %v2884_v60  ;;  %v3340_v46 = vrot.slane %v5726_v3, 1 }
 0x250   : > { %v3406_v10 = vadd.f32 %v3337_v23, %v3271_v27  ;;  %v3269_v52 = vld [vmem:[#allocation2 + $0x58] sm:$0x7f]  ;;  %3021 = vst [vmem:[#allocation2 + $0x88] sm:$0xff] %v2991_v58  ;;  %v3344_v61 = vsel %vm1514_vm0, %v3342_v47, %v3343_v54 }
 0x251   : > { %v3462_v12 = vld [vmem:[#allocation2 + $0x48] sm:$0xff]  ;;  %v3650_v0 = vadd.f32 %v3649_v57, %v5700_v56  ;;  %v3719_v14 = vadd.f32 %v3718_v39, %v3688_v28  ;;  %v3404_v15 = vadd.f32 %v3334_v8, %v3269_v52  ;;  %3019 = vst [vmem:[#allocation2 + $0x78] sm:$0xff] %v2989_v37  ;;  %v5733_v50 = vadd.f32 %v3344_v61, %v2990_v44 }
 0x252   : > { %v4096_v4 = vpack.c.bf16 %v3462_v12, %v5695_v24  ;;  %v3460_v22 = vld [vmem:[#allocation2 + $0x38] sm:$0xff]  ;;  %3436 = vst [vmem:[#allocation2 + $0x68] sm:$0x7f] %v3406_v10  ;;  %v3341_v18 = vsel %vm1514_vm0, %v3339_v63, %v3340_v46  ;;  %v3692_v2 = vmul.f32 %v3462_v12, %v3462_v12  ;;  %v2962_v63 = vld [vmem:[#allocation2 + $0x90] sm:$0xff] }
 0x253   : > { %v4091_v23 = vpack.c.bf16 %v3460_v22, %v5700_v56  ;;  %v3651_v26 = vadd.f32 %v3650_v0, %v3460_v22  ;;  %v3690_v31 = vmul.f32 %v3460_v22, %v3460_v22  ;;  %v3720_v34 = vadd.f32 %v3719_v14, %v3689_v59  ;;  %3434 = vst [vmem:[#allocation2 + $0x58] sm:$0x7f] %v3404_v15  ;;  %v4758_v38 = vpop.f32.mrb[132].mxu1  ;;  %v4806_v62 = vpop.f32.mrb[132].mxu0 }
 0x254   : > { %3439 = vst [vmem:[#allocation2 + $0x80] sm:$0xff] %v5733_v50  ;;  %4156 = vst [vmem:[%s5680_s18 + $0x20] sm:$0xff] %v4096_v4   ;;  %v5740_v8 = vadd.f32 %v3341_v18, %v2988_v32  ;;  %v2897_v13 = vpop.f32.mrb[133].mxu1  ;;  %v3348_v17 = vrot.slane %v4806_v62, 1  ;;  %v3211_v21 = vpop.f32.mrb[133].mxu0  ;;  %v2994_v9 = vadd.f32 %v4758_v38, %v2964_v36  ;;  %v2968_v32 = vld [vmem:[#allocation2 + $0xc0] sm:$0xff] }
 0x255   : > { %4155 = vst [vmem:[%s5680_s18 + $0x18] sm:$0xff] %v4091_v23   ;;  %v3721_v56 = vadd.f32 %v3720_v34, %v3690_v31  ;;  %v3652_v29 = vadd.f32 %v3651_v26, %v5695_v24  ;;  %v4759_v35 = vpop.f32.mrb[134].mxu1  ;;  %v5746_v42 = vpop.f32.mrb[134].mxu0  ;;  %v3345_v51 = vrot.slane %v3211_v21, 1  ;;  %v2992_v27 = vadd.f32 %v2962_v63, %v2897_v13  ;;  %v2969_v23 = vld [vmem:[#allocation2 + $0xc8] sm:$0xff]  ;;  %v2967_v62 = vld [vmem:[#allocation2 + $0xb8] sm:$0xff] }
 0x256   : > { %3437 = vst [vmem:[#allocation2 + $0x70] sm:$0xff] %v5740_v8  ;;  %v2995_v5 = vadd.f32 %v4759_v35, %v2965_v6  ;;  %v2900_v48 = vpop.f32.mrb[135].mxu1  ;;  %v3349_v47 = vrot.slane %v5746_v42, 1  ;;  %v5750_v53 = vpop.f32.mrb[135].mxu0  ;;  %v3697_v36 = vmul.f32 %v5740_v8, %v5740_v8  ;;  %v3699_v63 = vmul.f32 %v5733_v50, %v5733_v50 }
 0x257   : > { %v3653_v45 = vadd.f32 %v3652_v29, %v3462_v12  ;;  %v3722_v28 = vadd.f32 %v3721_v56, %v3691_v41  ;;  %v3275_v55 = vld [vmem:[#allocation2 + $0x88] sm:$0x7f]  ;;  %v2993_v24 = vadd.f32 %v2963_v49, %v2900_v48  ;;  %v3346_v25 = vrot.slane %v5750_v53, 1 }
 0x258   : > { %v3410_v16 = vadd.f32 %v3343_v54, %v3275_v55  ;;  %v3273_v20 = vld [vmem:[#allocation2 + $0x78] sm:$0x7f]  ;;  %3025 = vst [vmem:[#allocation2 + $0xa8] sm:$0xff] %v2995_v5  ;;  %v3350_v40 = vsel %vm1514_vm0, %v3348_v17, %v3349_v47 }
 0x259   : > { %v3466_v44 = vld [vmem:[#allocation2 + $0x68] sm:$0xff]  ;;  %v3654_v58 = vadd.f32 %v3653_v45, %v5713_v43  ;;  %v3723_v60 = vadd.f32 %v3722_v28, %v3692_v2  ;;  %v3408_v19 = vadd.f32 %v3340_v46, %v3273_v20  ;;  %3023 = vst [vmem:[#allocation2 + $0x98] sm:$0xff] %v2993_v24  ;;  %v5757_v3 = vadd.f32 %v3350_v40, %v2994_v9 }
 0x25a   : > { %v4106_v57 = vpack.c.bf16 %v3466_v44, %v5709_v33  ;;  %v3464_v39 = vld [vmem:[#allocation2 + $0x58] sm:$0xff]  ;;  %3440 = vst [vmem:[#allocation2 + $0x88] sm:$0x7f] %v3410_v16  ;;  %v3347_v54 = vsel %vm1514_vm0, %v3345_v51, %v3346_v25  ;;  %v3696_v4 = vmul.f32 %v3466_v44, %v3466_v44  ;;  %v2966_v51 = vld [vmem:[#allocation2 + $0xb0] sm:$0xff] }
 0x25b   : > { %v4101_v37 = vpack.c.bf16 %v3464_v39, %v5713_v43  ;;  %v3655_v59 = vadd.f32 %v3654_v58, %v3464_v39  ;;  %v3694_v10 = vmul.f32 %v3464_v39, %v3464_v39  ;;  %v3724_v52 = vadd.f32 %v3723_v60, %v3693_v11  ;;  %3438 = vst [vmem:[#allocation2 + $0x78] sm:$0x7f] %v3408_v19  ;;  %v4762_v46 = vpop.f32.mrb[136].mxu1  ;;  %v4810_v61 = vpop.f32.mrb[136].mxu0 }
 0x25c   : > { %3443 = vst [vmem:[#allocation2 + $0xa0] sm:$0xff] %v5757_v3  ;;  %4158 = vst [vmem:[%s5680_s18 + $0x30] sm:$0xff] %v4106_v57   ;;  %v5764_v12 = vadd.f32 %v3347_v54, %v2992_v27  ;;  %v2913_v0 = vpop.f32.mrb[137].mxu1  ;;  %v3354_v14 = vrot.slane %v4810_v61, 1  ;;  %v3227_v15 = vpop.f32.mrb[137].mxu0  ;;  %v2998_v31 = vadd.f32 %v4762_v46, %v2968_v32  ;;  %v2973_v27 = vld [vmem:[#allocation2 + $0xe8] sm:$0xff] }
 0x25d   : > { %4157 = vst [vmem:[%s5680_s18 + $0x28] sm:$0xff] %v4101_v37   ;;  %v3725_v43 = vadd.f32 %v3724_v52, %v3694_v10  ;;  %v3656_v22 = vadd.f32 %v3655_v59, %v5709_v33  ;;  %v4763_v18 = vpop.f32.mrb[138].mxu1  ;;  %v5770_v26 = vpop.f32.mrb[138].mxu0  ;;  %v3351_v13 = vrot.slane %v3227_v15, 1  ;;  %v2996_v55 = vadd.f32 %v2966_v51, %v2913_v0  ;;  %v2971_v61 = vld [vmem:[#allocation2 + $0xd8] sm:$0xff] }
 0x25e   : > { %3441 = vst [vmem:[#allocation2 + $0x90] sm:$0xff] %v5764_v12  ;;  %v2999_v34 = vadd.f32 %v4763_v18, %v2969_v23  ;;  %v2916_v38 = vpop.f32.mrb[139].mxu1  ;;  %v3355_v17 = vrot.slane %v5770_v26, 1  ;;  %v5774_v21 = vpop.f32.mrb[139].mxu0 }
 0x25f   : > { %v3657_v41 = vadd.f32 %v3656_v22, %v3466_v44  ;;  %v3726_v2 = vadd.f32 %v3725_v43, %v3695_v7  ;;  %v3279_v56 = vld [vmem:[#allocation2 + $0xa8] sm:$0x7f]  ;;  %v2997_v33 = vadd.f32 %v2967_v62, %v2916_v38  ;;  %v3352_v29 = vrot.slane %v5774_v21, 1  ;;  %v2970_v7 = vld [vmem:[#allocation2 + $0xd0] sm:$0xff] }
 0x260   : > { %v3414_v35 = vadd.f32 %v3349_v47, %v3279_v56  ;;  %v3277_v6 = vld [vmem:[#allocation2 + $0x98] sm:$0x7f]  ;;  %3029 = vst [vmem:[#allocation2 + $0xc8] sm:$0xff] %v2999_v34  ;;  %v3356_v42 = vsel %vm1514_vm0, %v3354_v14, %v3355_v17 }
 0x261   : > { %v3470_v9 = vld [vmem:[#allocation2 + $0x88] sm:$0xff]  ;;  %v3658_v5 = vadd.f32 %v3657_v41, %v5740_v8  ;;  %v3727_v48 = vadd.f32 %v3726_v2, %v3696_v4  ;;  %v3412_v49 = vadd.f32 %v3346_v25, %v3277_v6  ;;  %3027 = vst [vmem:[#allocation2 + $0xb8] sm:$0xff] %v2997_v33  ;;  %v5781_v53 = vadd.f32 %v3356_v42, %v2998_v31 }
 0x262   : > { %v4116_v45 = vpack.c.bf16 %v3470_v9, %v5733_v50  ;;  %v3468_v28 = vld [vmem:[#allocation2 + $0x78] sm:$0xff]  ;;  %3444 = vst [vmem:[#allocation2 + $0xa8] sm:$0x7f] %v3414_v35  ;;  %v3353_v47 = vsel %vm1514_vm0, %v3351_v13, %v3352_v29  ;;  %v3700_v31 = vmul.f32 %v3470_v9, %v3470_v9  ;;  %v3701_v2 = vmul.f32 %v5764_v12, %v5764_v12 }
 0x263   : > { %v4111_v24 = vpack.c.bf16 %v3468_v28, %v5740_v8  ;;  %v3659_v11 = vadd.f32 %v3658_v5, %v3468_v28  ;;  %v3698_v16 = vmul.f32 %v3468_v28, %v3468_v28  ;;  %v3728_v20 = vadd.f32 %v3727_v48, %v3697_v36  ;;  %3442 = vst [vmem:[#allocation2 + $0x98] sm:$0x7f] %v3412_v49  ;;  %v4766_v25 = vpop.f32.mrb[140].mxu1  ;;  %v4814_v40 = vpop.f32.mrb[140].mxu0  ;;  %v2972_v8 = vld [vmem:[#allocation2 + $0xe0] sm:$0xff] }
 0x264   : > { %3447 = vst [vmem:[#allocation2 + $0xc0] sm:$0xff] %v5781_v53  ;;  %4160 = vst [vmem:[%s5680_s18 + $0x40] sm:$0xff] %v4116_v45   ;;  %v5788_v44 = vadd.f32 %v3353_v47, %v2996_v55  ;;  %v2929_v58 = vpop.f32.mrb[141].mxu1  ;;  %v3360_v60 = vrot.slane %v4814_v40, 1  ;;  %v3243_v19 = vpop.f32.mrb[141].mxu0  ;;  %v3002_v10 = vadd.f32 %v4766_v25, %v2972_v8 }
 0x265   : > { %4159 = vst [vmem:[%s5680_s18 + $0x38] sm:$0xff] %v4111_v24   ;;  %v3729_v57 = vadd.f32 %v3728_v20, %v3698_v16  ;;  %v4767_v39 = vpop.f32.mrb[142].mxu1  ;;  %v3357_v54 = vrot.slane %v3243_v19, 1  ;;  %v4815_v37 = vpop.f32.mrb[142].mxu0  ;;  %v3660_v59 = vadd.f32 %v3659_v11, %v5733_v50  ;;  %v3000_v26 = vadd.f32 %v2970_v7, %v2929_v58 }
 0x266   : > { %3445 = vst [vmem:[#allocation2 + $0xb0] sm:$0xff] %v5788_v44  ;;  %v3003_v52 = vadd.f32 %v4767_v39, %v2973_v27  ;;  %v2932_v46 = vpop.f32.mrb[143].mxu1  ;;  %v3361_v0 = vrot.slane %v4815_v37, 1  ;;  %v3246_v14 = vpop.f32.mrb[143].mxu0 }
 0x267   : > { %v3283_v15 = vld [vmem:[#allocation2 + $0xc8] sm:$0x7f]  ;;  %v3001_v4 = vadd.f32 %v2971_v61, %v2932_v46  ;;  %v3358_v43 = vrot.slane %v3246_v14, 1  ;;  %v3661_v22 = vadd.f32 %v3660_v59, %v3470_v9  ;;  %v3730_v32 = vadd.f32 %v3729_v57, %v3699_v63 }
 0x268   : > { %v3418_v18 = vadd.f32 %v3355_v17, %v3283_v15  ;;  %v3281_v23 = vld [vmem:[#allocation2 + $0xb8] sm:$0x7f]  ;;  %3033 = vst [vmem:[#allocation2 + $0xe8] sm:$0xff] %v3003_v52  ;;  %v3362_v50 = vsel %vm1514_vm0, %v3360_v60, %v3361_v0  ;;  %v3703_v9 = vmul.f32 %v5757_v3, %v5757_v3  ;;  %v3707_v63 = vmul.f32 %v5781_v53, %v5781_v53 }
 0x269   : > { %v3474_v34 = vld [vmem:[#allocation2 + $0xa8] sm:$0xff]  ;;  %v3416_v38 = vadd.f32 %v3352_v29, %v3281_v23  ;;  %3031 = vst [vmem:[#allocation2 + $0xd8] sm:$0xff] %v3001_v4  ;;  %v5796_v62 = vadd.f32 %v3362_v50, %v3002_v10  ;;  %v3359_v13 = vsel %vm1514_vm0, %v3357_v54, %v3358_v43  ;;  %v3662_v21 = vadd.f32 %v3661_v22, %v5764_v12 }
 0x26a   : > { %v4126_v41 = vpack.c.bf16 %v3474_v34, %v5757_v3  ;;  %v3472_v17 = vld [vmem:[#allocation2 + $0x98] sm:$0xff]  ;;  %3448 = vst [vmem:[#allocation2 + $0xc8] sm:$0x7f] %v3418_v18  ;;  %v3419_v56 = vadd.f32 %v3359_v13, %v3000_v26  ;;  %v3731_v33 = vadd.f32 %v3730_v32, %v3700_v31  ;;  %v3704_v45 = vmul.f32 %v3474_v34, %v3474_v34 }
 0x26b   : > { %v4121_v29 = vpack.c.bf16 %v3472_v17, %v5764_v12  ;;  %3446 = vst [vmem:[#allocation2 + $0xb8] sm:$0x7f] %v3416_v38  ;;  %3451 = vst [vmem:[#allocation2 + $0xe0] sm:$0xff] %v5796_v62  ;;  %v3663_v36 = vadd.f32 %v3662_v21, %v3472_v17  ;;  %v3702_v35 = vmul.f32 %v3472_v17, %v3472_v17 }
 0x26c   : > { %4162 = vst [vmem:[%s5680_s18 + $0x50] sm:$0xff] %v4126_v41   ;;  %3449 = vst [vmem:[#allocation2 + $0xd0] sm:$0xff] %v3419_v56  ;;  %v3732_v6 = vadd.f32 %v3731_v33, %v3701_v2 }
 0x26d   : > { %4161 = vst [vmem:[%s5680_s18 + $0x48] sm:$0xff] %v4121_v29   ;;  %v3664_v42 = vadd.f32 %v3663_v36, %v5757_v3  ;;  %v3705_v3 = vmul.f32 %v5788_v44, %v5788_v44 }
 0x26e   : > { %v3733_v5 = vadd.f32 %v3732_v6, %v3702_v35 }
 0x26f   : > { %v3287_v48 = vld [vmem:[#allocation2 + $0xe8] sm:$0x7f]  ;;  %v3665_v49 = vadd.f32 %v3664_v42, %v3474_v34 }
 0x270   : > { %v3422_v51 = vadd.f32 %v3361_v0, %v3287_v48  ;;  %v3285_v12 = vld [vmem:[#allocation2 + $0xd8] sm:$0x7f]  ;;  %v3734_v28 = vadd.f32 %v3733_v5, %v3703_v9 }
 0x271   : > { %v3478_v55 = vld [vmem:[#allocation2 + $0xc8] sm:$0xff]  ;;  %v3420_v47 = vadd.f32 %v3358_v43, %v3285_v12  ;;  %v3666_v24 = vadd.f32 %v3665_v49, %v5788_v44 }
 0x272   : > { %v4136_v11 = vpack.c.bf16 %v3478_v55, %v5781_v53  ;;  %v3476_v16 = vld [vmem:[#allocation2 + $0xb8] sm:$0xff]  ;;  %3452 = vst [vmem:[#allocation2 + $0xe8] sm:$0x7f] %v3422_v51  ;;  %v3735_v20 = vadd.f32 %v3734_v28, %v3704_v45  ;;  %v3708_v39 = vmul.f32 %v3478_v55, %v3478_v55 }
 0x273   : > { %v4131_v25 = vpack.c.bf16 %v3476_v16, %v5788_v44  ;;  %3450 = vst [vmem:[#allocation2 + $0xd8] sm:$0x7f] %v3420_v47  ;;  %v3667_v40 = vadd.f32 %v3666_v24, %v3476_v16  ;;  %v3706_v58 = vmul.f32 %v3476_v16, %v3476_v16 }
 0x274   : > { %4164 = vst [vmem:[%s5680_s18 + $0x60] sm:$0xff] %v4136_v11   ;;  %v3736_v60 = vadd.f32 %v3735_v20, %v3705_v3 }
 0x275   : > { %4163 = vst [vmem:[%s5680_s18 + $0x58] sm:$0xff] %v4131_v25   ;;  %v3668_v19 = vadd.f32 %v3667_v40, %v5781_v53  ;;  %v3709_v53 = vmul.f32 %v3419_v56, %v3419_v56 }
 0x276   : > { %v3737_v57 = vadd.f32 %v3736_v60, %v3706_v58 }
 0x277   : > { %v3669_v8 = vadd.f32 %v3668_v19, %v3478_v55 }
 0x278   : > { %v3738_v27 = vadd.f32 %v3737_v57, %v3707_v63 }
 0x279   : > { %v3482_v44 = vld [vmem:[#allocation2 + $0xe8] sm:$0xff]  ;;  %v3670_v54 = vadd.f32 %v3669_v8, %v3419_v56 }
 0x27a   : > { %v4146_v37 = vpack.c.bf16 %v3482_v44, %v5796_v62  ;;  %v3480_v59 = vld [vmem:[#allocation2 + $0xd8] sm:$0xff]  ;;  %v3739_v10 = vadd.f32 %v3738_v27, %v3708_v39 }
 0x27b   : > { %v4141_v52 = vpack.c.bf16 %v3480_v59, %v3419_v56  ;;  %v3671_v46 = vadd.f32 %v3670_v54, %v3480_v59  ;;  %v3710_v61 = vmul.f32 %v3480_v59, %v3480_v59 }
 0x27c   : > { %4166 = vst [vmem:[%s5680_s18 + $0x70] sm:$0xff] %v4146_v37   ;;  %v3740_v0 = vadd.f32 %v3739_v10, %v3709_v53 }
 0x27d   : > { %4165 = vst [vmem:[%s5680_s18 + $0x68] sm:$0xff] %v4141_v52   ;;  %v3672_v14 = vadd.f32 %v3671_v46, %v5796_v62 }
 0x27e   : > { %5066 = shalt.err (!%p5063_p7)
}
 0x27f   : > { %s5067_s29 = scalar_lea.hbm %s5826_s25, 2048  ;;  %s5071_s7 = scalar_lea.hbm %s5916_s2, 4096 }
 0x280   : > { %p5068_p9 = scmp.ne.s32.totalorder %s5826_s25, %s5067_s29  ;;  %p5072_p5 = scmp.lt.u32.totalorder %s5826_s25, %s5916_s2 }
 0x281   : > { %p5073_p11 = scmp.lt.u32.totalorder %s5071_s7, %s5067_s29  ;;  %p5075_p4 = scmp.lt.u32.totalorder %s5067_s29, %s5826_s25 }
 0x282   : > { %p5069_p1 = pnand %p5068_p9, %p5279_p12 }
 0x283   : > { %p5074_p2 = por %p5073_p11, %p5072_p5 }
 0x284   : > { %p5070_p0 = pneg %p5069_p1 }
 0x285   : > { %p5076_p6 = por %p5075_p4, %p5074_p2 }
 0x287   : > { %p5077_p8 = pnand %p5076_p6, %p5070_p0 }
 0x289   : > { %5080 = shalt.err (!%p5077_p8)
}
 0x28a   : > { %s5162_s18 = smov 64   ;;  %s5163_s20 = smov 4   ;;  %v3711_v15 = vmul.f32 %v5796_v62, %v5796_v62  ;;  %v3741_v7 = vadd.f32 %v3740_v0, %v3710_v61  ;;  %v3673_v4 = vadd.f32 %v3672_v14, %v3482_v44  ;;  %v3712_v43 = vmul.f32 %v3482_v44, %v3482_v44 }
 0x28b   : > { %4838 = dma.vmem_to_hbm [thread:$0]  (%p5279_p12), %s5828_s8, 2048, %s5826_s25, %s3754_s5, %s5162_s18, %s5162_s18, %s5163_s20   ;;  %v3713_v18 = vmul.f32 %v5665_v30, %v5665_v30  ;;  %v3714_v50 = vmul.f32 %v5671_v1, %v5671_v1 }
 0x28c   : > { %v3742_v22 = vadd.f32 %v3741_v7, %v3711_v15  ;;  %v3674_v32 = vadd.f32 %v3673_v4, %v5665_v30  ;;  %s3911_s8 = sshll.u32 %s5330_s6, 1  ;;  %s4036_s9 = sshll.u32 %s5206_s16, 5 }
 0x28d   : > { %s214_s4 = scalar_lea.vmem [#allocation9], %s3911_s8  ;;  %s5870_s27 = scalar_lea.hbm %s5917_s3, %s4036_s9 }
 0x28e   : > { %v3743_v23 = vadd.f32 %v3742_v22, %v3712_v43  ;;  %v3675_v26 = vadd.f32 %v3674_v32, %v5671_v1  ;;  %s3788_s25 = sshll.u32 %s214_s4, 4  ;;  %s3759_s28 = scalar_lea.sflag [#allocation10], %s5330_s6  ;;  %s5872_s25 = int_to_ptr.vmem [resolvable:$true] %s3788_s25 }
 0x28f   : > { %s5081_s23 = scalar_lea.vmem %s5872_s25, 32  ;;  %s5164_s16 = smov [#allocation9]  }
 0x290   : > { %v3744_v31 = vadd.f32 %v3743_v23, %v3713_v18  ;;  %v3676_v34 = vrot.slane %v3675_v26, 4  ;;  %p5082_p10 = scmp.ne.s32.totalorder %s5872_s25, %s5081_s23  ;;  %s5085_s29 = sshll.u32 %s5164_s16, 4  ;;  %s5086_s29 = int_to_ptr.vmem [resolvable:$false] %s5085_s29 }
 0x291   : > { %s5087_s30 = scalar_lea.vmem %s5086_s29, 64  ;;  %p5088_p7 = scmp.lt.s32.totalorder %s5872_s25, %s5086_s29 }
 0x292   : > { %v3745_v38 = vadd.f32 %v3744_v31, %v3714_v50  ;;  %v3677_v62 = vadd.f32 %v3676_v34, %v3675_v26  ;;  %p5083_p13 = pnand %p5082_p10, %p5279_p12  ;;  %p5089_p9 = scmp.lt.s32.totalorder %s5087_s30, %s5081_s23 }
 0x294   : > { %v3746_v13 = vrot.slane %v3745_v38, 4  ;;  %v3678_v21 = vrot.slane %v3677_v62, 2  ;;  %p5084_p3 = pneg %p5083_p13  ;;  %p5090_p1 = por %p5089_p9, %p5088_p7 }
 0x296   : > { %v3747_v41 = vadd.f32 %v3746_v13, %v3745_v38  ;;  %v3679_v17 = vadd.f32 %v3678_v21, %v3677_v62  ;;  %p5091_p0 = pnand %p5090_p1, %p5084_p3 }
 0x298   : > { %v3748_v2 = vrot.slane %v3747_v41, 2  ;;  %v3680_v30 = vrot.slane %v3679_v17, 1 }
 0x29a   : > { %v3749_v56 = vadd.f32 %v3748_v2, %v3747_v41  ;;  %v3681_v33 = vadd.f32 %v3680_v30, %v3679_v17 }
 0x29c   : > { %v3750_v29 = vrot.slane %v3749_v56, 1  ;;  %3682 = vst [vmem:[%s214_s4] sm:$0x1] %v3681_v33 }
 0x29e   : > { %v3751_v1 = vadd.f32 %v3750_v29, %v3749_v56 }
 0x2a0   : > { %3752 = vst [vmem:[%s214_s4 + $0x1] sm:$0x1] %v3751_v1 }
 0x2a1   : > { %5094 = shalt.err (!%p5091_p0)
}
 0x2a2   : > { %s5095_s6 = scalar_lea.hbm %s5870_s27, 32  ;;  %s5099_s10 = scalar_lea.hbm %s5917_s3, 64 }
 0x2a3   : > { %p5096_p5 = scmp.ne.s32.totalorder %s5870_s27, %s5095_s6  ;;  %p5100_p4 = scmp.lt.u32.totalorder %s5870_s27, %s5917_s3 }
 0x2a4   : > { %p5101_p6 = scmp.lt.u32.totalorder %s5099_s10, %s5095_s6  ;;  %p5103_p10 = scmp.lt.u32.totalorder %s5095_s6, %s5870_s27 }
 0x2a5   : > { %p5097_p11 = pnand %p5096_p5, %p5279_p12 }
 0x2a6   : > { %p5102_p8 = por %p5101_p6, %p5100_p4 }
 0x2a7   : > { %p5098_p2 = pneg %p5097_p11 }
 0x2a8   : > { %p5104_p13 = por %p5103_p10, %p5102_p8 }
 0x2aa   : > { %p5105_p3 = pnand %p5104_p13, %p5098_p2 }
 0x2ac   : > { %5108 = shalt.err (!%p5105_p3)
}
 0x2ad   : > { %4839 = dma.vmem_to_hbm [thread:$0]  (%p5279_p12), %s5872_s25, 32, %s5870_s27, %s3759_s28  }
 0x2ae PF: > { %s3800_s20 = sand.u32 1, %s5143_s12   ;;  %p5932_p7 = scmp.ne.s32.totalorder %s5922_s19, 0 }
 0x2af   : > { %p5933_p9 = scmp.ge.s32.totalorder %s5155_s15, 2  ;;  %s3801_s8 = scalar_lea.sflag [#allocation5], %s3800_s20 }
 0x2b1   : > { %p4851_p1 = pnand %p5933_p9, %p5932_p7 }
 0x2b3   : > { %5134 = dma.done.wait (!%p4851_p1), %s3801_s8, 2048  }
 0x2b4   : > { %5136 = vsyncadd (!%p4851_p1), %s3801_s8, 4294965248  ;;  %s3810_s9 = scalar_lea.sflag [#allocation10], %s3800_s20 }
 0x2b5   : > { %5138 = dma.done.wait (!%p4851_p1), %s3810_s9, 32  }
 0x2b6   : > { %5140 = vsyncadd (!%p4851_p1), %s3810_s9, 4294967264  ;;  %p21_p12 = scmp.ge.s32.totalorder %s5241_s24, 4   ;;  %s5934_s12 = smov %s5147_s13 }
 0x2b7   : > { %s5935_s13 = smov %s5151_s14  ;;  %s5936_s14 = smov %s5275_s17 }
 0x2b8   : > { %s5937_s15 = smov %s5241_s24  ;;  %23 = sbr.rel (!%p21_p12) target bundleno = 8 (0x8), region = 103 }
 0x2bf   :  { %3815 = vsyncpa [#allocation4], 1 }
 0x2c0   :  { %3817 = vsyncpa [#allocation4 + $0x1], 1 }
 0x2c1   :  { %3818 = vsyncpa [#allocation7], 1 }
 0x2c2   :  { %3819 = vsyncpa [#allocation5], 1 }
 0x2c3   :  { %3821 = vsyncpa [#allocation5 + $0x1], 1 }
 0x2c4   :  { %3822 = vsyncpa [#allocation10], 1 }
 0x2c5   :  { %3824 = vsyncpa [#allocation10 + $0x1], 1 }

</bundles_post_ra>
